<compile_context>
chip_gen: v7x
topology: tpu7x:2x2x1
jax: 0.10.0
libtpu: 0.0.40
codegen_flags: <defaults>
</compile_context>

<pallas_src>
import functools
import math

import jax
import jax.numpy as jnp
from jax.experimental import pallas as pl
from jax.experimental.pallas import tpu as pltpu

LN_EPS = 1e-5                       # torch.nn.LayerNorm default eps
_INV_SQRT2 = 1.0 / math.sqrt(2.0)


def _ln_noaffine(x):
    """LayerNorm without affine (gamma/beta folded elsewhere)."""
    mean = jnp.mean(x, axis=-1, keepdims=True)
    xc = x - mean
    var = jnp.mean(xc * xc, axis=-1, keepdims=True)
    return xc * jax.lax.rsqrt(var + LN_EPS)


def _ln_affine(x, gamma, beta):
    return _ln_noaffine(x) * gamma + beta


# ----------------------------------------------------------------------------
# Fused kernel: LN -> Q proj (scale folded) -> masked multi-head attention over
# the resident pooled keys/values (softmax across ALL images' keys, as in the
# PyTorch module) -> folded output projection -> residual -> LN -> MLP (exact
# erf GELU) -> residual.
# ----------------------------------------------------------------------------
def _fused_kernel(num_heads, mxu_dtype, approx_recip, lane_dense,
                  x_ref, wmq_ref, kt_ref, vp_ref, wmk_ref,
                  wq_ref, bq_ref, bp_ref, w1_ref, b1_ref, w2_ref, b2_ref,
                  o_ref):
    C = x_ref.shape[-1]
    d = C // num_heads

    def mm(a, b):
        return jnp.dot(a.astype(mxu_dtype), b.astype(mxu_dtype),
                       preferred_element_type=jnp.float32)

    x = x_ref[...]                                   # [TQ, C] residual input
    qn = _ln_noaffine(x)
    q = mm(qn, wq_ref[...]) + bq_ref[...]            # [TQ, C] (LN gamma/beta and
                                                     #  attention scale folded in)
    q_m = q.astype(mxu_dtype)
    kt = kt_ref[...].astype(mxu_dtype)               # [C, BK] resident (precomputed)

    # multiplicative mask rebuilt in VMEM from tiny per-token factors
    mask = wmq_ref[...] * wmk_ref[...]               # [TQ, BK]

    acc = jnp.zeros((x.shape[0], C), jnp.float32)
    for h in range(num_heads):                       # static, small head count
        lo = h * d
        # scores: [TQ, d] @ [d, BK]; the K slice is sublane-(vreg-)aligned.
        s = jnp.dot(q_m[:, lo:lo + d], kt[lo:lo + d, :],
                    preferred_element_type=jnp.float32)          # [TQ, BK]
        s = s * mask                                 # multiplicative w_mask
        s = s - jnp.max(s, axis=-1, keepdims=True)
        e = jnp.exp(s)
        denom = jnp.sum(e, axis=-1, keepdims=True)
        if approx_recip:
            p = e * pl.reciprocal(denom, approx=True)    # EUP slot
        else:
            p = e / denom
        # VP[h] already carries Wv_h @ Wp_rows_h -> one [BK, C]-deep matmul/head
        acc = acc + jnp.dot(p.astype(mxu_dtype), vp_ref[h].astype(mxu_dtype),
                            preferred_element_type=jnp.float32)  # [TQ, C]

    y = x + acc + bp_ref[...]                        # residual 1 (DropPath = id)

    # FFN (LN affine folded into w1/b1), exact erf GELU, residual 2
    hn = _ln_noaffine(y)
    h1 = mm(hn, w1_ref[...]) + b1_ref[...]
    h1 = 0.5 * h1 * (1.0 + jax.lax.erf(h1 * _INV_SQRT2))
    h2 = mm(h1, w2_ref[...]) + b2_ref[...]
    z = y + h2                                       # [TQ, C]

    if lane_dense:
        # TODO(synk): the (TQ, C) -> (TQ/pack, pack*C) in-kernel relayout is
        # Mosaic-version dependent; kept opt-in (default off).
        o_ref[...] = z.reshape(o_ref.shape)
    else:
        o_ref[...] = z


def _resident(shape):
    """Full-resident BlockSpec (same block at every grid step)."""
    return pl.BlockSpec(shape, lambda i: (0,) * len(shape))


def _pick_tq(bq, cap=128):
    """Largest multiple-of-8 divisor of bq that is <= cap, preferring an even
    number of grid steps (keeps both v7x TensorCores fed)."""
    if bq <= cap:
        return bq
    best = None
    t = (min(cap, bq) // 8) * 8
    while t >= 8:
        if bq % t == 0:
            if best is None:
                best = t
            if (bq // t) % 2 == 0:
                return t
        t -= 8
    return best if best is not None else bq


def init_params(key, C):
    """Mirrors GroupAttention._init_weights: Linear weights trunc_normal(0.02),
    Linear biases 0, LayerNorm gamma 1 / beta 0.  Linear weights stored
    transposed to [in, out] so everything computes x @ W.  q/k/v projections
    have no bias (qkv_bias=False in AnyAttention)."""
    ks = jax.random.split(key, 6)
    tn = lambda k, shape: 0.02 * jax.random.truncated_normal(
        k, -2.0, 2.0, shape, jnp.float32)
    ones = jnp.ones((1, C), jnp.float32)
    zeros = jnp.zeros((1, C), jnp.float32)
    return dict(
        # AnyAttention
        gq=ones, bq=zeros, gk=ones, bk=zeros, gv=ones, bv=zeros,
        wq=tn(ks[0], (C, C)), wk=tn(ks[1], (C, C)), wv=tn(ks[2], (C, C)),
        wp=tn(ks[3], (C, C)), bp=zeros,
        # MLP (hidden_features = in_dim)
        g_ffn=ones, b_ffn=zeros,
        w1=tn(ks[4], (C, C)), b1=zeros,
        w2=tn(ks[5], (C, C)), b2=zeros,
    )


def group_attention_forward(feas, w_mask, params, num_heads, msp_scales, *,
                            tq=None, mxu_dtype=jnp.bfloat16,
                            approx_recip=True, lane_dense_out=False):
    """feas: [bs, C, H, W] (NCHW, f32); w_mask: [bs] raw logits.
    Implements GroupAttention.forward with ds=False (inference)."""
    bs, C, H, W = feas.shape
    assert C % num_heads == 0
    d = C // num_heads
    HW = H * W
    N = sum(s * s for s in msp_scales)
    BQ, BK = bs * HW, bs * N

    # queries: 'b c h w -> (b h w) c'
    x_tok = jnp.transpose(feas, (0, 2, 3, 1)).reshape(BQ, C)

    # MultiScalePooling (adaptive avg pool; H, W divisible by each scale)
    # TODO(synk): general AdaptiveAvgPool2d windows for non-divisible H/W.
    pools = []
    for s in msp_scales:
        p_ = feas.reshape(bs, C, s, H // s, s, W // s).mean(axis=(3, 5))
        pools.append(p_.reshape(bs, C, s * s))
    pooled = jnp.concatenate(pools, axis=2)                   # [bs, C, N]
    kv_tok = jnp.transpose(pooled, (0, 2, 1)).reshape(BK, C)  # '(b n) c'

    # mask factors: sigmoid(w)[q_image] * sigmoid(w)[k_image]; the full
    # [BQ, BK] product is never materialized in HBM.
    wm = jax.nn.sigmoid(w_mask.reshape(-1).astype(jnp.float32))   # [bs]
    wm_q = jnp.repeat(wm, HW).reshape(BQ, 1)
    wm_k = jnp.repeat(wm, N).reshape(1, BK)

    p = params
    scale = float((C / num_heads) ** (-0.5))

    # --- zero-cost wrapper-side precompute / weight folding -----------------
    # Q side: LN affine + attention scale folded into the projection.
    wq_f = (p['gq'].reshape(C, 1) * p['wq']) * scale
    bq_f = (p['bq'].reshape(1, C) @ p['wq']) * scale
    # K/V side hoisted out of the tile loop (computed ONCE, tiny [BK, C]).
    k_full = _ln_affine(kv_tok, p['gk'], p['bk']) @ p['wk']        # [BK, C]
    v_full = _ln_affine(kv_tok, p['gv'], p['bv']) @ p['wv']        # [BK, C]
    k_t = k_full.T                                                 # [C, BK]
    # output projection folded into V per head: VP[h] = V_h @ Wp_rows_h
    vp = jnp.stack(
        [v_full[:, h * d:(h + 1) * d] @ p['wp'][h * d:(h + 1) * d, :]
         for h in range(num_heads)], axis=0)                       # [H, BK, C]
    # FFN: LN affine folded into fc1.
    w1_f = p['g_ffn'].reshape(C, 1) * p['w1']
    b1_f = p['b_ffn'].reshape(1, C) @ p['w1'] + p['b1']

    # --- tiling --------------------------------------------------------------
    tq = tq or _pick_tq(BQ)
    assert BQ % tq == 0 and (tq % 8 == 0 or tq == BQ)
    grid = (BQ // tq,)

    in_arrays = [x_tok, wm_q, k_t, vp, wm_k,
                 wq_f, bq_f, p['bp'], w1_f, b1_f, p['w2'], p['b2']]
    in_specs = [pl.BlockSpec((tq, C), lambda i: (i, 0)),      # q tokens (tiled)
                pl.BlockSpec((tq, 1), lambda i: (i, 0))]      # q-side mask factor
    in_specs += [_resident(a.shape) for a in in_arrays[2:]]   # K^T, VP, weights

    # optional lane-dense output slab (review item); off by default.
    pack = 1
    if lane_dense_out and C < 128 and 128 % C == 0:
        pk = 128 // C
        if tq % pk == 0 and BQ % pk == 0:
            pack = pk
    if pack > 1:
        out_shape = jax.ShapeDtypeStruct((BQ // pack, pack * C), jnp.float32)
        out_spec = pl.BlockSpec((tq // pack, pack * C), lambda i: (i, 0))
    else:
        out_shape = jax.ShapeDtypeStruct((BQ, C), jnp.float32)
        out_spec = pl.BlockSpec((tq, C), lambda i: (i, 0))

    # explicit VMEM budget (resident weights + double-buffered tiles), clamped
    # well inside the v7x 64 MiB physical capacity.
    # TODO(synk): mark the constant-index resident inputs pl.Buffered(1) once
    # the pipeline_mode path is validated on the target Mosaic version.
    blk_bytes = (tq * C + tq + tq * C) * 4
    res_bytes = sum(int(a.size) * a.dtype.itemsize for a in in_arrays[2:])
    need = 2 * (blk_bytes + res_bytes)
    vmem_limit = int(min(max(4 * need + (8 << 20), 16 << 20), 48 << 20))

    z = pl.pallas_call(
        functools.partial(_fused_kernel, num_heads, mxu_dtype, approx_recip,
                          pack > 1),
        out_shape=out_shape,
        grid=grid,
        in_specs=in_specs,
        out_specs=out_spec,
        compiler_params=pltpu.CompilerParams(
            dimension_semantics=("parallel",),
            vmem_limit_bytes=vmem_limit),
    )(*in_arrays)

    z = z.reshape(BQ, C)          # no-op copy-free view for the packed layout
    # '(b h w) c -> b c h w'
    return jnp.transpose(z.reshape(bs, H, W, C), (0, 3, 1, 2))
    # TODO(synk): ds=True branch (AdaptiveMaxPool2d downscale + nearest
    # interpolate) of GroupAttention.forward is not implemented.


# ----------------------------------------------------------------------------
# Pure-JAX reference (f32), mirrors the PyTorch module op-for-op.
# ----------------------------------------------------------------------------
def _reference_forward(feas, w_mask, p, num_heads, msp_scales):
    bs, C, H, W = feas.shape
    d = C // num_heads
    scale = (C / num_heads) ** (-0.5)
    x = jnp.transpose(feas, (0, 2, 3, 1)).reshape(bs, H * W, C)
    pools = []
    for s in msp_scales:
        pr = feas.reshape(bs, C, s, H // s, s, W // s).mean(axis=(3, 5))
        pools.append(pr.reshape(bs, C, s * s))
    kv = jnp.transpose(jnp.concatenate(pools, axis=2), (0, 2, 1))   # [bs, N, C]
    N = kv.shape[1]

    def ln(t, g, b):
        return _ln_noaffine(t) * g.reshape(1, 1, C) + b.reshape(1, 1, C)

    q = ln(x, p['gq'], p['bq']) @ p['wq']
    k = ln(kv, p['gk'], p['bk']) @ p['wk']
    v = ln(kv, p['gv'], p['bv']) @ p['wv']

    BQ, BK = bs * H * W, bs * N
    qh = q.reshape(BQ, num_heads, d)
    kh = k.reshape(BK, num_heads, d)
    vh = v.reshape(BK, num_heads, d)
    attn = jnp.einsum('qgc,kgc->qgk', qh, kh) * scale
    sm = jax.nn.sigmoid(w_mask.reshape(-1))
    wmat = sm[:, None] * sm[None, :]
    attn = attn.reshape(bs, H * W, num_heads, bs, N) * wmat[:, None, None, :, None]
    attn = attn.reshape(BQ, num_heads, BK)
    attn = jax.nn.softmax(attn, axis=-1)
    ao = jnp.einsum('qgk,kgc->qgc', attn, vh).reshape(BQ, C)
    ao = ao @ p['wp'] + p['bp'].reshape(1, C)
    y = x.reshape(BQ, C) + ao
    hn = _ln_noaffine(y) * p['g_ffn'].reshape(1, C) + p['b_ffn'].reshape(1, C)
    h1 = hn @ p['w1'] + p['b1'].reshape(1, C)
    h1 = 0.5 * h1 * (1.0 + jax.lax.erf(h1 * _INV_SQRT2))
    h2 = h1 @ p['w2'] + p['b2'].reshape(1, C)
    z = y + h2
    return jnp.transpose(z.reshape(bs, H, W, C), (0, 3, 1, 2))


if __name__ == "__main__":
    key = jax.random.PRNGKey(0)
    bs, C, H, W = 2, 32, 16, 16
    num_heads = 4
    msp_scales = (1, 2, 4)          # -> N = 21 pooled tokens per image, BK = 42

    k_feas, k_mask, k_params = jax.random.split(key, 3)
    feas = jax.random.normal(k_feas, (bs, C, H, W), jnp.float32)
    w_mask = jax.random.normal(k_mask, (bs,), jnp.float32)
    params = init_params(k_params, C)

    # BQ = 512, tq = 128 -> grid = (4,) even 'parallel' steps (keeps both v7x
    # TensorCores busy with pipeline overlap); bf16 MXU operands, f32 accum.
    out = group_attention_forward(feas, w_mask, params, num_heads, msp_scales)
    jax.block_until_ready(out)
    assert out.shape == (bs, C, H, W)
    assert out.dtype == jnp.float32
    assert bool(jnp.all(jnp.isfinite(out)))

    # Cross-check against the pure-JAX f32 reference (loose tol: bf16 MXU
    # operands + approximate EUP reciprocal in the kernel).
    ref = _reference_forward(feas, w_mask, params, num_heads, msp_scales)
    err = float(jnp.max(jnp.abs(out - ref)))
    assert err < 2e-2, f"max abs error vs reference: {err}"

    print("KERNEL_OK")
</pallas_src>

<mosaic_0001>
module attributes {stable_mosaic.version = 11 : i64} {
  func.func @_fused_kernel(%arg0: i32, %arg1: memref<128x32xf32, #tpu.memory_space<vmem>>, %arg2: memref<128x1xf32, #tpu.memory_space<vmem>>, %arg3: memref<32x42xf32, #tpu.memory_space<vmem>>, %arg4: memref<4x42x32xf32, #tpu.memory_space<vmem>>, %arg5: memref<1x42xf32, #tpu.memory_space<vmem>>, %arg6: memref<32x32xf32, #tpu.memory_space<vmem>>, %arg7: memref<1x32xf32, #tpu.memory_space<vmem>>, %arg8: memref<1x32xf32, #tpu.memory_space<vmem>>, %arg9: memref<32x32xf32, #tpu.memory_space<vmem>>, %arg10: memref<1x32xf32, #tpu.memory_space<vmem>>, %arg11: memref<32x32xf32, #tpu.memory_space<vmem>>, %arg12: memref<1x32xf32, #tpu.memory_space<vmem>>, %arg13: memref<128x32xf32, #tpu.memory_space<vmem>>) attributes {dimension_semantics = [#tpu.dimension_semantics<parallel>], iteration_bounds = array<i64: 4>, scalar_prefetch = 0 : i64, scratch_operands = 0 : i64, tpu.core_type = #tpu.core_type<tc>, window_params = [{transform_indices = @transform_0, window_bounds = array<i64: 128, 32>}, {transform_indices = @transform_1, window_bounds = array<i64: 128, 1>}, {pipeline_mode = #tpu.pipeline_mode<synchronous>, transform_indices = @transform_2, window_bounds = array<i64: 32, 42>}, {pipeline_mode = #tpu.pipeline_mode<synchronous>, transform_indices = @transform_3, window_bounds = array<i64: 4, 42, 32>}, {pipeline_mode = #tpu.pipeline_mode<synchronous>, transform_indices = @transform_4, window_bounds = array<i64: 1, 42>}, {pipeline_mode = #tpu.pipeline_mode<synchronous>, transform_indices = @transform_5, window_bounds = array<i64: 32, 32>}, {pipeline_mode = #tpu.pipeline_mode<synchronous>, transform_indices = @transform_6, window_bounds = array<i64: 1, 32>}, {pipeline_mode = #tpu.pipeline_mode<synchronous>, transform_indices = @transform_7, window_bounds = array<i64: 1, 32>}, {pipeline_mode = #tpu.pipeline_mode<synchronous>, transform_indices = @transform_8, window_bounds = array<i64: 32, 32>}, {pipeline_mode = #tpu.pipeline_mode<synchronous>, transform_indices = @transform_9, window_bounds = array<i64: 1, 32>}, {pipeline_mode = #tpu.pipeline_mode<synchronous>, transform_indices = @transform_10, window_bounds = array<i64: 32, 32>}, {pipeline_mode = #tpu.pipeline_mode<synchronous>, transform_indices = @transform_11, window_bounds = array<i64: 1, 32>}, {transform_indices = @transform_12, window_bounds = array<i64: 128, 32>}]} {
    %c0 = arith.constant 0 : index
    %c0_0 = arith.constant 0 : index
    %0 = vector.load %arg1[%c0, %c0_0] : memref<128x32xf32, #tpu.memory_space<vmem>>, vector<128x32xf32>
    %cst = arith.constant dense<0.000000e+00> : vector<128xf32>
    %1 = vector.multi_reduction <add>, %0, %cst [1] : vector<128x32xf32> to vector<128xf32>
    %2 = vector.shape_cast %1 : vector<128xf32> to vector<128x1xf32>
    %cst_1 = arith.constant 3.200000e+01 : f32
    %3 = vector.broadcast %cst_1 : f32 to vector<128x1xf32>
    %4 = arith.divf %2, %3 : vector<128x1xf32>
    %5 = vector.broadcast %4 : vector<128x1xf32> to vector<128x32xf32>
    %6 = arith.subf %0, %5 : vector<128x32xf32>
    %7 = arith.mulf %6, %6 : vector<128x32xf32>
    %cst_2 = arith.constant dense<0.000000e+00> : vector<128xf32>
    %8 = vector.multi_reduction <add>, %7, %cst_2 [1] : vector<128x32xf32> to vector<128xf32>
    %9 = vector.shape_cast %8 : vector<128xf32> to vector<128x1xf32>
    %cst_3 = arith.constant 3.200000e+01 : f32
    %10 = vector.broadcast %cst_3 : f32 to vector<128x1xf32>
    %11 = arith.divf %9, %10 : vector<128x1xf32>
    %cst_4 = arith.constant 9.99999974E-6 : f32
    %12 = vector.broadcast %cst_4 : f32 to vector<128x1xf32>
    %13 = arith.addf %11, %12 : vector<128x1xf32>
    %14 = math.rsqrt %13 : vector<128x1xf32>
    %15 = vector.broadcast %14 : vector<128x1xf32> to vector<128x32xf32>
    %16 = arith.mulf %6, %15 : vector<128x32xf32>
    %c0_5 = arith.constant 0 : index
    %c0_6 = arith.constant 0 : index
    %17 = vector.load %arg6[%c0_5, %c0_6] : memref<32x32xf32, #tpu.memory_space<vmem>>, vector<32x32xf32>
    %18 = arith.truncf %16 : vector<128x32xf32> to vector<128x32xbf16>
    %19 = arith.truncf %17 : vector<32x32xf32> to vector<32x32xbf16>
    %cst_7 = arith.constant dense<0.000000e+00> : vector<128x32xf32>
    %20 = tpu.matmul %18, %19, %cst_7 {dimension_numbers = #tpu.dot_dimension_numbers<[1], [0], [0], [1], [0, 0, 1, 1], [], []>} : vector<128x32xbf16>, vector<32x32xbf16>, vector<128x32xf32> -> vector<128x32xf32>
    %c0_8 = arith.constant 0 : index
    %c0_9 = arith.constant 0 : index
    %21 = vector.load %arg7[%c0_8, %c0_9] : memref<1x32xf32, #tpu.memory_space<vmem>>, vector<1x32xf32>
    %22 = vector.broadcast %21 : vector<1x32xf32> to vector<128x32xf32>
    %23 = arith.addf %20, %22 : vector<128x32xf32>
    %24 = arith.truncf %23 : vector<128x32xf32> to vector<128x32xbf16>
    %c0_10 = arith.constant 0 : index
    %c0_11 = arith.constant 0 : index
    %25 = vector.load %arg3[%c0_10, %c0_11] : memref<32x42xf32, #tpu.memory_space<vmem>>, vector<32x42xf32>
    %26 = arith.truncf %25 : vector<32x42xf32> to vector<32x42xbf16>
    %c0_12 = arith.constant 0 : index
    %c0_13 = arith.constant 0 : index
    %27 = vector.load %arg2[%c0_12, %c0_13] : memref<128x1xf32, #tpu.memory_space<vmem>>, vector<128x1xf32>
    %c0_14 = arith.constant 0 : index
    %c0_15 = arith.constant 0 : index
    %28 = vector.load %arg5[%c0_14, %c0_15] : memref<1x42xf32, #tpu.memory_space<vmem>>, vector<1x42xf32>
    %29 = vector.broadcast %27 : vector<128x1xf32> to vector<128x42xf32>
    %30 = vector.broadcast %28 : vector<1x42xf32> to vector<128x42xf32>
    %31 = arith.mulf %29, %30 : vector<128x42xf32>
    %cst_16 = arith.constant 0.000000e+00 : f32
    %32 = vector.broadcast %cst_16 : f32 to vector<128x32xf32>
    %33 = vector.extract_strided_slice %24 {offsets = [0, 0], sizes = [128, 8], strides = [1, 1]} : vector<128x32xbf16> to vector<128x8xbf16>
    %34 = vector.extract_strided_slice %26 {offsets = [0, 0], sizes = [8, 42], strides = [1, 1]} : vector<32x42xbf16> to vector<8x42xbf16>
    %cst_17 = arith.constant dense<0.000000e+00> : vector<128x42xf32>
    %35 = tpu.matmul %33, %34, %cst_17 {dimension_numbers = #tpu.dot_dimension_numbers<[1], [0], [0], [1], [0, 0, 1, 1], [], []>} : vector<128x8xbf16>, vector<8x42xbf16>, vector<128x42xf32> -> vector<128x42xf32>
    %36 = arith.mulf %35, %31 : vector<128x42xf32>
    %cst_18 = arith.constant dense<0xFF800000> : vector<128xf32>
    %37 = vector.multi_reduction <maximumf>, %36, %cst_18 [1] : vector<128x42xf32> to vector<128xf32>
    %38 = vector.shape_cast %37 : vector<128xf32> to vector<128x1xf32>
    %39 = vector.broadcast %38 : vector<128x1xf32> to vector<128x42xf32>
    %40 = arith.subf %36, %39 : vector<128x42xf32>
    %41 = math.exp %40 : vector<128x42xf32>
    %cst_19 = arith.constant dense<0.000000e+00> : vector<128xf32>
    %42 = vector.multi_reduction <add>, %41, %cst_19 [1] : vector<128x42xf32> to vector<128xf32>
    %43 = vector.shape_cast %42 : vector<128xf32> to vector<128x1xf32>
    %44 = tpu.reciprocal %43 {approx = true} : vector<128x1xf32> -> vector<128x1xf32>
    %45 = vector.broadcast %44 : vector<128x1xf32> to vector<128x42xf32>
    %46 = arith.mulf %41, %45 : vector<128x42xf32>
    %47 = arith.truncf %46 : vector<128x42xf32> to vector<128x42xbf16>
    %c0_20 = arith.constant 0 : index
    %c0_21 = arith.constant 0 : index
    %c0_22 = arith.constant 0 : index
    %48 = vector.load %arg4[%c0_20, %c0_21, %c0_22] : memref<4x42x32xf32, #tpu.memory_space<vmem>>, vector<1x42x32xf32>
    %49 = vector.shape_cast %48 : vector<1x42x32xf32> to vector<42x32xf32>
    %50 = arith.truncf %49 : vector<42x32xf32> to vector<42x32xbf16>
    %cst_23 = arith.constant dense<0.000000e+00> : vector<128x32xf32>
    %51 = tpu.matmul %47, %50, %cst_23 {dimension_numbers = #tpu.dot_dimension_numbers<[1], [0], [0], [1], [0, 0, 1, 1], [], []>} : vector<128x42xbf16>, vector<42x32xbf16>, vector<128x32xf32> -> vector<128x32xf32>
    %52 = arith.addf %32, %51 : vector<128x32xf32>
    %53 = vector.extract_strided_slice %24 {offsets = [0, 8], sizes = [128, 8], strides = [1, 1]} : vector<128x32xbf16> to vector<128x8xbf16>
    %54 = vector.extract_strided_slice %26 {offsets = [8, 0], sizes = [8, 42], strides = [1, 1]} : vector<32x42xbf16> to vector<8x42xbf16>
    %cst_24 = arith.constant dense<0.000000e+00> : vector<128x42xf32>
    %55 = tpu.matmul %53, %54, %cst_24 {dimension_numbers = #tpu.dot_dimension_numbers<[1], [0], [0], [1], [0, 0, 1, 1], [], []>} : vector<128x8xbf16>, vector<8x42xbf16>, vector<128x42xf32> -> vector<128x42xf32>
    %56 = arith.mulf %55, %31 : vector<128x42xf32>
    %cst_25 = arith.constant dense<0xFF800000> : vector<128xf32>
    %57 = vector.multi_reduction <maximumf>, %56, %cst_25 [1] : vector<128x42xf32> to vector<128xf32>
    %58 = vector.shape_cast %57 : vector<128xf32> to vector<128x1xf32>
    %59 = vector.broadcast %58 : vector<128x1xf32> to vector<128x42xf32>
    %60 = arith.subf %56, %59 : vector<128x42xf32>
    %61 = math.exp %60 : vector<128x42xf32>
    %cst_26 = arith.constant dense<0.000000e+00> : vector<128xf32>
    %62 = vector.multi_reduction <add>, %61, %cst_26 [1] : vector<128x42xf32> to vector<128xf32>
    %63 = vector.shape_cast %62 : vector<128xf32> to vector<128x1xf32>
    %64 = tpu.reciprocal %63 {approx = true} : vector<128x1xf32> -> vector<128x1xf32>
    %65 = vector.broadcast %64 : vector<128x1xf32> to vector<128x42xf32>
    %66 = arith.mulf %61, %65 : vector<128x42xf32>
    %67 = arith.truncf %66 : vector<128x42xf32> to vector<128x42xbf16>
    %c1 = arith.constant 1 : index
    %c0_27 = arith.constant 0 : index
    %c0_28 = arith.constant 0 : index
    %68 = vector.load %arg4[%c1, %c0_27, %c0_28] : memref<4x42x32xf32, #tpu.memory_space<vmem>>, vector<1x42x32xf32>
    %69 = vector.shape_cast %68 : vector<1x42x32xf32> to vector<42x32xf32>
    %70 = arith.truncf %69 : vector<42x32xf32> to vector<42x32xbf16>
    %cst_29 = arith.constant dense<0.000000e+00> : vector<128x32xf32>
    %71 = tpu.matmul %67, %70, %cst_29 {dimension_numbers = #tpu.dot_dimension_numbers<[1], [0], [0], [1], [0, 0, 1, 1], [], []>} : vector<128x42xbf16>, vector<42x32xbf16>, vector<128x32xf32> -> vector<128x32xf32>
    %72 = arith.addf %52, %71 : vector<128x32xf32>
    %73 = vector.extract_strided_slice %24 {offsets = [0, 16], sizes = [128, 8], strides = [1, 1]} : vector<128x32xbf16> to vector<128x8xbf16>
    %74 = vector.extract_strided_slice %26 {offsets = [16, 0], sizes = [8, 42], strides = [1, 1]} : vector<32x42xbf16> to vector<8x42xbf16>
    %cst_30 = arith.constant dense<0.000000e+00> : vector<128x42xf32>
    %75 = tpu.matmul %73, %74, %cst_30 {dimension_numbers = #tpu.dot_dimension_numbers<[1], [0], [0], [1], [0, 0, 1, 1], [], []>} : vector<128x8xbf16>, vector<8x42xbf16>, vector<128x42xf32> -> vector<128x42xf32>
    %76 = arith.mulf %75, %31 : vector<128x42xf32>
    %cst_31 = arith.constant dense<0xFF800000> : vector<128xf32>
    %77 = vector.multi_reduction <maximumf>, %76, %cst_31 [1] : vector<128x42xf32> to vector<128xf32>
    %78 = vector.shape_cast %77 : vector<128xf32> to vector<128x1xf32>
    %79 = vector.broadcast %78 : vector<128x1xf32> to vector<128x42xf32>
    %80 = arith.subf %76, %79 : vector<128x42xf32>
    %81 = math.exp %80 : vector<128x42xf32>
    %cst_32 = arith.constant dense<0.000000e+00> : vector<128xf32>
    %82 = vector.multi_reduction <add>, %81, %cst_32 [1] : vector<128x42xf32> to vector<128xf32>
    %83 = vector.shape_cast %82 : vector<128xf32> to vector<128x1xf32>
    %84 = tpu.reciprocal %83 {approx = true} : vector<128x1xf32> -> vector<128x1xf32>
    %85 = vector.broadcast %84 : vector<128x1xf32> to vector<128x42xf32>
    %86 = arith.mulf %81, %85 : vector<128x42xf32>
    %87 = arith.truncf %86 : vector<128x42xf32> to vector<128x42xbf16>
    %c2 = arith.constant 2 : index
    %c0_33 = arith.constant 0 : index
    %c0_34 = arith.constant 0 : index
    %88 = vector.load %arg4[%c2, %c0_33, %c0_34] : memref<4x42x32xf32, #tpu.memory_space<vmem>>, vector<1x42x32xf32>
    %89 = vector.shape_cast %88 : vector<1x42x32xf32> to vector<42x32xf32>
    %90 = arith.truncf %89 : vector<42x32xf32> to vector<42x32xbf16>
    %cst_35 = arith.constant dense<0.000000e+00> : vector<128x32xf32>
    %91 = tpu.matmul %87, %90, %cst_35 {dimension_numbers = #tpu.dot_dimension_numbers<[1], [0], [0], [1], [0, 0, 1, 1], [], []>} : vector<128x42xbf16>, vector<42x32xbf16>, vector<128x32xf32> -> vector<128x32xf32>
    %92 = arith.addf %72, %91 : vector<128x32xf32>
    %93 = vector.extract_strided_slice %24 {offsets = [0, 24], sizes = [128, 8], strides = [1, 1]} : vector<128x32xbf16> to vector<128x8xbf16>
    %94 = vector.extract_strided_slice %26 {offsets = [24, 0], sizes = [8, 42], strides = [1, 1]} : vector<32x42xbf16> to vector<8x42xbf16>
    %cst_36 = arith.constant dense<0.000000e+00> : vector<128x42xf32>
    %95 = tpu.matmul %93, %94, %cst_36 {dimension_numbers = #tpu.dot_dimension_numbers<[1], [0], [0], [1], [0, 0, 1, 1], [], []>} : vector<128x8xbf16>, vector<8x42xbf16>, vector<128x42xf32> -> vector<128x42xf32>
    %96 = arith.mulf %95, %31 : vector<128x42xf32>
    %cst_37 = arith.constant dense<0xFF800000> : vector<128xf32>
    %97 = vector.multi_reduction <maximumf>, %96, %cst_37 [1] : vector<128x42xf32> to vector<128xf32>
    %98 = vector.shape_cast %97 : vector<128xf32> to vector<128x1xf32>
    %99 = vector.broadcast %98 : vector<128x1xf32> to vector<128x42xf32>
    %100 = arith.subf %96, %99 : vector<128x42xf32>
    %101 = math.exp %100 : vector<128x42xf32>
    %cst_38 = arith.constant dense<0.000000e+00> : vector<128xf32>
    %102 = vector.multi_reduction <add>, %101, %cst_38 [1] : vector<128x42xf32> to vector<128xf32>
    %103 = vector.shape_cast %102 : vector<128xf32> to vector<128x1xf32>
    %104 = tpu.reciprocal %103 {approx = true} : vector<128x1xf32> -> vector<128x1xf32>
    %105 = vector.broadcast %104 : vector<128x1xf32> to vector<128x42xf32>
    %106 = arith.mulf %101, %105 : vector<128x42xf32>
    %107 = arith.truncf %106 : vector<128x42xf32> to vector<128x42xbf16>
    %c3 = arith.constant 3 : index
    %c0_39 = arith.constant 0 : index
    %c0_40 = arith.constant 0 : index
    %108 = vector.load %arg4[%c3, %c0_39, %c0_40] : memref<4x42x32xf32, #tpu.memory_space<vmem>>, vector<1x42x32xf32>
    %109 = vector.shape_cast %108 : vector<1x42x32xf32> to vector<42x32xf32>
    %110 = arith.truncf %109 : vector<42x32xf32> to vector<42x32xbf16>
    %cst_41 = arith.constant dense<0.000000e+00> : vector<128x32xf32>
    %111 = tpu.matmul %107, %110, %cst_41 {dimension_numbers = #tpu.dot_dimension_numbers<[1], [0], [0], [1], [0, 0, 1, 1], [], []>} : vector<128x42xbf16>, vector<42x32xbf16>, vector<128x32xf32> -> vector<128x32xf32>
    %112 = arith.addf %92, %111 : vector<128x32xf32>
    %113 = arith.addf %0, %112 : vector<128x32xf32>
    %c0_42 = arith.constant 0 : index
    %c0_43 = arith.constant 0 : index
    %114 = vector.load %arg8[%c0_42, %c0_43] : memref<1x32xf32, #tpu.memory_space<vmem>>, vector<1x32xf32>
    %115 = vector.broadcast %114 : vector<1x32xf32> to vector<128x32xf32>
    %116 = arith.addf %113, %115 : vector<128x32xf32>
    %cst_44 = arith.constant dense<0.000000e+00> : vector<128xf32>
    %117 = vector.multi_reduction <add>, %116, %cst_44 [1] : vector<128x32xf32> to vector<128xf32>
    %118 = vector.shape_cast %117 : vector<128xf32> to vector<128x1xf32>
    %cst_45 = arith.constant 3.200000e+01 : f32
    %119 = vector.broadcast %cst_45 : f32 to vector<128x1xf32>
    %120 = arith.divf %118, %119 : vector<128x1xf32>
    %121 = vector.broadcast %120 : vector<128x1xf32> to vector<128x32xf32>
    %122 = arith.subf %116, %121 : vector<128x32xf32>
    %123 = arith.mulf %122, %122 : vector<128x32xf32>
    %cst_46 = arith.constant dense<0.000000e+00> : vector<128xf32>
    %124 = vector.multi_reduction <add>, %123, %cst_46 [1] : vector<128x32xf32> to vector<128xf32>
    %125 = vector.shape_cast %124 : vector<128xf32> to vector<128x1xf32>
    %cst_47 = arith.constant 3.200000e+01 : f32
    %126 = vector.broadcast %cst_47 : f32 to vector<128x1xf32>
    %127 = arith.divf %125, %126 : vector<128x1xf32>
    %cst_48 = arith.constant 9.99999974E-6 : f32
    %128 = vector.broadcast %cst_48 : f32 to vector<128x1xf32>
    %129 = arith.addf %127, %128 : vector<128x1xf32>
    %130 = math.rsqrt %129 : vector<128x1xf32>
    %131 = vector.broadcast %130 : vector<128x1xf32> to vector<128x32xf32>
    %132 = arith.mulf %122, %131 : vector<128x32xf32>
    %c0_49 = arith.constant 0 : index
    %c0_50 = arith.constant 0 : index
    %133 = vector.load %arg9[%c0_49, %c0_50] : memref<32x32xf32, #tpu.memory_space<vmem>>, vector<32x32xf32>
    %134 = arith.truncf %132 : vector<128x32xf32> to vector<128x32xbf16>
    %135 = arith.truncf %133 : vector<32x32xf32> to vector<32x32xbf16>
    %cst_51 = arith.constant dense<0.000000e+00> : vector<128x32xf32>
    %136 = tpu.matmul %134, %135, %cst_51 {dimension_numbers = #tpu.dot_dimension_numbers<[1], [0], [0], [1], [0, 0, 1, 1], [], []>} : vector<128x32xbf16>, vector<32x32xbf16>, vector<128x32xf32> -> vector<128x32xf32>
    %c0_52 = arith.constant 0 : index
    %c0_53 = arith.constant 0 : index
    %137 = vector.load %arg10[%c0_52, %c0_53] : memref<1x32xf32, #tpu.memory_space<vmem>>, vector<1x32xf32>
    %138 = vector.broadcast %137 : vector<1x32xf32> to vector<128x32xf32>
    %139 = arith.addf %136, %138 : vector<128x32xf32>
    %cst_54 = arith.constant 5.000000e-01 : f32
    %140 = vector.broadcast %cst_54 : f32 to vector<128x32xf32>
    %141 = arith.mulf %140, %139 : vector<128x32xf32>
    %cst_55 = arith.constant 0.707106769 : f32
    %142 = vector.broadcast %cst_55 : f32 to vector<128x32xf32>
    %143 = arith.mulf %139, %142 : vector<128x32xf32>
    %144 = math.erf %143 : vector<128x32xf32>
    %cst_56 = arith.constant 1.000000e+00 : f32
    %145 = vector.broadcast %cst_56 : f32 to vector<128x32xf32>
    %146 = arith.addf %145, %144 : vector<128x32xf32>
    %147 = arith.mulf %141, %146 : vector<128x32xf32>
    %c0_57 = arith.constant 0 : index
    %c0_58 = arith.constant 0 : index
    %148 = vector.load %arg11[%c0_57, %c0_58] : memref<32x32xf32, #tpu.memory_space<vmem>>, vector<32x32xf32>
    %149 = arith.truncf %147 : vector<128x32xf32> to vector<128x32xbf16>
    %150 = arith.truncf %148 : vector<32x32xf32> to vector<32x32xbf16>
    %cst_59 = arith.constant dense<0.000000e+00> : vector<128x32xf32>
    %151 = tpu.matmul %149, %150, %cst_59 {dimension_numbers = #tpu.dot_dimension_numbers<[1], [0], [0], [1], [0, 0, 1, 1], [], []>} : vector<128x32xbf16>, vector<32x32xbf16>, vector<128x32xf32> -> vector<128x32xf32>
    %c0_60 = arith.constant 0 : index
    %c0_61 = arith.constant 0 : index
    %152 = vector.load %arg12[%c0_60, %c0_61] : memref<1x32xf32, #tpu.memory_space<vmem>>, vector<1x32xf32>
    %153 = vector.broadcast %152 : vector<1x32xf32> to vector<128x32xf32>
    %154 = arith.addf %151, %153 : vector<128x32xf32>
    %155 = arith.addf %116, %154 : vector<128x32xf32>
    %c0_62 = arith.constant 0 : index
    %c0_63 = arith.constant 0 : index
    %156 = vector.load %arg13[%c0_62, %c0_63] : memref<128x32xf32, #tpu.memory_space<vmem>>, vector<128x32xf32>
    tpu.vector_store %arg13[%c0_62, %c0_63], %155 {strides = array<i32>} : memref<128x32xf32, #tpu.memory_space<vmem>>, vector<128x32xf32>,
    return
  }
  func.func @transform_0(%arg0: i32) -> (i32, i32) {
    %c0_i32 = arith.constant 0 : i32
    %c0_i32_0 = arith.constant 0 : i32
    return %arg0, %c0_i32 : i32, i32
  }
  func.func @transform_1(%arg0: i32) -> (i32, i32) {
    %c0_i32 = arith.constant 0 : i32
    %c0_i32_0 = arith.constant 0 : i32
    return %arg0, %c0_i32 : i32, i32
  }
  func.func @transform_2(%arg0: i32) -> (i32, i32) {
    %c0_i32 = arith.constant 0 : i32
    %c0_i32_0 = arith.constant 0 : i32
    %c0_i32_1 = arith.constant 0 : i32
    return %c0_i32, %c0_i32_0 : i32, i32
  }
  func.func @transform_3(%arg0: i32) -> (i32, i32, i32) {
    %c0_i32 = arith.constant 0 : i32
    %c0_i32_0 = arith.constant 0 : i32
    %c0_i32_1 = arith.constant 0 : i32
    %c0_i32_2 = arith.constant 0 : i32
    return %c0_i32, %c0_i32_0, %c0_i32_1 : i32, i32, i32
  }
  func.func @transform_4(%arg0: i32) -> (i32, i32) {
    %c0_i32 = arith.constant 0 : i32
    %c0_i32_0 = arith.constant 0 : i32
    %c0_i32_1 = arith.constant 0 : i32
    return %c0_i32, %c0_i32_0 : i32, i32
  }
  func.func @transform_5(%arg0: i32) -> (i32, i32) {
    %c0_i32 = arith.constant 0 : i32
    %c0_i32_0 = arith.constant 0 : i32
    %c0_i32_1 = arith.constant 0 : i32
    return %c0_i32, %c0_i32_0 : i32, i32
  }
  func.func @transform_6(%arg0: i32) -> (i32, i32) {
    %c0_i32 = arith.constant 0 : i32
    %c0_i32_0 = arith.constant 0 : i32
    %c0_i32_1 = arith.constant 0 : i32
    return %c0_i32, %c0_i32_0 : i32, i32
  }
  func.func @transform_7(%arg0: i32) -> (i32, i32) {
    %c0_i32 = arith.constant 0 : i32
    %c0_i32_0 = arith.constant 0 : i32
    %c0_i32_1 = arith.constant 0 : i32
    return %c0_i32, %c0_i32_0 : i32, i32
  }
  func.func @transform_8(%arg0: i32) -> (i32, i32) {
    %c0_i32 = arith.constant 0 : i32
    %c0_i32_0 = arith.constant 0 : i32
    %c0_i32_1 = arith.constant 0 : i32
    return %c0_i32, %c0_i32_0 : i32, i32
  }
  func.func @transform_9(%arg0: i32) -> (i32, i32) {
    %c0_i32 = arith.constant 0 : i32
    %c0_i32_0 = arith.constant 0 : i32
    %c0_i32_1 = arith.constant 0 : i32
    return %c0_i32, %c0_i32_0 : i32, i32
  }
  func.func @transform_10(%arg0: i32) -> (i32, i32) {
    %c0_i32 = arith.constant 0 : i32
    %c0_i32_0 = arith.constant 0 : i32
    %c0_i32_1 = arith.constant 0 : i32
    return %c0_i32, %c0_i32_0 : i32, i32
  }
  func.func @transform_11(%arg0: i32) -> (i32, i32) {
    %c0_i32 = arith.constant 0 : i32
    %c0_i32_0 = arith.constant 0 : i32
    %c0_i32_1 = arith.constant 0 : i32
    return %c0_i32, %c0_i32_0 : i32, i32
  }
  func.func @transform_12(%arg0: i32) -> (i32, i32) {
    %c0_i32 = arith.constant 0 : i32
    %c0_i32_0 = arith.constant 0 : i32
    return %arg0, %c0_i32 : i32, i32
  }
}

</mosaic_0001>

<bundles_post_ra>
// kernel: tpu_custom_call.1
= control target key start
LH: loop header
LB: loop body
LE: loop exit
PB: predicated region body
PF: predicated region fallthrough
CT: control target
= control target key end

     0   :  { %s4551_s21 = smov 0   ;;  %s6193_s0 = inlined_call_operand.vmem [shape: f32[512,32], index: 0, kind: input, shape index: {}]   ;;  %s6194_s1 = inlined_call_operand.vmem [shape: f32[512,1], index: 1, kind: input, shape index: {}]   ;;  %s6195_s2 = inlined_call_operand.vmem [shape: f32[32,42], index: 2, kind: input, shape index: {}]   ;;  %s6196_s3 = inlined_call_operand.vmem [shape: f32[4,42,32], index: 3, kind: input, shape index: {}]   ;;  %s6197_s4 = inlined_call_operand.vmem [shape: f32[1,42], index: 4, kind: input, shape index: {}]   ;;  %s6198_s5 = inlined_call_operand.vmem [shape: f32[32,32], index: 5, kind: input, shape index: {}]   ;;  %s6199_s6 = inlined_call_operand.vmem [shape: f32[1,32], index: 6, kind: input, shape index: {}]   ;;  %s6200_s7 = inlined_call_operand.vmem [shape: f32[1,32], index: 7, kind: input, shape index: {}]   ;;  %s6201_s8 = inlined_call_operand.vmem [shape: f32[32,32], index: 8, kind: input, shape index: {}]   ;;  %s6202_s9 = inlined_call_operand.vmem [shape: f32[1,32], index: 9, kind: input, shape index: {}]   ;;  %s6203_s10 = inlined_call_operand.vmem [shape: f32[32,32], index: 10, kind: input, shape index: {}]   ;;  %s6204_s11 = inlined_call_operand.vmem [shape: f32[1,32], index: 11, kind: input, shape index: {}]   ;;  %s6205_s12 = inlined_call_operand.vmem [shape: f32[512,32], index: 12, kind: output, shape index: {}]  }
   0x1 LB: > { %s3579_s22 = sadd.s32 4294967295, %s4480_s21   ;;  %p3583_p0 = scmp.ge.s32.totalorder %s4480_s21, 1  ;;  %s4480_s21 = sphi %s4551_s21, %s22_s21  }
   0x2   : > { %p374_p1 = scmp.lt.s32.totalorder %s4480_s21, 5 }
   0x4   : > { %p375_p2 = pnand %p3583_p0, %p374_p1 }
   0x6   : > { %378 = sbr.rel (%p375_p2) target bundleno = 2398 (0x95e), region = 68 }
   0xd   : > { %s3584_s23 = sshll.u32 %s3579_s22, 4  ;;  %vm456_vm0 = vcmask 261120   ;;  %vm966_vm1 = vcmask 1043456   ;;  %vm941_vm2 = vcmask 64512   ;;  %s4483_s26 = smov 120   ;;  %vm1083_vm3 = vcmask 343040  }
   0xe   : > { %p422_p3 = scmp.lt.s32.totalorder %s3584_s23, 63  ;;  %s4484_s14 = smov 112   ;;  %vm1661_vm4 = vcmask 1044480  }
   0xf   : > { %s4485_s15 = smov 104  }
  0x10   : > { %s6347_s23 = smov (!%p422_p3, %s3584_s23), 63 }
  0x11   : > { %s4559_s24 = sshll.u32 %s6347_s23, 3 }
  0x12   : > { %s4565_s27 = scalar_lea.vmem %s6193_s0, %s4559_s24  ;;  %s4811_s18 = scalar_lea.vmem %s6194_s1, %s4559_s24 }
  0x13   : > { %v440_v0 = vld [vmem:[%s4565_s27] sm:$0xff]  ;;  %v442_v1 = vld [vmem:[%s4565_s27 + $0x10] sm:$0xff]  ;;  %v441_v2 = vld [vmem:[%s4565_s27 + $0x8] sm:$0xff]  ;;  %s6140_s16 = scalar_lea.vmem %s6205_s12, %s4559_s24 }
  0x14   : > { %v457_v3 = vsel %vm456_vm0, %v440_v0, 0.0  ;;  %v463_v4 = vsel %vm456_vm0, %v442_v1, 0.0  ;;  %v443_v5 = vld [vmem:[%s4565_s27 + $0x18] sm:$0xff]  ;;  %v460_v6 = vsel %vm456_vm0, %v441_v2, 0.0  ;;  %v444_v8 = vld [vmem:[%s4565_s27 + $0x20] sm:$0xff]  ;;  %v445_v9 = vld [vmem:[%s4565_s27 + $0x28] sm:$0xff] }
  0x15   : > { %458 = vadd.xlane.f32.xlu0 %v457_v3  ;;  %464 = vadd.xlane.f32.xlu1 %v463_v4  ;;  %v466_v7 = vsel %vm456_vm0, %v443_v5, 0.0  ;;  %v469_v10 = vsel %vm456_vm0, %v444_v8, 0.0  ;;  %v472_v11 = vsel %vm456_vm0, %v445_v9, 0.0  ;;  %v4580_v12 = vld [vmem:[%s4565_s27 + $0x30] sm:$0xff]  ;;  %v4583_v13 = vld [vmem:[%s4565_s27 + $0x38] sm:$0xff]  ;;  %v4590_v16 = vld [vmem:[%s4565_s27 + $0x40] sm:$0xff] }
  0x16   : > { %v475_v14 = vsel %vm456_vm0, %v4580_v12, 0.0  ;;  %v478_v15 = vsel %vm456_vm0, %v4583_v13, 0.0  ;;  %v4593_v17 = vld [vmem:[%s4565_s27 + $0x48] sm:$0xff]  ;;  %v481_v18 = vsel %vm456_vm0, %v4590_v16, 0.0  ;;  %v4600_v20 = vld [vmem:[%s4565_s27 + $0x50] sm:$0xff]  ;;  %v4603_v21 = vld [vmem:[%s4565_s27 + $0x58] sm:$0xff] }
  0x17   : > { %v484_v19 = vsel %vm456_vm0, %v4593_v17, 0.0  ;;  %v487_v22 = vsel %vm456_vm0, %v4600_v20, 0.0  ;;  %v490_v23 = vsel %vm456_vm0, %v4603_v21, 0.0  ;;  %v4610_v24 = vld [vmem:[%s4565_s27 + $0x60] sm:$0xff]  ;;  %v4613_v25 = vld [vmem:[%s4565_s27 + $0x68] sm:$0xff]  ;;  %v4620_v28 = vld [vmem:[%s4565_s27 + $0x70] sm:$0xff] }
  0x18   : > { %v493_v26 = vsel %vm456_vm0, %v4610_v24, 0.0  ;;  %v496_v27 = vsel %vm456_vm0, %v4613_v25, 0.0  ;;  %v4623_v29 = vld [vmem:[%s4565_s27 + $0x78] sm:$0xff]  ;;  %v499_v30 = vsel %vm456_vm0, %v4620_v28, 0.0 }
  0x19   : > { %461 = vadd.xlane.f32.xlu0 %v460_v6  ;;  %467 = vadd.xlane.f32.xlu1 %v466_v7  ;;  %v502_v31 = vsel %vm456_vm0, %v4623_v29, 0.0 }
  0x1d   : > { %470 = vadd.xlane.f32.xlu0 %v469_v10  ;;  %473 = vadd.xlane.f32.xlu1 %v472_v11 }
  0x21   : > { %476 = vadd.xlane.f32.xlu0 %v475_v14  ;;  %479 = vadd.xlane.f32.xlu1 %v478_v15 }
  0x25   : > { %482 = vadd.xlane.f32.xlu0 %v481_v18  ;;  %485 = vadd.xlane.f32.xlu1 %v484_v19 }
  0x29   : > { %488 = vadd.xlane.f32.xlu0 %v487_v22  ;;  %491 = vadd.xlane.f32.xlu1 %v490_v23 }
  0x2d   : > { %494 = vadd.xlane.f32.xlu0 %v493_v26  ;;  %497 = vadd.xlane.f32.xlu1 %v496_v27 }
  0x31   : > { %500 = vadd.xlane.f32.xlu0 %v499_v30  ;;  %503 = vadd.xlane.f32.xlu1 %v502_v31 }
  0xa2   : > { %v459_v32 = vpop.xlane.xlu0 %458  ;;  %v465_v33 = vpop.xlane.xlu1 %464 }
  0xa3   : > { %v506_v34 = vmul.f32 0.03125, %v459_v32  ;;  %v508_v35 = vmul.f32 0.03125, %v465_v33 }
  0xa5   : > { %v4629_v36 = vsub.f32 %v440_v0, %v506_v34  ;;  %v4631_v37 = vsub.f32 %v442_v1, %v508_v35 }
  0xa6   : > { %v462_v38 = vpop.xlane.xlu0 %461  ;;  %v468_v39 = vpop.xlane.xlu1 %467 }
  0xa7   : > { %v507_v40 = vmul.f32 0.03125, %v462_v38  ;;  %v509_v41 = vmul.f32 0.03125, %v468_v39  ;;  %v538_v42 = vmul.f32 %v4629_v36, %v4629_v36  ;;  %v540_v43 = vmul.f32 %v4631_v37, %v4631_v37 }
  0xa9   : > { %v4637_v44 = vsub.f32 %v441_v2, %v507_v40  ;;  %v4639_v45 = vsub.f32 %v443_v5, %v509_v41  ;;  %v554_v46 = vsel %vm456_vm0, %v538_v42, 0.0  ;;  %v560_v49 = vsel %vm456_vm0, %v540_v43, 0.0 }
  0xaa   : > { %555 = vadd.xlane.f32.xlu0 %v554_v46  ;;  %v471_v47 = vpop.xlane.xlu0 %470  ;;  %v474_v48 = vpop.xlane.xlu1 %473 }
  0xab   : > { %v510_v50 = vmul.f32 0.03125, %v471_v47  ;;  %v511_v51 = vmul.f32 0.03125, %v474_v48  ;;  %v539_v52 = vmul.f32 %v4637_v44, %v4637_v44  ;;  %v541_v53 = vmul.f32 %v4639_v45, %v4639_v45 }
  0xad   : > { %v4647_v54 = vsub.f32 %v444_v8, %v510_v50  ;;  %v4649_v55 = vsub.f32 %v445_v9, %v511_v51  ;;  %v557_v56 = vsel %vm456_vm0, %v539_v52, 0.0  ;;  %v563_v59 = vsel %vm456_vm0, %v541_v53, 0.0  ;;  %v667_v53 = vld [vmem:[%s6198_s5 + $0x8] sm:$0xff] }
  0xae   : > { %561 = vadd.xlane.f32.xlu0 %v560_v49  ;;  %558 = vadd.xlane.f32.xlu1 %v557_v56  ;;  %v477_v57 = vpop.xlane.xlu0 %476  ;;  %v480_v58 = vpop.xlane.xlu1 %479 }
  0xaf   : > { %v512_v60 = vmul.f32 0.03125, %v477_v57  ;;  %v513_v61 = vmul.f32 0.03125, %v480_v58  ;;  %v542_v62 = vmul.f32 %v4647_v54, %v4647_v54  ;;  %v543_v63 = vmul.f32 %v4649_v55, %v4649_v55  ;;  %v668_v57 = vld [vmem:[%s6198_s5 + $0x10] sm:$0xff]  ;;  %v669_v58 = vld [vmem:[%s6198_s5 + $0x18] sm:$0xff] }
  0xb1   : > { %v4658_v0 = vsub.f32 %v4580_v12, %v512_v60  ;;  %v4661_v1 = vsub.f32 %v4583_v13, %v513_v61  ;;  %v566_v2 = vsel %vm456_vm0, %v542_v62, 0.0  ;;  %v569_v5 = vsel %vm456_vm0, %v543_v63, 0.0 }
  0xb2   : > { %564 = vadd.xlane.f32.xlu1 %v563_v59  ;;  %567 = vadd.xlane.f32.xlu0 %v566_v2  ;;  %v483_v3 = vpop.xlane.xlu0 %482  ;;  %v486_v4 = vpop.xlane.xlu1 %485  ;;  %v679_v59 = vpack.c.bf16 %v669_v58, %v668_v57 }
  0xb3   : > { %v514_v6 = vmul.f32 0.03125, %v483_v3  ;;  %v515_v7 = vmul.f32 0.03125, %v486_v4  ;;  %v544_v8 = vmul.f32 %v4658_v0, %v4658_v0  ;;  %v545_v9 = vmul.f32 %v4661_v1, %v4661_v1 }
  0xb5   : > { %v4670_v10 = vsub.f32 %v4590_v16, %v514_v6  ;;  %v4673_v11 = vsub.f32 %v4593_v17, %v515_v7  ;;  %v572_v12 = vsel %vm456_vm0, %v544_v8, 0.0  ;;  %v575_v15 = vsel %vm456_vm0, %v545_v9, 0.0 }
  0xb6   : > { %570 = vadd.xlane.f32.xlu1 %v569_v5  ;;  %573 = vadd.xlane.f32.xlu0 %v572_v12  ;;  %v489_v13 = vpop.xlane.xlu0 %488  ;;  %v492_v14 = vpop.xlane.xlu1 %491 }
  0xb7   : > { %v516_v18 = vmul.f32 0.03125, %v489_v13  ;;  %v517_v19 = vmul.f32 0.03125, %v492_v14  ;;  %v546_v22 = vmul.f32 %v4670_v10, %v4670_v10  ;;  %v547_v16 = vmul.f32 %v4673_v11, %v4673_v11 }
  0xb9   : > { %v4682_v23 = vsub.f32 %v4600_v20, %v516_v18  ;;  %v4685_v17 = vsub.f32 %v4603_v21, %v517_v19  ;;  %v578_v26 = vsel %vm456_vm0, %v546_v22, 0.0  ;;  %v581_v31 = vsel %vm456_vm0, %v547_v16, 0.0 }
  0xba   : > { %576 = vadd.xlane.f32.xlu1 %v575_v15  ;;  %579 = vadd.xlane.f32.xlu0 %v578_v26  ;;  %v495_v27 = vpop.xlane.xlu0 %494  ;;  %v498_v30 = vpop.xlane.xlu1 %497 }
  0xbb   : > { %v518_v32 = vmul.f32 0.03125, %v495_v27  ;;  %v519_v33 = vmul.f32 0.03125, %v498_v30  ;;  %v548_v34 = vmul.f32 %v4682_v23, %v4682_v23  ;;  %v549_v20 = vmul.f32 %v4685_v17, %v4685_v17 }
  0xbd   : > { %v4694_v35 = vsub.f32 %v4610_v24, %v518_v32  ;;  %v4697_v21 = vsub.f32 %v4613_v25, %v519_v33  ;;  %v584_v38 = vsel %vm456_vm0, %v548_v34, 0.0  ;;  %v587_v41 = vsel %vm456_vm0, %v549_v20, 0.0 }
  0xbe   : > { %582 = vadd.xlane.f32.xlu1 %v581_v31  ;;  %585 = vadd.xlane.f32.xlu0 %v584_v38  ;;  %v501_v39 = vpop.xlane.xlu0 %500  ;;  %v504_v40 = vpop.xlane.xlu1 %503 }
  0xbf   : > { %v520_v42 = vmul.f32 0.03125, %v501_v39  ;;  %v521_v43 = vmul.f32 0.03125, %v504_v40  ;;  %v550_v46 = vmul.f32 %v4694_v35, %v4694_v35  ;;  %v551_v24 = vmul.f32 %v4697_v21, %v4697_v21 }
  0xc1   : > { %v4706_v47 = vsub.f32 %v4620_v28, %v520_v42  ;;  %v4709_v25 = vsub.f32 %v4623_v29, %v521_v43  ;;  %v590_v48 = vsel %vm456_vm0, %v550_v46, 0.0  ;;  %v593_v49 = vsel %vm456_vm0, %v551_v24, 0.0  ;;  %v666_v29 = vld [vmem:[%s6198_s5] sm:$0xff] }
  0xc2   : > { %588 = vadd.xlane.f32.xlu1 %v587_v41  ;;  %591 = vadd.xlane.f32.xlu0 %v590_v48  ;;  %v678_v56 = vpack.c.bf16 %v667_v53, %v666_v29 }
  0xc3   : > { %v552_v50 = vmul.f32 %v4706_v47, %v4706_v47  ;;  %v553_v51 = vmul.f32 %v4709_v25, %v4709_v25 }
  0xc4   : > { %3813 = vmatprep.subr.bf16.mxu0 %v678_v56 }
  0xc5   : > { %v596_v52 = vsel %vm456_vm0, %v552_v50, 0.0  ;;  %v599_v28 = vsel %vm456_vm0, %v553_v51, 0.0  ;;  %3814 = vmatpush3.bf16.msra.mxu0 %v678_v56 }
  0xc6   : > { %594 = vadd.xlane.f32.xlu1 %v593_v49  ;;  %597 = vadd.xlane.f32.xlu0 %v596_v52 }
  0xc7   : > { %3815 = vmatprep.subr.bf16.mxu0 %v679_v59 }
  0xc9   : > { %3816 = vmatpush3.bf16.msra.mxu0 %v679_v59 }
  0xca   : > { %600 = vadd.xlane.f32.xlu1 %v599_v28 }
 0x137   : > { %v556_v60 = vpop.xlane.xlu0 %555 }
 0x138   : > { %v602_v61 = vmul.f32 0.03125, %v556_v60 }
 0x13a   : > { %v618_v62 = vadd.f32 1e-05, %v602_v61 }
 0x13b   : > { %v559_v63 = vpop.xlane.xlu1 %558  ;;  %v562_v2 = vpop.xlane.xlu0 %561 }
 0x13c   : > { %v603_v3 = vmul.f32 0.03125, %v559_v63  ;;  %v604_v4 = vmul.f32 0.03125, %v562_v2  ;;  %4106 = vrsqrt.f32 %v618_v62 }
 0x13e   : > { %v619_v5 = vadd.f32 1e-05, %v603_v3  ;;  %v620_v6 = vadd.f32 1e-05, %v604_v4 }
 0x13f   : > { %v565_v7 = vpop.xlane.xlu1 %564  ;;  %v568_v8 = vpop.xlane.xlu0 %567 }
 0x140   : > { %4108 = vrsqrt.f32 %v619_v5  ;;  %v605_v9 = vmul.f32 0.03125, %v565_v7  ;;  %v606_v12 = vmul.f32 0.03125, %v568_v8 }
 0x141   : > { %4110 = vrsqrt.f32 %v620_v6 }
 0x142   : > { %v621_v13 = vadd.f32 1e-05, %v605_v9  ;;  %v622_v14 = vadd.f32 1e-05, %v606_v12 }
 0x143   : > { %v571_v15 = vpop.xlane.xlu1 %570  ;;  %v574_v18 = vpop.xlane.xlu0 %573 }
 0x144   : > { %4112 = vrsqrt.f32 %v621_v13  ;;  %v607_v19 = vmul.f32 0.03125, %v571_v15  ;;  %v608_v22 = vmul.f32 0.03125, %v574_v18 }
 0x145   : > { %4114 = vrsqrt.f32 %v622_v14 }
 0x146   : > { %v623_v16 = vadd.f32 1e-05, %v607_v19  ;;  %v624_v26 = vadd.f32 1e-05, %v608_v22  ;;  %v4107_v31 = vpop.eup %4106 }
 0x147   : > { %v577_v27 = vpop.xlane.xlu1 %576  ;;  %v580_v30 = vpop.xlane.xlu0 %579  ;;  %v650_v41 = vmul.f32 %v4107_v31, %v4629_v36 }
 0x148   : > { %4116 = vrsqrt.f32 %v623_v16  ;;  %v609_v32 = vmul.f32 0.03125, %v577_v27  ;;  %v610_v33 = vmul.f32 0.03125, %v580_v30 }
 0x149   : > { %4118 = vrsqrt.f32 %v624_v26 }
 0x14a   : > { %v4109_v34 = vpop.eup %4108  ;;  %v625_v20 = vadd.f32 1e-05, %v609_v32  ;;  %v626_v38 = vadd.f32 1e-05, %v610_v33 }
 0x14b   : > { %v583_v39 = vpop.xlane.xlu1 %582  ;;  %v586_v40 = vpop.xlane.xlu0 %585  ;;  %v651_v42 = vmul.f32 %v4109_v34, %v4637_v44 }
 0x14c   : > { %v4111_v43 = vpop.eup %4110  ;;  %4120 = vrsqrt.f32 %v625_v20  ;;  %v611_v46 = vmul.f32 0.03125, %v583_v39  ;;  %v612_v24 = vmul.f32 0.03125, %v586_v40 }
 0x14d   : > { %v670_v48 = vpack.c.bf16 %v651_v42, %v650_v41  ;;  %4122 = vrsqrt.f32 %v626_v38  ;;  %v652_v29 = vmul.f32 %v4111_v43, %v4631_v37  ;;  %v3590_v41 = vld [vmem:[%s6199_s6] ss:$0 sm:$0xff] }
 0x14e   : > { %v4113_v49 = vpop.eup %4112  ;;  %v627_v50 = vadd.f32 1e-05, %v611_v46  ;;  %v628_v51 = vadd.f32 1e-05, %v612_v24 }
 0x14f   : > { %v589_v52 = vpop.xlane.xlu1 %588  ;;  %3817 = vmatprep.mubr.msk.bf16.mxu0 %vm456_vm0, %v670_v48  ;;  %v592_v28 = vpop.xlane.xlu0 %591  ;;  %v653_v53 = vmul.f32 %v4113_v49, %v4639_v45 }
 0x150   : > { %v4115_v36 = vpop.eup %4114  ;;  %4124 = vrsqrt.f32 %v627_v50  ;;  %v613_v44 = vmul.f32 0.03125, %v589_v52  ;;  %v614_v56 = vmul.f32 0.03125, %v592_v28 }
 0x151   : > { %v671_v57 = vpack.c.bf16 %v653_v53, %v652_v29  ;;  %4126 = vrsqrt.f32 %v628_v51  ;;  %v654_v63 = vmul.f32 %v4115_v36, %v4647_v54 }
 0x152   : > { %v4117_v58 = vpop.eup %4116  ;;  %v629_v59 = vadd.f32 1e-05, %v613_v44  ;;  %v630_v60 = vadd.f32 1e-05, %v614_v56 }
 0x153   : > { %v595_v61 = vpop.xlane.xlu1 %594  ;;  %3818 = vmatmul.mubr.msk.bf16.vlgmr.msra.gmra.mrb[0].mxu0 %vm456_vm0, %v671_v57  ;;  %v598_v62 = vpop.xlane.xlu0 %597  ;;  %v655_v2 = vmul.f32 %v4117_v58, %v4649_v55 }
 0x154   : > { %v4119_v37 = vpop.eup %4118  ;;  %4128 = vrsqrt.f32 %v629_v59  ;;  %v615_v45 = vmul.f32 0.03125, %v595_v61  ;;  %v616_v3 = vmul.f32 0.03125, %v598_v62 }
 0x155   : > { %v672_v4 = vpack.c.bf16 %v655_v2, %v654_v63  ;;  %4130 = vrsqrt.f32 %v630_v60  ;;  %v656_v9 = vmul.f32 %v4119_v37, %v4658_v0 }
 0x156   : > { %v4121_v5 = vpop.eup %4120  ;;  %v631_v6 = vadd.f32 1e-05, %v615_v45  ;;  %v632_v7 = vadd.f32 1e-05, %v616_v3 }
 0x157   : > { %v601_v8 = vpop.xlane.xlu1 %600  ;;  %3821 = vmatprep.mubr.msk.bf16.mxu0 %vm456_vm0, %v672_v4  ;;  %v657_v12 = vmul.f32 %v4121_v5, %v4661_v1  ;;  %v4123_v13 = vpop.eup %4122 }
 0x158   : > { %4132 = vrsqrt.f32 %v631_v6  ;;  %v617_v54 = vmul.f32 0.03125, %v601_v8  ;;  %v658_v18 = vmul.f32 %v4123_v13, %v4670_v10  ;;  %v819_v13 = vld [vmem:[%s6195_s2 + $0x18] sm:$0xff] }
 0x159   : > { %v673_v55 = vpack.c.bf16 %v657_v12, %v656_v9  ;;  %4134 = vrsqrt.f32 %v632_v7  ;;  %v818_v12 = vld [vmem:[%s6195_s2 + $0x10] sm:$0xff] }
 0x15a   : > { %v4125_v14 = vpop.eup %4124  ;;  %v633_v15 = vadd.f32 1e-05, %v617_v54 }
 0x15b   : > { %3822 = vmatmul.mubr.msk.bf16.gmra.mrb[4].mxu0 %vm456_vm0, %v673_v55  ;;  %v659_v19 = vmul.f32 %v4125_v14, %v4673_v11  ;;  %v4127_v22 = vpop.eup %4126  ;;  %v4795_v55 = vpack.c.bf16 %v819_v13, %v818_v12 }
 0x15c   : > { %4136 = vrsqrt.f32 %v633_v15  ;;  %v660_v0 = vmul.f32 %v4127_v22, %v4682_v23 }
 0x15d   : > { %v674_v16 = vpack.c.bf16 %v659_v19, %v658_v18 }
 0x15e   : > { %v4129_v26 = vpop.eup %4128 }
 0x15f   : > { %3825 = vmatprep.mubr.msk.bf16.mxu0 %vm456_vm0, %v674_v16  ;;  %v661_v1 = vmul.f32 %v4129_v26, %v4685_v17  ;;  %v4131_v27 = vpop.eup %4130  ;;  %v816_v17 = vld [vmem:[%s6195_s2] sm:$0xff] }
 0x160   : > { %v662_v32 = vmul.f32 %v4131_v27, %v4694_v35  ;;  %v817_v35 = vld [vmem:[%s6195_s2 + $0x8] sm:$0xff]  ;;  %v824_v27 = vld [vmem:[%s4811_s18 + $0x10] sm:$0xff] }
 0x161   : > { %v675_v30 = vpack.c.bf16 %v661_v1, %v660_v0  ;;  %v823_v0 = vld [vmem:[%s4811_s18 + $0x8] sm:$0xff]  ;;  %v822_v1 = vld [vmem:[%s4811_s18] sm:$0xff] }
 0x162   : > { %v4133_v31 = vpop.eup %4132 }
 0x163   : > { %3826 = vmatmul.mubr.msk.bf16.gmra.mrb[8].mxu0 %vm456_vm0, %v675_v30  ;;  %v663_v10 = vmul.f32 %v4133_v31, %v4697_v21  ;;  %v4135_v11 = vpop.eup %4134  ;;  %v820_v21 = vpack.c.bf16 %v817_v35, %v816_v17  ;;  %v825_v30 = vld [vmem:[%s4811_s18 + $0x18] sm:$0xff]  ;;  %v826_v31 = vld [vmem:[%s4811_s18 + $0x20] sm:$0xff]  ;;  %v835_v17 = vld [vmem:[%s4811_s18 + $0x68] sm:$0xff] }
 0x164   : > { %v664_v20 = vmul.f32 %v4135_v11, %v4706_v47  ;;  %v4482_v47 = vmov 0   ;;  %v829_v11 = vld [vmem:[%s4811_s18 + $0x38] sm:$0xff]  ;;  %v836_v35 = vld [vmem:[%s4811_s18 + $0x70] sm:$0xff] }
 0x165   : > { %v676_v33 = vpack.c.bf16 %v663_v10, %v662_v32  ;;  %4083 = vmatprep.subr.msk.bf16.mxu0 %vm966_vm1, %v820_v21  ;;  %v968_v39 = vsel %vm966_vm1, %v820_v21, 0  ;;  %4084 = vmatprep.subr.msk.bf16.mxu1 %vm966_vm1, %v820_v21  ;;  %v827_v32 = vld [vmem:[%s4811_s18 + $0x28] sm:$0xff]  ;;  %v828_v10 = vld [vmem:[%s4811_s18 + $0x30] sm:$0xff] }
 0x166   : > { %v4137_v34 = vpop.eup %4136  ;;  %3834 = vmatpush3.bf16.msra.mxu0 %v968_v39  ;;  %4034 = vmatpush3.bf16.msra.mxu1 %v968_v39 }
 0x167   : > { %3829 = vmatprep.mubr.msk.bf16.mxu0 %vm456_vm0, %v676_v33  ;;  %v665_v23 = vmul.f32 %v4137_v34, %v4709_v25  ;;  %4105 = vset.pattern.permute.xlu1 %v4482_v47  ;;  %v1302_v25 = vrot.slane %v820_v21, 4  ;;  %v830_v33 = vld [vmem:[%s4811_s18 + $0x40] sm:$0xff]  ;;  %v831_v34 = vld [vmem:[%s4811_s18 + $0x48] sm:$0xff]  ;;  %v837_v21 = vld [vmem:[%s4811_s18 + $0x78] sm:$0xff] }
 0x168   : > { %4104 = vset.pattern.permute.xlu0 %v4482_v47  ;;  %v1927_v47 = vsel %vm966_vm1, %v4795_v55, 0 }
 0x169   : > { %v677_v38 = vpack.c.bf16 %v665_v23, %v664_v20  ;;  %4085 = vmatprep.subr.msk.bf16.mxu1 %vm966_vm1, %v1302_v25  ;;  %v1328_v61 = vsel %vm966_vm1, %v1302_v25, 0  ;;  %v832_v20 = vld [vmem:[%s4811_s18 + $0x50] sm:$0xff]  ;;  %v833_v23 = vld [vmem:[%s4811_s18 + $0x58] sm:$0xff]  ;;  %v2393_v25 = vrot.slane %v4795_v55, 4 }
 0x16b   : > { %3830 = vmatmul.mubr.msk.bf16.gmra.mrb[12].mxu0 %vm456_vm0, %v677_v38  ;;  %v834_v38 = vld [vmem:[%s4811_s18 + $0x60] sm:$0xff] }
 0x226   : > { %v3819_v40 = vpop.f32.mrb[0].mxu0 }
 0x227   : > { %v745_v42 = vpop.f32.mrb[1].mxu0  ;;  %v754_v46 = vadd.f32 %v3819_v40, %v3590_v41 }
 0x228   : > { %v3820_v43 = vpop.f32.mrb[2].mxu0  ;;  %v746_v49 = vadd.f32 %v3590_v41, %v745_v42 }
 0x229   : > { %v757_v24 = vadd.f32 %v3820_v43, %v3590_v41  ;;  %v748_v48 = vpop.f32.mrb[3].mxu0 }
 0x22a   : > { %v749_v50 = vadd.f32 %v3590_v41, %v748_v48 }
 0x22b   : > { %v4768_v51 = vpack.c.bf16 %v757_v24, %v754_v46 }
 0x22c   : > { %v4770_v52 = vpack.c.bf16 %v749_v50, %v746_v49 }
 0x22d   : > { %1287 = vrot.lane.b32.xlu1 %v4768_v51, %s4483_s26 }
 0x22e   : > { %1285 = vrot.lane.b32.xlu0 %v4770_v52, %s4483_s26  ;;  %v3823_v28 = vpop.f32.mrb[4].mxu0  ;;  %3835 = vmatprep.mubr.msk.bf16.mxu0 %vm941_vm2, %v4770_v52 }
 0x22f   : > { %v761_v29 = vpop.f32.mrb[5].mxu0  ;;  %3836 = vmatmul.mubr.msk.bf16.vlgmr.msra.gmra.mrb[16].mxu0 %vm941_vm2, %v4768_v51  ;;  %v770_v36 = vadd.f32 %v3823_v28, %v3590_v41 }
 0x230   : > { %v3824_v53 = vpop.f32.mrb[6].mxu0  ;;  %v762_v57 = vadd.f32 %v3590_v41, %v761_v29 }
 0x231   : > { %v773_v44 = vadd.f32 %v3824_v53, %v3590_v41  ;;  %v764_v56 = vpop.f32.mrb[7].mxu0 }
 0x232   : > { %v765_v58 = vadd.f32 %v3590_v41, %v764_v56 }
 0x233   : > { %v811_v59 = vpack.c.bf16 %v773_v44, %v770_v36 }
 0x234   : > { %v810_v60 = vpack.c.bf16 %v765_v58, %v762_v57 }
 0x236   : > { %1289 = vrot.lane.b32.xlu1 %v810_v60, %s4483_s26  ;;  %v3827_v62 = vpop.f32.mrb[8].mxu0  ;;  %3839 = vmatprep.mubr.msk.bf16.mxu1 %vm941_vm2, %v810_v60 }
 0x237   : > { %v777_v63 = vpop.f32.mrb[9].mxu0  ;;  %3840 = vmatmul.mubr.msk.bf16.vlgmr.msra.gmra.mrb[0].mxu1 %vm941_vm2, %v811_v59  ;;  %v786_v37 = vadd.f32 %v3827_v62, %v3590_v41 }
 0x238   : > { %v3828_v2 = vpop.f32.mrb[10].mxu0  ;;  %3852 = vmatpush3.bf16.msra.mxu1 %v1328_v61  ;;  %v778_v4 = vadd.f32 %v3590_v41, %v777_v63 }
 0x239   : > { %v789_v45 = vadd.f32 %v3828_v2, %v3590_v41  ;;  %v780_v3 = vpop.f32.mrb[11].mxu0  ;;  %4088 = vmatprep.subr.msk.bf16.mxu1 %vm966_vm1, %v4795_v55 }
 0x23a   : > { %v781_v5 = vadd.f32 %v3590_v41, %v780_v3  ;;  %1291 = vrot.lane.b32.xlu1 %v811_v59, %s4483_s26 }
 0x23b   : > { %v813_v6 = vpack.c.bf16 %v789_v45, %v786_v37 }
 0x23c   : > { %v812_v7 = vpack.c.bf16 %v781_v5, %v778_v4 }
 0x23e   : > { %1295 = vrot.lane.b32.xlu1 %v813_v6, %s4483_s26  ;;  %1293 = vrot.lane.b32.xlu0 %v812_v7, %s4483_s26  ;;  %v3831_v8 = vpop.f32.mrb[12].mxu0 }
 0x23f   : > { %3843 = vmatprep.mubr.msk.bf16.mxu1 %vm941_vm2, %v812_v7  ;;  %v793_v9 = vpop.f32.mrb[13].mxu0  ;;  %v802_v14 = vadd.f32 %v3831_v8, %v3590_v41 }
 0x240   : > { %3844 = vmatmul.mubr.msk.bf16.gmra.mrb[4].mxu1 %vm941_vm2, %v813_v6  ;;  %v3832_v54 = vpop.f32.mrb[14].mxu0  ;;  %v794_v19 = vadd.f32 %v3590_v41, %v793_v9 }
 0x241   : > { %v805_v15 = vadd.f32 %v3832_v54, %v3590_v41  ;;  %v796_v18 = vpop.f32.mrb[15].mxu0 }
 0x242   : > { %v797_v22 = vadd.f32 %v3590_v41, %v796_v18 }
 0x243   : > { %v815_v16 = vpack.c.bf16 %v805_v15, %v802_v14 }
 0x244   : > { %v814_v26 = vpack.c.bf16 %v797_v22, %v794_v19 }
 0x245   : > { %1299 = vrot.lane.b32.xlu1 %v815_v16, %s4483_s26 }
 0x246   : > { %1297 = vrot.lane.b32.xlu0 %v814_v26, %s4483_s26  ;;  %3847 = vmatprep.mubr.msk.bf16.mxu1 %vm941_vm2, %v814_v26 }
 0x248   : > { %3848 = vmatmul.mubr.msk.bf16.gmra.mrb[8].mxu1 %vm941_vm2, %v815_v16 }
 0x249   : > { %1888 = vrot.lane.b32.xlu1 %v4768_v51, %s4484_s14 }
 0x24a   : > { %1886 = vrot.lane.b32.xlu0 %v4770_v52, %s4484_s14 }
 0x24d   : > { %1892 = vrot.lane.b32.xlu1 %v811_v59, %s4484_s14 }
 0x24e   : > { %1890 = vrot.lane.b32.xlu0 %v810_v60, %s4484_s14 }
 0x251   : > { %1896 = vrot.lane.b32.xlu1 %v813_v6, %s4484_s14 }
 0x252   : > { %1894 = vrot.lane.b32.xlu0 %v812_v7, %s4484_s14 }
 0x255   : > { %1900 = vrot.lane.b32.xlu1 %v815_v16, %s4484_s14 }
 0x256   : > { %1898 = vrot.lane.b32.xlu0 %v814_v26, %s4484_s14 }
 0x259   : > { %2378 = vrot.lane.b32.xlu1 %v4768_v51, %s4485_s15 }
 0x25a   : > { %2376 = vrot.lane.b32.xlu0 %v4770_v52, %s4485_s15  ;;  %v2419_v52 = vsel %vm966_vm1, %v2393_v25, 0 }
 0x25d   : > { %2382 = vrot.lane.b32.xlu1 %v811_v59, %s4485_s15 }
 0x25e   : > { %2380 = vrot.lane.b32.xlu0 %v810_v60, %s4485_s15 }
 0x261   : > { %2386 = vrot.lane.b32.xlu1 %v813_v6, %s4485_s15  ;;  %v4860_v6 = vld [vmem:[%s6197_s4] ss:$0 sm:$0xff] }
 0x262   : > { %2384 = vrot.lane.b32.xlu0 %v812_v7, %s4485_s15 }
 0x265   : > { %2390 = vrot.lane.b32.xlu1 %v815_v16, %s4485_s15 }
 0x266   : > { %2388 = vrot.lane.b32.xlu0 %v814_v26, %s4485_s15 }
 0x269   : > { %846 = vperm.xlu1 %4105, %v823_v0  }
 0x26a   : > { %841 = vperm.xlu0 %4104, %v822_v1  }
 0x26d   : > { %851 = vperm.xlu1 %4105, %v824_v27  }
 0x26e   : > { %856 = vperm.xlu0 %4104, %v825_v30  }
 0x271   : > { %861 = vperm.xlu1 %4105, %v826_v31  }
 0x272   : > { %866 = vperm.xlu0 %4104, %v827_v32  }
 0x275   : > { %871 = vperm.xlu1 %4105, %v828_v10  }
 0x276   : > { %876 = vperm.xlu0 %4104, %v829_v11  }
 0x279   : > { %881 = vperm.xlu1 %4105, %v830_v33  }
 0x27a   : > { %886 = vperm.xlu0 %4104, %v831_v34  }
 0x27d   : > { %891 = vperm.xlu1 %4105, %v832_v20  }
 0x27e   : > { %896 = vperm.xlu0 %4104, %v833_v23  }
 0x281   : > { %901 = vperm.xlu1 %4105, %v834_v38  }
 0x282   : > { %906 = vperm.xlu0 %4104, %v835_v17  }
 0x285   : > { %911 = vperm.xlu1 %4105, %v836_v35  }
 0x286   : > { %916 = vperm.xlu0 %4104, %v837_v21  }
 0x29f   : > { %v1288_v40 = vpop.permute.xlu1 %1287 }
 0x2a0   : > { %v1286_v39 = vpop.permute.xlu0 %1285 }
 0x2a1   : > { %3853 = vmatprep.mubr.msk.bf16.mxu1 %vm941_vm2, %v1286_v39 }
 0x2a2   : > { %3854 = vmatmul.mubr.msk.bf16.vlgmr.msra.gmra.mrb[12].mxu1 %vm941_vm2, %v1288_v40 }
 0x2a3   : > { %3914 = vmatpush3.bf16.msra.mxu1 %v1927_v47 }
 0x2a4   : > { %4090 = vmatprep.subr.msk.bf16.mxu1 %vm966_vm1, %v2393_v25 }
 0x2a8   : > { %v1290_v41 = vpop.permute.xlu1 %1289 }
 0x2a9   : > { %3857 = vmatprep.mubr.msk.bf16.mxu1 %vm941_vm2, %v1290_v41 }
 0x2ac   : > { %v1292_v42 = vpop.permute.xlu1 %1291 }
 0x2ad   : > { %3858 = vmatmul.mubr.msk.bf16.gmra.mrb[16].mxu1 %vm941_vm2, %v1292_v42 }
 0x2b0   : > { %v1294_v43 = vpop.permute.xlu0 %1293  ;;  %v1296_v46 = vpop.permute.xlu1 %1295 }
 0x2b1   : > { %3861 = vmatprep.mubr.msk.bf16.mxu1 %vm941_vm2, %v1294_v43 }
 0x2b5   : > { %3862 = vmatmul.mubr.msk.bf16.gmra.mrb[20].mxu1 %vm941_vm2, %v1296_v46 }
 0x2b7   : > { %v1300_v24 = vpop.permute.xlu1 %1299 }
 0x2b8   : > { %v1298_v48 = vpop.permute.xlu0 %1297 }
 0x2b9   : > { %3865 = vmatprep.mubr.msk.bf16.mxu1 %vm941_vm2, %v1298_v48 }
 0x2bb   : > { %v1889_v50 = vpop.permute.xlu1 %1888 }
 0x2bc   : > { %v1887_v49 = vpop.permute.xlu0 %1886 }
 0x2bd   : > { %3866 = vmatmul.mubr.msk.bf16.gmra.mrb[24].mxu1 %vm941_vm2, %v1300_v24 }
 0x2be   : > { %3915 = vmatprep.mubr.msk.bf16.mxu1 %vm941_vm2, %v1887_v49 }
 0x2bf   : > { %v1893_v51 = vpop.permute.xlu1 %1892 }
 0x2c0   : > { %v1891_v28 = vpop.permute.xlu0 %1890 }
 0x2c3   : > { %v1897_v29 = vpop.permute.xlu1 %1896 }
 0x2c4   : > { %v1895_v53 = vpop.permute.xlu0 %1894 }
 0x2c5   : > { %3916 = vmatmul.mubr.msk.bf16.vlgmr.msra.gmra.mrb[28].mxu1 %vm941_vm2, %v1889_v50 }
 0x2c6   : > { %3919 = vmatprep.mubr.msk.bf16.mxu1 %vm941_vm2, %v1891_v28  ;;  %3954 = vmatpush3.bf16.msra.mxu1 %v2419_v52 }
 0x2c7   : > { %v1901_v36 = vpop.permute.xlu1 %1900 }
 0x2c8   : > { %v1899_v44 = vpop.permute.xlu0 %1898 }
 0x2cb   : > { %v2379_v56 = vpop.permute.xlu1 %2378 }
 0x2cc   : > { %v2377_v57 = vpop.permute.xlu0 %2376 }
 0x2cd   : > { %3920 = vmatmul.mubr.msk.bf16.gmra.mrb[32].mxu1 %vm941_vm2, %v1893_v51 }
 0x2ce   : > { %3923 = vmatprep.mubr.msk.bf16.mxu1 %vm941_vm2, %v1895_v53 }
 0x2cf   : > { %v2383_v58 = vpop.permute.xlu1 %2382 }
 0x2d0   : > { %v2381_v59 = vpop.permute.xlu0 %2380 }
 0x2d3   : > { %v2387_v60 = vpop.permute.xlu1 %2386 }
 0x2d4   : > { %v2385_v61 = vpop.permute.xlu0 %2384 }
 0x2d5   : > { %3924 = vmatmul.mubr.msk.bf16.gmra.mrb[36].mxu1 %vm941_vm2, %v1897_v29 }
 0x2d6   : > { %3927 = vmatprep.mubr.msk.bf16.mxu1 %vm941_vm2, %v1899_v44 }
 0x2d7   : > { %v2391_v62 = vpop.permute.xlu1 %2390 }
 0x2d8   : > { %v2389_v63 = vpop.permute.xlu0 %2388 }
 0x2dd   : > { %3928 = vmatmul.mubr.msk.bf16.gmra.mrb[40].mxu1 %vm941_vm2, %v1901_v36 }
 0x2de   : > { %3955 = vmatprep.mubr.msk.bf16.mxu1 %vm941_vm2, %v2377_v57 }
 0x2e5   : > { %3956 = vmatmul.mubr.msk.bf16.vlgmr.msra.gmra.mrb[44].mxu1 %vm941_vm2, %v2379_v56 }
 0x2e6   : > { %3959 = vmatprep.mubr.msk.bf16.mxu1 %vm941_vm2, %v2381_v59 }
 0x2e8   : > { %v847_v2 = vpop.permute.xlu1 %846 }
 0x2e9   : > { %v842_v37 = vpop.permute.xlu0 %841  ;;  %v4873_v55 = vmul.f32 %v4860_v6, %v847_v2 }
 0x2ea   : > { %v4867_v12 = vmul.f32 %v4860_v6, %v842_v37 }
 0x2ec   : > { %v852_v45 = vpop.permute.xlu1 %851 }
 0x2ed   : > { %3960 = vmatmul.mubr.msk.bf16.gmra.mrb[48].mxu1 %vm941_vm2, %v2383_v58  ;;  %v857_v3 = vpop.permute.xlu0 %856  ;;  %v4864_v8 = vmul.f32 %v4860_v6, %v852_v45 }
 0x2ee   : > { %3963 = vmatprep.mubr.msk.bf16.mxu1 %vm941_vm2, %v2385_v61  ;;  %v4870_v13 = vmul.f32 %v4860_v6, %v857_v3 }
 0x2f0   : > { %v862_v4 = vpop.permute.xlu1 %861 }
 0x2f1   : > { %v867_v5 = vpop.permute.xlu0 %866  ;;  %v4895_v32 = vmul.f32 %v4860_v6, %v862_v4 }
 0x2f2   : > { %v4903_v20 = vmul.f32 %v4860_v6, %v867_v5 }
 0x2f4   : > { %v872_v7 = vpop.permute.xlu1 %871 }
 0x2f5   : > { %3964 = vmatmul.mubr.msk.bf16.gmra.mrb[52].mxu1 %vm941_vm2, %v2387_v60  ;;  %v877_v9 = vpop.permute.xlu0 %876  ;;  %v4890_v30 = vmul.f32 %v4860_v6, %v872_v7 }
 0x2f6   : > { %3967 = vmatprep.mubr.msk.bf16.mxu1 %vm941_vm2, %v2389_v63  ;;  %v4900_v11 = vmul.f32 %v4860_v6, %v877_v9 }
 0x2f8   : > { %v882_v18 = vpop.permute.xlu1 %881 }
 0x2f9   : > { %v887_v1 = vpop.permute.xlu0 %886  ;;  %v4929_v49 = vmul.f32 %v4860_v6, %v882_v18 }
 0x2fa   : > { %v4937_v28 = vmul.f32 %v4860_v6, %v887_v1 }
 0x2fc   : > { %v892_v33 = vpop.permute.xlu1 %891 }
 0x2fd   : > { %3968 = vmatmul.mubr.msk.bf16.gmra.mrb[56].mxu1 %vm941_vm2, %v2391_v62  ;;  %v897_v35 = vpop.permute.xlu0 %896  ;;  %v4924_v46 = vmul.f32 %v4860_v6, %v892_v33 }
 0x2fe   : > { %v4932_v50 = vmul.f32 %v4860_v6, %v897_v35 }
 0x300   : > { %v902_v43 = vpop.permute.xlu1 %901 }
 0x301   : > { %v907_v48 = vpop.permute.xlu0 %906  ;;  %v4959_v2 = vmul.f32 %v4860_v6, %v902_v43 }
 0x302   : > { %v3837_v54 = vpop.f32.mrb[16].mxu0  ;;  %v4967_v4 = vmul.f32 %v4860_v6, %v907_v48 }
 0x303   : > { %v4876_v14 = vmul.f32 %v3837_v54, %v4864_v8  ;;  %v1004_v15 = vpop.f32.mrb[17].mxu0 }
 0x304   : > { %v3838_v19 = vpop.f32.mrb[18].mxu0  ;;  %v4879_v22 = vmul.f32 %v1004_v15, %v4867_v12  ;;  %v912_v44 = vpop.permute.xlu1 %911 }
 0x305   : > { %v4882_v16 = vmul.f32 %v3838_v19, %v4870_v13  ;;  %v1007_v26 = vpop.f32.mrb[19].mxu0  ;;  %v1090_v0 = vsel %vm1083_vm3, %v4876_v14, -inf  ;;  %v917_v60 = vpop.permute.xlu0 %916  ;;  %v4954_v62 = vmul.f32 %v4860_v6, %v912_v44 }
 0x306   : > { %1091 = vmax.xlane.f32.xlu1 %v1090_v0  ;;  %v4887_v27 = vmul.f32 %v1007_v26, %v4873_v55  ;;  %v1084_v10 = vsel %vm1083_vm3, %v4879_v22, -inf  ;;  %v4964_v45 = vmul.f32 %v4860_v6, %v917_v60 }
 0x307   : > { %v1093_v31 = vsel %vm1083_vm3, %v4882_v16, -inf }
 0x308   : > { %1094 = vmax.xlane.f32.xlu0 %v1093_v31  ;;  %v1087_v17 = vsel %vm1083_vm3, %v4887_v27, -inf }
 0x30a   : > { %v3841_v34 = vpop.f32.mrb[0].mxu1  ;;  %1085 = vmax.xlane.f32.xlu1 %v1084_v10 }
 0x30b   : > { %v4906_v23 = vmul.f32 %v3841_v34, %v4890_v30  ;;  %v1020_v38 = vpop.f32.mrb[1].mxu1 }
 0x30c   : > { %v3842_v21 = vpop.f32.mrb[2].mxu1  ;;  %1088 = vmax.xlane.f32.xlu0 %v1087_v17  ;;  %v4911_v39 = vmul.f32 %v1020_v38, %v4895_v32 }
 0x30d   : > { %v4914_v47 = vmul.f32 %v3842_v21, %v4900_v11  ;;  %v1023_v25 = vpop.f32.mrb[3].mxu1  ;;  %v1102_v40 = vsel %vm1083_vm3, %v4906_v23, -inf }
 0x30e   : > { %1103 = vmax.xlane.f32.xlu1 %v1102_v40  ;;  %v4919_v41 = vmul.f32 %v1023_v25, %v4903_v20  ;;  %v1096_v24 = vsel %vm1083_vm3, %v4911_v39, -inf }
 0x30f   : > { %v1105_v42 = vsel %vm1083_vm3, %v4914_v47, -inf }
 0x310   : > { %1106 = vmax.xlane.f32.xlu0 %v1105_v42  ;;  %v1099_v52 = vsel %vm1083_vm3, %v4919_v41, -inf }
 0x312   : > { %1097 = vmax.xlane.f32.xlu1 %v1096_v24 }
 0x313   : > { %v3845_v51 = vpop.f32.mrb[4].mxu1 }
 0x314   : > { %v4940_v29 = vmul.f32 %v3845_v51, %v4924_v46  ;;  %v1036_v53 = vpop.f32.mrb[5].mxu1  ;;  %1100 = vmax.xlane.f32.xlu0 %v1099_v52 }
 0x315   : > { %v3846_v36 = vpop.f32.mrb[6].mxu1  ;;  %v4943_v56 = vmul.f32 %v1036_v53, %v4929_v49 }
 0x316   : > { %v4946_v57 = vmul.f32 %v3846_v36, %v4932_v50  ;;  %v1039_v58 = vpop.f32.mrb[7].mxu1  ;;  %v1114_v59 = vsel %vm1083_vm3, %v4940_v29, -inf }
 0x317   : > { %1115 = vmax.xlane.f32.xlu1 %v1114_v59  ;;  %v4951_v61 = vmul.f32 %v1039_v58, %v4937_v28  ;;  %v1108_v37 = vsel %vm1083_vm3, %v4943_v56, -inf }
 0x318   : > { %v1117_v63 = vsel %vm1083_vm3, %v4946_v57, -inf }
 0x319   : > { %1118 = vmax.xlane.f32.xlu0 %v1117_v63  ;;  %v1111_v9 = vsel %vm1083_vm3, %v4951_v61, -inf }
 0x31b   : > { %v3849_v3 = vpop.f32.mrb[8].mxu1  ;;  %1109 = vmax.xlane.f32.xlu1 %v1108_v37 }
 0x31c   : > { %v4970_v5 = vmul.f32 %v3849_v3, %v4954_v62  ;;  %v1052_v7 = vpop.f32.mrb[9].mxu1 }
 0x31d   : > { %v3850_v54 = vpop.f32.mrb[10].mxu1  ;;  %1112 = vmax.xlane.f32.xlu0 %v1111_v9  ;;  %v4975_v15 = vmul.f32 %v1052_v7, %v4959_v2 }
 0x31e   : > { %v4978_v18 = vmul.f32 %v3850_v54, %v4964_v45  ;;  %v1055_v19 = vpop.f32.mrb[11].mxu1  ;;  %v1126_v6 = vsel %vm1083_vm3, %v4970_v5, -inf }
 0x31f   : > { %1127 = vmax.xlane.f32.xlu1 %v1126_v6  ;;  %v4983_v26 = vmul.f32 %v1055_v19, %v4967_v4  ;;  %v1120_v1 = vsel %vm1083_vm3, %v4975_v15, -inf }
 0x320   : > { %6252 = vst [vmem:[#allocation2_spill] sm:$0xff] %v4978_v18  ;;  %v1129_v0 = vsel %vm1083_vm3, %v4978_v18, -inf }
 0x321   : > { %1130 = vmax.xlane.f32.xlu0 %v1129_v0  ;;  %v1123_v31 = vsel %vm1083_vm3, %v4983_v26, -inf }
 0x323   : > { %1121 = vmax.xlane.f32.xlu1 %v1120_v1 }
 0x325   : > { %1124 = vmax.xlane.f32.xlu0 %v1123_v31 }
 0x375   : > { %v3855_v10 = vpop.f32.mrb[12].mxu1 }
 0x376   : > { %v4992_v33 = vmul.f32 %v3855_v10, %v4864_v8  ;;  %v1364_v34 = vpop.f32.mrb[13].mxu1 }
 0x377   : > { %v4995_v38 = vmul.f32 %v1364_v34, %v4867_v12  ;;  %v3856_v17 = vpop.f32.mrb[14].mxu1 }
 0x378   : > { %v4998_v35 = vmul.f32 %v3856_v17, %v4870_v13  ;;  %v1367_v21 = vpop.f32.mrb[15].mxu1  ;;  %v1449_v25 = vsel %vm1083_vm3, %v4992_v33, -inf }
 0x379   : > { %1450 = vmax.xlane.f32.xlu0 %v1449_v25  ;;  %v1443_v40 = vsel %vm1083_vm3, %v4995_v38, -inf  ;;  %v5005_v42 = vmul.f32 %v1367_v21, %v4873_v55 }
 0x37a   : > { %1444 = vmax.xlane.f32.xlu1 %v1443_v40  ;;  %v1452_v43 = vsel %vm1083_vm3, %v4998_v35, -inf }
 0x37b   : > { %v1446_v48 = vsel %vm1083_vm3, %v5005_v42, -inf }
 0x37d   : > { %1453 = vmax.xlane.f32.xlu0 %v1452_v43 }
 0x380   : > { %v3859_v24 = vpop.f32.mrb[16].mxu1 }
 0x381   : > { %v5012_v51 = vmul.f32 %v3859_v24, %v4890_v30  ;;  %v1380_v52 = vpop.f32.mrb[17].mxu1  ;;  %1447 = vmax.xlane.f32.xlu0 %v1446_v48 }
 0x382   : > { %v3860_v53 = vpop.f32.mrb[18].mxu1  ;;  %v5015_v36 = vmul.f32 %v1380_v52, %v4895_v32 }
 0x383   : > { %v5018_v44 = vmul.f32 %v3860_v53, %v4900_v11  ;;  %v1383_v58 = vpop.f32.mrb[19].mxu1  ;;  %v1461_v59 = vsel %vm1083_vm3, %v5012_v51, -inf }
 0x384   : > { %1462 = vmax.xlane.f32.xlu1 %v1461_v59  ;;  %v5023_v60 = vmul.f32 %v1383_v58, %v4903_v20  ;;  %v1455_v37 = vsel %vm1083_vm3, %v5015_v36, -inf }
 0x385   : > { %v1464_v63 = vsel %vm1083_vm3, %v5018_v44, -inf }
 0x386   : > { %1465 = vmax.xlane.f32.xlu0 %v1464_v63  ;;  %v1458_v54 = vsel %vm1083_vm3, %v5023_v60, -inf }
 0x388   : > { %v3863_v3 = vpop.f32.mrb[20].mxu1  ;;  %1456 = vmax.xlane.f32.xlu1 %v1455_v37 }
 0x389   : > { %v5030_v7 = vmul.f32 %v3863_v3, %v4924_v46  ;;  %v1396_v9 = vpop.f32.mrb[21].mxu1 }
 0x38a   : > { %v3864_v19 = vpop.f32.mrb[22].mxu1  ;;  %1459 = vmax.xlane.f32.xlu0 %v1458_v54  ;;  %v5035_v6 = vmul.f32 %v1396_v9, %v4929_v49 }
 0x38b   : > { %v5038_v0 = vmul.f32 %v3864_v19, %v4932_v50  ;;  %v1399_v1 = vpop.f32.mrb[23].mxu1  ;;  %v1473_v31 = vsel %vm1083_vm3, %v5030_v7, -inf }
 0x38c   : > { %1474 = vmax.xlane.f32.xlu1 %v1473_v31  ;;  %v5043_v10 = vmul.f32 %v1399_v1, %v4937_v28  ;;  %v1467_v17 = vsel %vm1083_vm3, %v5035_v6, -inf }
 0x38d   : > { %v1476_v34 = vsel %vm1083_vm3, %v5038_v0, -inf }
 0x38e   : > { %1477 = vmax.xlane.f32.xlu0 %v1476_v34  ;;  %v1470_v43 = vsel %vm1083_vm3, %v5043_v10, -inf }
 0x390   : > { %v3867_v21 = vpop.f32.mrb[24].mxu1  ;;  %1468 = vmax.xlane.f32.xlu1 %v1467_v17 }
 0x391   : > { %v5050_v25 = vmul.f32 %v3867_v21, %v4954_v62  ;;  %v1412_v40 = vpop.f32.mrb[25].mxu1 }
 0x392   : > { %v3868_v24 = vpop.f32.mrb[26].mxu1  ;;  %1471 = vmax.xlane.f32.xlu0 %v1470_v43  ;;  %v5055_v48 = vmul.f32 %v1412_v40, %v4959_v2 }
 0x393   : > { %v5058_v52 = vmul.f32 %v3868_v24, %v4964_v45  ;;  %v5060_v53 = vpop.xlane.xlu1 %1091  ;;  %v1415_v58 = vpop.f32.mrb[27].mxu1  ;;  %v1485_v59 = vsel %vm1083_vm3, %v5050_v25, -inf }
 0x394   : > { %1486 = vmax.xlane.f32.xlu1 %v1485_v59  ;;  %v5065_v63 = vmul.f32 %v1415_v58, %v4967_v4  ;;  %v1479_v54 = vsel %vm1083_vm3, %v5055_v48, -inf }
 0x395   : > { %v5067_v37 = vpop.xlane.xlu0 %1094  ;;  %v1488_v3 = vsel %vm1083_vm3, %v5058_v52, -inf }
 0x396   : > { %1489 = vmax.xlane.f32.xlu0 %v1488_v3  ;;  %v1482_v21 = vsel %vm1083_vm3, %v5065_v63, -inf }
 0x397   : > { %v1086_v9 = vpop.xlane.xlu1 %1085 }
 0x398   : > { %v1132_v19 = vsub.f32 %v4879_v22, %v1086_v9  ;;  %v3917_v1 = vpop.f32.mrb[28].mxu1  ;;  %1480 = vmax.xlane.f32.xlu1 %v1479_v54 }
 0x399   : > { %v5075_v31 = vmul.f32 %v3917_v1, %v4864_v8  ;;  %v1963_v34 = vpop.f32.mrb[29].mxu1  ;;  %v1089_v17 = vpop.xlane.xlu0 %1088 }
 0x39a   : > { %v1148_v40 = vmul.f32 1.442695, %v1132_v19  ;;  %v1133_v43 = vsub.f32 %v4887_v27, %v1089_v17  ;;  %v3918_v24 = vpop.f32.mrb[30].mxu1  ;;  %1483 = vmax.xlane.f32.xlu0 %v1482_v21  ;;  %v5081_v58 = vmul.f32 %v1963_v34, %v4867_v12 }
 0x39b   : > { %6253 = vst [vmem:[#allocation3_spill] sm:$0xff] %v5075_v31  ;;  %v5084_v22 = vmul.f32 %v3918_v24, %v4870_v13  ;;  %v1966_v59 = vpop.f32.mrb[31].mxu1  ;;  %v2048_v3 = vsel %vm1083_vm3, %v5075_v31, -inf }
 0x39c   : > { %6254 = vst [vmem:[#allocation4_spill] sm:$0xff] %v5081_v58  ;;  %v1150_v9 = vmul.f32 1.442695, %v1133_v43  ;;  %2049 = vmax.xlane.f32.xlu1 %v2048_v3  ;;  %v5089_v54 = vmul.f32 %v1966_v59, %v4873_v55  ;;  %4138 = vpow2.f32 %v1148_v40  ;;  %v2042_v19 = vsel %vm1083_vm3, %v5081_v58, -inf }
 0x39d   : > { %6255 = vst [vmem:[#allocation5_spill] sm:$0xff] %v5084_v22  ;;  %v2051_v27 = vsel %vm1083_vm3, %v5084_v22, -inf }
 0x39e   : > { %6256 = vst [vmem:[#allocation6_spill] sm:$0xff] %v5089_v54  ;;  %2052 = vmax.xlane.f32.xlu0 %v2051_v27  ;;  %4140 = vpow2.f32 %v1150_v9  ;;  %v2045_v21 = vsel %vm1083_vm3, %v5089_v54, -inf }
 0x3a0   : > { %v3921_v1 = vpop.f32.mrb[32].mxu1  ;;  %2043 = vmax.xlane.f32.xlu1 %v2042_v19 }
 0x3a1   : > { %v5096_v34 = vmul.f32 %v3921_v1, %v4890_v30  ;;  %v1979_v17 = vpop.f32.mrb[33].mxu1 }
 0x3a2   : > { %v3922_v43 = vpop.f32.mrb[34].mxu1  ;;  %2046 = vmax.xlane.f32.xlu0 %v2045_v21  ;;  %v5101_v24 = vmul.f32 %v1979_v17, %v4895_v32 }
 0x3a3   : > { %6257 = vst [vmem:[#allocation7_spill] sm:$0xff] %v5096_v34  ;;  %v5104_v40 = vmul.f32 %v3922_v43, %v4900_v11  ;;  %v1982_v59 = vpop.f32.mrb[35].mxu1  ;;  %v2060_v3 = vsel %vm1083_vm3, %v5096_v34, -inf }
 0x3a4   : > { %6258 = vst [vmem:[#allocation8_spill] sm:$0xff] %v5101_v24  ;;  %2061 = vmax.xlane.f32.xlu1 %v2060_v3  ;;  %v5109_v9 = vmul.f32 %v1982_v59, %v4903_v20  ;;  %v2054_v19 = vsel %vm1083_vm3, %v5101_v24, -inf }
 0x3a5   : > { %6259 = vst [vmem:[#allocation9_spill] sm:$0xff] %v5104_v40  ;;  %v2063_v27 = vsel %vm1083_vm3, %v5104_v40, -inf }
 0x3a6   : > { %6260 = vst [vmem:[#allocation10_spill] sm:$0xff] %v5109_v9  ;;  %2064 = vmax.xlane.f32.xlu0 %v2063_v27  ;;  %v5115_v1 = vpop.eup %4138  ;;  %v2057_v43 = vsel %vm1083_vm3, %v5109_v9, -inf }
 0x3a7   : > { %6261 = vst [vmem:[#allocation11_spill] sm:$0xff] %v5115_v1  ;;  %v1180_v27 = vsel %vm1083_vm3, %v5115_v1, 0.0 }
 0x3a8   : > { %v3925_v17 = vpop.f32.mrb[36].mxu1  ;;  %2055 = vmax.xlane.f32.xlu1 %v2054_v19  ;;  %v5119_v34 = vpop.eup %4140 }
 0x3a9   : > { %v1995_v21 = vpop.f32.mrb[37].mxu1  ;;  %6262 = vst [vmem:[#allocation12_spill] sm:$0xff] %v5119_v34  ;;  %v5122_v59 = vmul.f32 %v3925_v17, %v4924_v46  ;;  %v1183_v19 = vsel %vm1083_vm3, %v5119_v34, 0.0 }
 0x3aa   : > { %v3926_v3 = vpop.f32.mrb[38].mxu1  ;;  %2058 = vmax.xlane.f32.xlu0 %v2057_v43  ;;  %v5132_v9 = vmul.f32 %v1995_v21, %v4929_v49 }
 0x3ab   : > { %6263 = vst [vmem:[#allocation13_spill] sm:$0xff] %v5122_v59  ;;  %v1998_v40 = vpop.f32.mrb[39].mxu1  ;;  %v5127_v24 = vmul.f32 %v3926_v3, %v4932_v50  ;;  %v2072_v43 = vsel %vm1083_vm3, %v5122_v59, -inf }
 0x3ac   : > { %1181 = vadd.xlane.f32.xlu1 %v1180_v27  ;;  %6265 = vst [vmem:[#allocation15_spill] sm:$0xff] %v5132_v9  ;;  %v5137_v22 = vmul.f32 %v1998_v40, %v4937_v28  ;;  %v2066_v21 = vsel %vm1083_vm3, %v5132_v9, -inf }
 0x3ad   : > { %6264 = vst [vmem:[#allocation14_spill] sm:$0xff] %v5127_v24  ;;  %v2075_v3 = vsel %vm1083_vm3, %v5127_v24, -inf }
 0x3ae   : > { %1184 = vadd.xlane.f32.xlu0 %v1183_v19  ;;  %6266 = vst [vmem:[#allocation16_spill] sm:$0xff] %v5137_v22  ;;  %v2069_v40 = vsel %vm1083_vm3, %v5137_v22, -inf }
 0x3b0   : > { %v3929_v17 = vpop.f32.mrb[40].mxu1  ;;  %2073 = vmax.xlane.f32.xlu1 %v2072_v43 }
 0x3b1   : > { %v2011_v1 = vpop.f32.mrb[41].mxu1  ;;  %v5142_v34 = vmul.f32 %v3929_v17, %v4954_v62 }
 0x3b2   : > { %v3930_v27 = vpop.f32.mrb[42].mxu1  ;;  %2076 = vmax.xlane.f32.xlu0 %v2075_v3  ;;  %v5152_v43 = vmul.f32 %v2011_v1, %v4959_v2 }
 0x3b3   : > { %6267 = vst [vmem:[#allocation17_spill] sm:$0xff] %v5142_v34  ;;  %v2014_v19 = vpop.f32.mrb[43].mxu1  ;;  %v5147_v59 = vmul.f32 %v3930_v27, %v4964_v45  ;;  %v2084_v3 = vsel %vm1083_vm3, %v5142_v34, -inf }
 0x3b4   : > { %2067 = vmax.xlane.f32.xlu1 %v2066_v21  ;;  %6269 = vst [vmem:[#allocation19_spill] sm:$0xff] %v5152_v43  ;;  %v5157_v24 = vmul.f32 %v2014_v19, %v4967_v4  ;;  %v2078_v1 = vsel %vm1083_vm3, %v5152_v43, -inf }
 0x3b5   : > { %6268 = vst [vmem:[#allocation18_spill] sm:$0xff] %v5147_v59  ;;  %v2087_v27 = vsel %vm1083_vm3, %v5147_v59, -inf }
 0x3b6   : > { %2070 = vmax.xlane.f32.xlu0 %v2069_v40  ;;  %6270 = vst [vmem:[#allocation20_spill] sm:$0xff] %v5157_v24  ;;  %v2081_v19 = vsel %vm1083_vm3, %v5157_v24, -inf }
 0x3b8   : > { %v3957_v17 = vpop.f32.mrb[44].mxu1  ;;  %2085 = vmax.xlane.f32.xlu1 %v2084_v3 }
 0x3b9   : > { %v2455_v9 = vpop.f32.mrb[45].mxu1  ;;  %v5162_v22 = vmul.f32 %v3957_v17, %v4864_v8 }
 0x3ba   : > { %v3958_v21 = vpop.f32.mrb[46].mxu1  ;;  %2088 = vmax.xlane.f32.xlu0 %v2087_v27  ;;  %v5172_v3 = vmul.f32 %v2455_v9, %v4867_v12 }
 0x3bb   : > { %6271 = vst [vmem:[#allocation21_spill] sm:$0xff] %v5162_v22  ;;  %v2458_v40 = vpop.f32.mrb[47].mxu1  ;;  %v5167_v34 = vmul.f32 %v3958_v21, %v4870_v13  ;;  %v2540_v27 = vsel %vm1083_vm3, %v5162_v22, -inf }
 0x3bc   : > { %2079 = vmax.xlane.f32.xlu1 %v2078_v1  ;;  %6273 = vst [vmem:[#allocation23_spill] sm:$0xff] %v5172_v3  ;;  %v5177_v17 = vmul.f32 %v2458_v40, %v4873_v55  ;;  %v2534_v12 = vsel %vm1083_vm3, %v5172_v3, -inf }
 0x3bd   : > { %6272 = vst [vmem:[#allocation22_spill] sm:$0xff] %v5167_v34  ;;  %v2543_v13 = vsel %vm1083_vm3, %v5167_v34, -inf }
 0x3be   : > { %2082 = vmax.xlane.f32.xlu0 %v2081_v19  ;;  %6274 = vst [vmem:[#allocation24_spill] sm:$0xff] %v5177_v17  ;;  %v2537_v55 = vsel %vm1083_vm3, %v5177_v17, -inf }
 0x3c0   : > { %v3961_v8 = vpop.f32.mrb[48].mxu1  ;;  %2541 = vmax.xlane.f32.xlu1 %v2540_v27 }
 0x3c1   : > { %v2471_v59 = vpop.f32.mrb[49].mxu1  ;;  %v5182_v1 = vmul.f32 %v3961_v8, %v4890_v30 }
 0x3c2   : > { %v3962_v21 = vpop.f32.mrb[50].mxu1  ;;  %2544 = vmax.xlane.f32.xlu0 %v2543_v13  ;;  %v5192_v40 = vmul.f32 %v2471_v59, %v4895_v32 }
 0x3c3   : > { %6275 = vst [vmem:[#allocation25_spill] sm:$0xff] %v5182_v1  ;;  %v2474_v19 = vpop.f32.mrb[51].mxu1  ;;  %v5187_v9 = vmul.f32 %v3962_v21, %v4900_v11  ;;  %v2552_v27 = vsel %vm1083_vm3, %v5182_v1, -inf }
 0x3c4   : > { %2535 = vmax.xlane.f32.xlu1 %v2534_v12  ;;  %6277 = vst [vmem:[#allocation27_spill] sm:$0xff] %v5192_v40  ;;  %v5197_v8 = vmul.f32 %v2474_v19, %v4903_v20  ;;  %v2546_v32 = vsel %vm1083_vm3, %v5192_v40, -inf }
 0x3c5   : > { %6276 = vst [vmem:[#allocation26_spill] sm:$0xff] %v5187_v9  ;;  %v2555_v11 = vsel %vm1083_vm3, %v5187_v9, -inf }
 0x3c6   : > { %2538 = vmax.xlane.f32.xlu0 %v2537_v55  ;;  %6278 = vst [vmem:[#allocation28_spill] sm:$0xff] %v5197_v8  ;;  %v2549_v20 = vsel %vm1083_vm3, %v5197_v8, -inf }
 0x3c8   : > { %v3965_v30 = vpop.f32.mrb[52].mxu1  ;;  %2553 = vmax.xlane.f32.xlu1 %v2552_v27 }
 0x3c9   : > { %v2487_v13 = vpop.f32.mrb[53].mxu1  ;;  %v5202_v12 = vmul.f32 %v3965_v30, %v4924_v46 }
 0x3ca   : > { %v3966_v21 = vpop.f32.mrb[54].mxu1  ;;  %2556 = vmax.xlane.f32.xlu0 %v2555_v11  ;;  %v5212_v19 = vmul.f32 %v2487_v13, %v4929_v49 }
 0x3cb   : > { %6279 = vst [vmem:[#allocation29_spill] sm:$0xff] %v5202_v12  ;;  %v2490_v55 = vpop.f32.mrb[55].mxu1  ;;  %v5207_v59 = vmul.f32 %v3966_v21, %v4932_v50  ;;  %v2564_v27 = vsel %vm1083_vm3, %v5202_v12, -inf }
 0x3cc   : > { %2547 = vmax.xlane.f32.xlu1 %v2546_v32  ;;  %6281 = vst [vmem:[#allocation31_spill] sm:$0xff] %v5212_v19  ;;  %v5219_v30 = vmul.f32 %v2490_v55, %v4937_v28  ;;  %v2558_v49 = vsel %vm1083_vm3, %v5212_v19, -inf  ;;  %v5233_v28 = vpop.xlane.xlu0 %1106  ;;  %v5235_v55 = vpop.xlane.xlu1 %1103 }
 0x3cd   : > { %6280 = vst [vmem:[#allocation30_spill] sm:$0xff] %v5207_v59  ;;  %v2567_v50 = vsel %vm1083_vm3, %v5207_v59, -inf }
 0x3ce   : > { %2550 = vmax.xlane.f32.xlu0 %v2549_v20  ;;  %6282 = vst [vmem:[#allocation32_spill] sm:$0xff] %v5219_v30  ;;  %v2561_v13 = vsel %vm1083_vm3, %v5219_v30, -inf }
 0x3d0   : > { %v5216_v46 = vpop.f32.mrb[56].mxu1  ;;  %2565 = vmax.xlane.f32.xlu1 %v2564_v27  ;;  %v5237_v20 = vpop.xlane.xlu0 %1100 }
 0x3d1   : > { %v5221_v11 = vpop.f32.mrb[57].mxu1  ;;  %v5239_v27 = vpop.xlane.xlu1 %1097 }
 0x3d2   : > { %v5225_v21 = vpop.f32.mrb[58].mxu1  ;;  %2568 = vmax.xlane.f32.xlu0 %v2567_v50 }
 0x3d3   : > { %v5227_v32 = vpop.f32.mrb[59].mxu1 }
 0x3d4   : > { %2559 = vmax.xlane.f32.xlu1 %v2558_v49  ;;  %v5241_v59 = vpop.xlane.xlu0 %1118 }
 0x3d5   : > { %v5243_v50 = vpop.xlane.xlu1 %1115 }
 0x3d6   : > { %2562 = vmax.xlane.f32.xlu0 %v2561_v13 }
 0x3d8   : > { %v5245_v12 = vpop.xlane.xlu0 %1112 }
 0x3d9   : > { %v5247_v19 = vpop.xlane.xlu1 %1109 }
 0x3dc   : > { %v5249_v49 = vpop.xlane.xlu0 %1130 }
 0x3dd   : > { %6283 = vst [vmem:[#allocation33_spill] sm:$0xff] %v5249_v49  ;;  %v5251_v30 = vpop.xlane.xlu1 %1127 }
 0x3e0   : > { %v5253_v13 = vpop.xlane.xlu0 %1124 }
 0x3e1   : > { %v5255_v9 = vpop.xlane.xlu1 %1121 }
 0x406   : > { %v1451_v1 = vpop.xlane.xlu0 %1450 }
 0x407   : > { %v1493_v8 = vsub.f32 %v4992_v33, %v1451_v1  ;;  %v1445_v40 = vpop.xlane.xlu1 %1444 }
 0x408   : > { %v1491_v34 = vsub.f32 %v4995_v38, %v1445_v40 }
 0x409   : > { %v1511_v22 = vmul.f32 1.442695, %v1493_v8 }
 0x40a   : > { %v1507_v17 = vmul.f32 1.442695, %v1491_v34  ;;  %v1454_v3 = vpop.xlane.xlu0 %1453 }
 0x40b   : > { %4142 = vpow2.f32 %v1511_v22  ;;  %v1494_v24 = vsub.f32 %v4998_v35, %v1454_v3 }
 0x40c   : > { %4144 = vpow2.f32 %v1507_v17 }
 0x40d   : > { %v1513_v43 = vmul.f32 1.442695, %v1494_v24 }
 0x40e   : > { %v1448_v31 = vpop.xlane.xlu0 %1447 }
 0x40f   : > { %4146 = vpow2.f32 %v1513_v43  ;;  %v1492_v54 = vsub.f32 %v5005_v42, %v1448_v31 }
 0x411   : > { %v1509_v58 = vmul.f32 1.442695, %v1492_v54  ;;  %v1463_v18 = vpop.xlane.xlu1 %1462 }
 0x412   : > { %v1497_v49 = vsub.f32 %v5012_v51, %v1463_v18 }
 0x413   : > { %4148 = vpow2.f32 %v1509_v58  ;;  %v1466_v33 = vpop.xlane.xlu0 %1465 }
 0x414   : > { %v1519_v1 = vmul.f32 1.442695, %v1497_v49  ;;  %v1498_v38 = vsub.f32 %v5018_v44, %v1466_v33 }
 0x415   : > { %v5263_v34 = vpop.eup %4142  ;;  %v1457_v22 = vpop.xlane.xlu1 %1456 }
 0x416   : > { %v5265_v40 = vpop.eup %4144  ;;  %4150 = vpow2.f32 %v1519_v1  ;;  %v1521_v35 = vmul.f32 1.442695, %v1498_v38  ;;  %v1495_v24 = vsub.f32 %v5015_v36, %v1457_v22  ;;  %v1545_v42 = vsel %vm1083_vm3, %v5263_v34, 0.0 }
 0x417   : > { %1546 = vadd.xlane.f32.xlu1 %v1545_v42  ;;  %v1460_v31 = vpop.xlane.xlu0 %1459  ;;  %v1539_v54 = vsel %vm1083_vm3, %v5265_v40, 0.0 }
 0x418   : > { %4152 = vpow2.f32 %v1521_v35  ;;  %v1515_v18 = vmul.f32 1.442695, %v1495_v24  ;;  %v1496_v51 = vsub.f32 %v5023_v60, %v1460_v31 }
 0x419   : > { %v5271_v58 = vpop.eup %4146  ;;  %v1475_v44 = vpop.xlane.xlu1 %1474 }
 0x41a   : > { %4154 = vpow2.f32 %v1515_v18  ;;  %v1517_v43 = vmul.f32 1.442695, %v1496_v51  ;;  %v1501_v3 = vsub.f32 %v5030_v7, %v1475_v44  ;;  %v1548_v36 = vsel %vm1083_vm3, %v5271_v58, 0.0 }
 0x41b   : > { %1540 = vadd.xlane.f32.xlu1 %v1539_v54  ;;  %1549 = vadd.xlane.f32.xlu0 %v1548_v36  ;;  %v1478_v17 = vpop.xlane.xlu0 %1477 }
 0x41c   : > { %4156 = vpow2.f32 %v1517_v43  ;;  %v1527_v8 = vmul.f32 1.442695, %v1501_v3  ;;  %v1502_v60 = vsub.f32 %v5038_v0, %v1478_v17 }
 0x41d   : > { %v5279_v49 = vpop.eup %4148  ;;  %v1469_v33 = vpop.xlane.xlu1 %1468 }
 0x41e   : > { %4158 = vpow2.f32 %v1527_v8  ;;  %v1529_v1 = vmul.f32 1.442695, %v1502_v60  ;;  %v1499_v38 = vsub.f32 %v5035_v6, %v1469_v33  ;;  %v1542_v7 = vsel %vm1083_vm3, %v5279_v49, 0.0 }
 0x41f   : > { %1543 = vadd.xlane.f32.xlu0 %v1542_v7  ;;  %v1472_v22 = vpop.xlane.xlu0 %1471 }
 0x420   : > { %v5284_v35 = vpop.eup %4150  ;;  %4160 = vpow2.f32 %v1529_v1  ;;  %v1523_v24 = vmul.f32 1.442695, %v1499_v38  ;;  %v1500_v42 = vsub.f32 %v5043_v10, %v1472_v22 }
 0x421   : > { %v1487_v31 = vpop.xlane.xlu1 %1486  ;;  %v1557_v0 = vsel %vm1083_vm3, %v5284_v35, 0.0 }
 0x422   : > { %v5289_v18 = vpop.eup %4152  ;;  %4162 = vpow2.f32 %v1523_v24  ;;  %v1525_v51 = vmul.f32 1.442695, %v1500_v42  ;;  %v1505_v6 = vsub.f32 %v5050_v25, %v1487_v31  ;;  %1558 = vadd.xlane.f32.xlu1 %v1557_v0  ;;  %v1135_v31 = vsub.f32 %v4882_v16, %v5067_v37 }
 0x423   : > { %v1490_v44 = vpop.xlane.xlu0 %1489  ;;  %v1560_v54 = vsel %vm1083_vm3, %v5289_v18, 0.0 }
 0x424   : > { %v5294_v43 = vpop.eup %4154  ;;  %4164 = vpow2.f32 %v1525_v51  ;;  %v1535_v3 = vmul.f32 1.442695, %v1505_v6  ;;  %v1506_v10 = vsub.f32 %v5058_v52, %v1490_v44  ;;  %1561 = vadd.xlane.f32.xlu0 %v1560_v54  ;;  %v1134_v52 = vsub.f32 %v4876_v14, %v5060_v53 }
 0x425   : > { %v1481_v36 = vpop.xlane.xlu1 %1480  ;;  %v1551_v17 = vsel %vm1083_vm3, %v5294_v43, 0.0  ;;  %v1154_v16 = vmul.f32 1.442695, %v1135_v31 }
 0x426   : > { %v5299_v8 = vpop.eup %4156  ;;  %4166 = vpow2.f32 %v1535_v3  ;;  %v1537_v25 = vmul.f32 1.442695, %v1506_v10  ;;  %v1503_v60 = vsub.f32 %v5055_v48, %v1481_v36  ;;  %1552 = vadd.xlane.f32.xlu1 %v1551_v17  ;;  %v3616_v10 = vld [vmem:[%s6196_s3 + $0x30] sm:$0xff]  ;;  %v3617_v36 = vld [vmem:[%s6196_s3 + $0x38] sm:$0xff] }
 0x427   : > { %v1484_v33 = vpop.xlane.xlu0 %1483  ;;  %v1554_v1 = vsel %vm1083_vm3, %v5299_v8, 0.0 }
 0x428   : > { %v5304_v38 = vpop.eup %4158  ;;  %4168 = vpow2.f32 %v1537_v25  ;;  %v1531_v7 = vmul.f32 1.442695, %v1503_v60  ;;  %v1504_v22 = vsub.f32 %v5065_v63, %v1484_v33  ;;  %1555 = vadd.xlane.f32.xlu0 %v1554_v1  ;;  %v1152_v63 = vmul.f32 1.442695, %v1134_v52 }
 0x429   : > { %v5309_v24 = vpop.xlane.xlu1 %2049  ;;  %v1569_v48 = vsel %vm1083_vm3, %v5304_v38, 0.0  ;;  %v1136_v25 = vsub.f32 %v4911_v39, %v5239_v27  ;;  %v1634_v60 = vpack.c.bf16 %v3617_v36, %v3616_v10  ;;  %v3618_v27 = vld [vmem:[%s6196_s3 + $0x40] sm:$0xff] }
 0x42a   : > { %v5313_v42 = vpop.eup %4160  ;;  %4170 = vpow2.f32 %v1531_v7  ;;  %v1533_v0 = vmul.f32 1.442695, %v1504_v22  ;;  %1570 = vadd.xlane.f32.xlu1 %v1569_v48  ;;  %v1137_v7 = vsub.f32 %v4919_v41, %v5237_v20  ;;  %v3619_v48 = vld [vmem:[%s6196_s3 + $0x48] sm:$0xff]  ;;  %v1138_v41 = vsub.f32 %v4906_v23, %v5235_v55 }
 0x42b   : > { %v5317_v51 = vpop.xlane.xlu0 %2052  ;;  %v1572_v14 = vsel %vm1083_vm3, %v5313_v42, 0.0  ;;  %3869 = vmatprep.subr.bf16.mxu0 %v1634_v60  ;;  %v1156_v20 = vmul.f32 1.442695, %v1136_v25  ;;  %v5379_v23 = vmul.f32 %v5227_v32, %v4967_v4  ;;  %v1140_v4 = vsub.f32 %v4943_v56, %v5247_v19 }
 0x42c   : > { %v5321_v53 = vpop.eup %4162  ;;  %4172 = vpow2.f32 %v1533_v0  ;;  %1573 = vadd.xlane.f32.xlu0 %v1572_v14  ;;  %3870 = vmatpush3.bf16.msra.mxu0 %v1634_v60  ;;  %v1635_v0 = vpack.c.bf16 %v3619_v48, %v3618_v27  ;;  %v5367_v14 = vmul.f32 %v5221_v11, %v4959_v2  ;;  %v1158_v10 = vmul.f32 1.442695, %v1137_v7  ;;  %v3620_v11 = vld [vmem:[%s6196_s3 + $0x50] sm:$0xff] }
 0x42d   : > { %v5323_v6 = vpop.xlane.xlu1 %2043  ;;  %v1563_v44 = vsel %vm1083_vm3, %v5321_v53, 0.0  ;;  %4174 = vpow2.f32 %v1152_v63  ;;  %v1141_v7 = vsub.f32 %v4951_v61, %v5245_v12  ;;  %v1142_v48 = vsub.f32 %v4940_v29, %v5243_v50 }
 0x42e   : > { %v5327_v54 = vpop.eup %4164  ;;  %1564 = vadd.xlane.f32.xlu1 %v1563_v44  ;;  %4176 = vpow2.f32 %v1154_v16  ;;  %3871 = vmatprep.subr.bf16.mxu0 %v1635_v0  ;;  %v2570_v25 = vsel %vm1083_vm3, %v5367_v14, -inf  ;;  %v5413_v61 = vmul.f32 %v5216_v46, %v4954_v62  ;;  %v1144_v46 = vsub.f32 %v4975_v15, %v5255_v9 }
 0x42f   : > { %v5329_v37 = vpop.xlane.xlu0 %2046  ;;  %v1566_v3 = vsel %vm1083_vm3, %v5327_v54, 0.0  ;;  %4178 = vpow2.f32 %v1156_v20  ;;  %v1143_v20 = vsub.f32 %v4946_v57, %v5241_v59  ;;  %v1168_v62 = vmul.f32 1.442695, %v1142_v48 }
 0x430   : > { %v5339_v17 = vpop.eup %4166  ;;  %1567 = vadd.xlane.f32.xlu0 %v1566_v3  ;;  %v1139_v3 = vsub.f32 %v4914_v47, %v5233_v28  ;;  %3872 = vmatpush3.bf16.msra.mxu0 %v1635_v0  ;;  %v3621_v47 = vld [vmem:[%s6196_s3 + $0x58] sm:$0x3]  ;;  %v1160_v28 = vmul.f32 1.442695, %v1138_v41  ;;  %4180 = vpow2.f32 %v1158_v10  ;;  %v1164_v41 = vmul.f32 1.442695, %v1140_v4 }
 0x431   : > { %v5343_v33 = vpop.xlane.xlu1 %2061  ;;  %v1581_v1 = vsel %vm1083_vm3, %v5339_v17, 0.0  ;;  %v1636_v32 = vpack.c.bf16 %v3621_v47, %v3620_v11  ;;  %v1166_v0 = vmul.f32 1.442695, %v1141_v7  ;;  %v2576_v57 = vsel %vm1083_vm3, %v5413_v61, -inf  ;;  %v6286_v7 = vld [vmem:[#allocation4_spill] sm:$0xff] }
 0x432   : > { %v5347_v52 = vpop.eup %4168  ;;  %1582 = vadd.xlane.f32.xlu1 %v1581_v1  ;;  %v1162_v1 = vmul.f32 1.442695, %v1139_v3  ;;  %4182 = vpow2.f32 %v1160_v28  ;;  %v1146_v15 = vsub.f32 %v4970_v5, %v5251_v30  ;;  %v1172_v9 = vmul.f32 1.442695, %v1144_v46 }
 0x433   : > { %v5351_v22 = vpop.xlane.xlu0 %2064  ;;  %v1584_v39 = vsel %vm1083_vm3, %v5347_v52, 0.0  ;;  %4086 = vmatprep.subr.msk.bf16.mxu0 %vm1661_vm4, %v1636_v32  ;;  %v1663_v56 = vsel %vm1661_vm4, %v1636_v32, 0 }
 0x434   : > { %v5361_v31 = vpop.eup %4170  ;;  %1585 = vadd.xlane.f32.xlu0 %v1584_v39  ;;  %v2573_v39 = vsel %vm1083_vm3, %v5379_v23, -inf  ;;  %3874 = vmatpush3.bf16.msra.mxu0 %v1663_v56  ;;  %4184 = vpow2.f32 %v1162_v1  ;;  %v1176_v1 = vmul.f32 1.442695, %v1146_v15  ;;  %v2090_v56 = vsub.f32 %v6286_v7, %v5323_v6  ;;  %v6288_v6 = vld [vmem:[#allocation3_spill] sm:$0xff] }
 0x435   : > { %v5369_v63 = vpop.xlane.xlu1 %2055  ;;  %v1575_v44 = vsel %vm1083_vm3, %v5361_v31, 0.0  ;;  %4186 = vpow2.f32 %v1164_v41  ;;  %v2092_v46 = vsub.f32 %v6288_v6, %v5309_v24  ;;  %v6292_v6 = vld [vmem:[#allocation7_spill] sm:$0xff] }
 0x436   : > { %v5373_v16 = vpop.eup %4172  ;;  %1576 = vadd.xlane.f32.xlu1 %v1575_v44  ;;  %v5421_v44 = vmul.f32 %v5225_v21, %v4964_v45  ;;  %v1170_v45 = vmul.f32 1.442695, %v1143_v20  ;;  %4188 = vpow2.f32 %v1166_v0  ;;  %v1145_v21 = vsub.f32 %v4983_v26, %v5253_v13  ;;  %v6284_v26 = vld [vmem:[#allocation33_spill] sm:$0xff]  ;;  %v6285_v13 = vld [vmem:[#allocation2_spill] sm:$0xff] }
 0x437   : > { %v5381_v55 = vpop.xlane.xlu0 %2058  ;;  %v1578_v2 = vsel %vm1083_vm3, %v5373_v16, 0.0  ;;  %v5397_v60 = vpop.eup %4174  ;;  %4190 = vpow2.f32 %v1168_v62  ;;  %v1147_v4 = vsub.f32 %v6285_v13, %v6284_v26  ;;  %v2110_v24 = vmul.f32 1.442695, %v2092_v46  ;;  %v6290_v13 = vld [vmem:[#allocation8_spill] sm:$0xff] }
 0x438   : > { %1579 = vadd.xlane.f32.xlu0 %v1578_v2  ;;  %v5407_v27 = vpop.eup %4176  ;;  %v1186_v12 = vsel %vm1083_vm3, %v5397_v60, 0.0  ;;  %v2579_v10 = vsel %vm1083_vm3, %v5421_v44, -inf  ;;  %4192 = vpow2.f32 %v1170_v45  ;;  %v1174_v32 = vmul.f32 1.442695, %v1145_v21 }
 0x439   : > { %v5393_v36 = vpop.xlane.xlu1 %1181  ;;  %v1189_v50 = vsel %vm1083_vm3, %v5407_v27, 0.0  ;;  %v5433_v59 = vpop.eup %4178  ;;  %4194 = vpow2.f32 %v1172_v9  ;;  %v1178_v41 = vmul.f32 1.442695, %v1147_v4  ;;  %v2094_v4 = vsub.f32 %v6290_v13, %v5369_v63  ;;  %v6291_v63 = vld [vmem:[#allocation10_spill] sm:$0xff] }
 0x43a   : > { %2571 = vmax.xlane.f32.xlu1 %v2570_v25  ;;  %v5439_v2 = vpop.eup %4180  ;;  %v1192_v47 = vsel %vm1083_vm3, %v5433_v59, 0.0  ;;  %4196 = vpow2.f32 %v1174_v32  ;;  %v1268_v32 = vld [vmem:[%s6196_s3] sm:$0xff]  ;;  %v2096_v46 = vsub.f32 %v6292_v6, %v5343_v33 }
 0x43b   : > { %v5403_v19 = vpop.xlane.xlu0 %1184  ;;  %v1195_v5 = vsel %vm1083_vm3, %v5439_v2, 0.0  ;;  %4198 = vpow2.f32 %v1176_v1 }
 0x43c   : > { %2574 = vmax.xlane.f32.xlu0 %v2573_v39  ;;  %v5447_v28 = vpop.eup %4182  ;;  %4200 = vpow2.f32 %v1178_v41  ;;  %v2095_v41 = vsub.f32 %v6291_v63, %v5381_v55  ;;  %v2118_v33 = vmul.f32 1.442695, %v2096_v46  ;;  %v6295_v63 = vld [vmem:[#allocation16_spill] sm:$0xff] }
 0x43d   : > { %v5423_v29 = vpop.xlane.xlu1 %2073  ;;  %v1198_v39 = vsel %vm1083_vm3, %v5447_v28, 0.0 }
 0x43e   : > { %1187 = vadd.xlane.f32.xlu1 %v1186_v12  ;;  %v5455_v30 = vpop.eup %4184  ;;  %v6287_v12 = vld [vmem:[#allocation6_spill] sm:$0xff] }
 0x43f   : > { %v5429_v3 = vpop.xlane.xlu0 %2076  ;;  %v5461_v48 = vpop.eup %4186  ;;  %v2091_v20 = vsub.f32 %v6287_v12, %v5329_v37 }
 0x440   : > { %1190 = vadd.xlane.f32.xlu0 %v1189_v50  ;;  %v1201_v50 = vsel %vm1083_vm3, %v5455_v30, 0.0  ;;  %v5469_v62 = vpop.eup %4188  ;;  %v1204_v21 = vsel %vm1083_vm3, %v5461_v48, 0.0 }
 0x441   : > { %v5443_v11 = vpop.xlane.xlu1 %2067  ;;  %v5477_v37 = vpop.eup %4190  ;;  %v2108_v9 = vmul.f32 1.442695, %v2091_v20 }
 0x442   : > { %2577 = vmax.xlane.f32.xlu1 %v2576_v57  ;;  %v2106_v57 = vmul.f32 1.442695, %v2090_v56  ;;  %v5483_v26 = vpop.eup %4192  ;;  %v1210_v1 = vsel %vm1083_vm3, %v5477_v37, 0.0 }
 0x443   : > { %v5451_v25 = vpop.xlane.xlu0 %2070  ;;  %v5499_v56 = vpop.eup %4194  ;;  %v1213_v20 = vsel %vm1083_vm3, %v5483_v26, 0.0 }
 0x444   : > { %2580 = vmax.xlane.f32.xlu0 %v2579_v10  ;;  %v6289_v10 = vld [vmem:[#allocation5_spill] sm:$0xff]  ;;  %4202 = vpow2.f32 %v2106_v57  ;;  %v2114_v57 = vmul.f32 1.442695, %v2094_v4  ;;  %v6294_v4 = vld [vmem:[#allocation15_spill] sm:$0xff] }
 0x445   : > { %v5465_v0 = vpop.xlane.xlu1 %2085  ;;  %v2093_v15 = vsub.f32 %v6289_v10, %v5317_v51  ;;  %v1269_v51 = vld [vmem:[%s6196_s3 + $0x8] sm:$0xff]  ;;  %4204 = vpow2.f32 %v2108_v9  ;;  %v6293_v10 = vld [vmem:[#allocation9_spill] sm:$0xff]  ;;  %v2116_v9 = vmul.f32 1.442695, %v2095_v41  ;;  %v2099_v41 = vsub.f32 %v6295_v63, %v5451_v25  ;;  %v6298_v25 = vld [vmem:[#allocation14_spill] sm:$0xff] }
 0x446   : > { %1193 = vadd.xlane.f32.xlu1 %v1192_v47  ;;  %v1207_v47 = vsel %vm1083_vm3, %v5469_v62, 0.0  ;;  %v5497_v7 = vpack.c.bf16 %v1269_v51, %v1268_v32  ;;  %4206 = vpow2.f32 %v2110_v24  ;;  %v2098_v32 = vsub.f32 %v6294_v4, %v5443_v11  ;;  %v6296_v11 = vld [vmem:[#allocation13_spill] sm:$0xff] }
 0x447   : > { %v5473_v45 = vpop.xlane.xlu0 %2088  ;;  %v2100_v46 = vsub.f32 %v6296_v11, %v5423_v29 }
 0x448   : > { %1196 = vadd.xlane.f32.xlu0 %v1195_v5  ;;  %3891 = vmatprep.subr.bf16.mxu0 %v5497_v7 }
 0x449   : > { %v5493_v5 = vpop.xlane.xlu1 %2079  ;;  %v2126_v29 = vmul.f32 1.442695, %v2100_v46 }
 0x44a   : > { %1199 = vadd.xlane.f32.xlu1 %v1198_v39  ;;  %v2112_v39 = vmul.f32 1.442695, %v2093_v15  ;;  %v2097_v15 = vsub.f32 %v6293_v10, %v5351_v22 }
 0x44b   : > { %v5503_v12 = vpop.xlane.xlu0 %2082 }
 0x44c   : > { %1202 = vadd.xlane.f32.xlu0 %v1201_v50  ;;  %v5508_v50 = vpop.eup %4196  ;;  %4208 = vpow2.f32 %v2112_v39  ;;  %v2120_v39 = vmul.f32 1.442695, %v2097_v15 }
 0x44d   : > { %v5514_v55 = vpop.eup %4198  ;;  %v1219_v24 = vsel %vm1083_vm3, %v5508_v50, 0.0  ;;  %4210 = vpow2.f32 %v2114_v57  ;;  %v2122_v57 = vmul.f32 1.442695, %v2098_v32  ;;  %v6300_v32 = vld [vmem:[#allocation19_spill] sm:$0xff] }
 0x44e   : > { %1205 = vadd.xlane.f32.xlu1 %v1204_v21  ;;  %v1216_v21 = vsel %vm1083_vm3, %v5499_v56, 0.0  ;;  %v5522_v13 = vpop.eup %4200  ;;  %v1222_v22 = vsel %vm1083_vm3, %v5514_v55, 0.0  ;;  %4212 = vpow2.f32 %v2116_v9  ;;  %v2101_v9 = vsub.f32 %v6298_v25, %v5429_v3 }
 0x44f   : > { %v5526_v51 = vpop.xlane.xlu0 %2544  ;;  %4214 = vpow2.f32 %v2118_v33  ;;  %v2102_v63 = vsub.f32 %v6300_v32, %v5493_v5  ;;  %v6303_v5 = vld [vmem:[#allocation17_spill] sm:$0xff] }
 0x450   : > { %1208 = vadd.xlane.f32.xlu0 %v1207_v47  ;;  %v5518_v47 = vpop.xlane.xlu1 %2541  ;;  %4216 = vpow2.f32 %v2120_v39  ;;  %v2128_v3 = vmul.f32 1.442695, %v2101_v9  ;;  %v2104_v25 = vsub.f32 %v6303_v5, %v5465_v0 }
 0x451   : > { %4218 = vpow2.f32 %v2122_v57 }
 0x452   : > { %1211 = vadd.xlane.f32.xlu1 %v1210_v1  ;;  %v5530_v1 = vpop.eup %4202  ;;  %v2134_v0 = vmul.f32 1.442695, %v2104_v25 }
 0x453   : > { %v5536_v6 = vpop.eup %4204  ;;  %v2138_v10 = vsel %vm1083_vm3, %v5530_v1, 0.0  ;;  %v2539_v4 = vpop.xlane.xlu0 %2538 }
 0x454   : > { %1214 = vadd.xlane.f32.xlu0 %v1213_v20  ;;  %v1225_v20 = vsel %vm1083_vm3, %v5522_v13, 0.0  ;;  %v5542_v15 = vpop.eup %4206  ;;  %v2141_v33 = vsel %vm1083_vm3, %v5536_v6, 0.0 }
 0x455   : > { %6297 = vst [vmem:[#allocation33_spill] sm:$0xff] %v5542_v15  ;;  %v2144_v39 = vsel %vm1083_vm3, %v5542_v15, 0.0 }
 0x456   : > { %1217 = vadd.xlane.f32.xlu1 %v1216_v21  ;;  %v2536_v21 = vpop.xlane.xlu1 %2535 }
 0x457   : > { %v5566_v32 = vpop.xlane.xlu0 %2556 }
 0x458   : > { %1220 = vadd.xlane.f32.xlu0 %v1219_v24  ;;  %v2124_v24 = vmul.f32 1.442695, %v2099_v41  ;;  %v6302_v41 = vld [vmem:[#allocation20_spill] sm:$0xff] }
 0x459   : > { %v2103_v11 = vsub.f32 %v6302_v41, %v5503_v12 }
 0x45a   : > { %1223 = vadd.xlane.f32.xlu1 %v1222_v22  ;;  %v5548_v22 = vpop.eup %4208  ;;  %4220 = vpow2.f32 %v2124_v24  ;;  %v6304_v24 = vld [vmem:[#allocation18_spill] sm:$0xff] }
 0x45b   : > { %6299 = vst [vmem:[#allocation2_spill] sm:$0xff] %v5548_v22  ;;  %v2147_v46 = vsel %vm1083_vm3, %v5548_v22, 0.0  ;;  %4222 = vpow2.f32 %v2126_v29  ;;  %v2132_v41 = vmul.f32 1.442695, %v2103_v11 }
 0x45c   : > { %1226 = vadd.xlane.f32.xlu0 %v1225_v20  ;;  %v5554_v20 = vpop.eup %4210  ;;  %4224 = vpow2.f32 %v2128_v3 }
 0x45d   : > { %6301 = vst [vmem:[#allocation4_spill] sm:$0xff] %v5554_v20  ;;  %v5562_v57 = vpop.eup %4212  ;;  %v2150_v9 = vsel %vm1083_vm3, %v5554_v20, 0.0 }
 0x45e   : > { %2139 = vadd.xlane.f32.xlu1 %v2138_v10  ;;  %v5558_v10 = vpop.xlane.xlu1 %2553  ;;  %v5570_v12 = vpop.eup %4214  ;;  %v2153_v29 = vsel %vm1083_vm3, %v5562_v57, 0.0 }
 0x45f   : > { %v5576_v22 = vpop.eup %4216  ;;  %v2156_v20 = vsel %vm1083_vm3, %v5570_v12, 0.0 }
 0x460   : > { %2142 = vadd.xlane.f32.xlu0 %v2141_v33  ;;  %v2130_v33 = vmul.f32 1.442695, %v2102_v63  ;;  %6305 = vst [vmem:[#allocation6_spill] sm:$0xff] %v5576_v22  ;;  %v6306_v63 = vld [vmem:[#allocation23_spill] sm:$0xff]  ;;  %v5581_v3 = vpop.eup %4218 }
 0x461   : > { %6307 = vst [vmem:[#allocation3_spill] sm:$0xff] %v5581_v3 }
 0x462   : > { %2145 = vadd.xlane.f32.xlu1 %v2144_v39  ;;  %v2105_v39 = vsub.f32 %v6304_v24, %v5473_v45  ;;  %4226 = vpow2.f32 %v2130_v33  ;;  %v2548_v5 = vpop.xlane.xlu1 %2547  ;;  %v6308_v45 = vld [vmem:[#allocation24_spill] sm:$0xff]  ;;  %v2159_v24 = vsel %vm1083_vm3, %v5576_v22, 0.0 }
 0x463   : > { %4228 = vpow2.f32 %v2132_v41  ;;  %v2583_v11 = vsub.f32 %v6308_v45, %v2539_v4  ;;  %v6311_v4 = vld [vmem:[#allocation22_spill] sm:$0xff] }
 0x464   : > { %2148 = vadd.xlane.f32.xlu0 %v2147_v46  ;;  %v2582_v46 = vsub.f32 %v6306_v63, %v2536_v21  ;;  %v2136_v15 = vmul.f32 1.442695, %v2105_v39  ;;  %v5586_v25 = vpop.eup %4220  ;;  %4230 = vpow2.f32 %v2134_v0  ;;  %v6310_v21 = vld [vmem:[#allocation21_spill] sm:$0xff]  ;;  %v2162_v63 = vsel %vm1083_vm3, %v5581_v3, 0.0 }
 0x465   : > { %6309 = vst [vmem:[#allocation5_spill] sm:$0xff] %v5586_v25  ;;  %v2584_v33 = vsub.f32 %v6310_v21, %v5518_v47  ;;  %v5592_v39 = vpop.eup %4222  ;;  %v2600_v41 = vmul.f32 1.442695, %v2583_v11  ;;  %v2165_v0 = vsel %vm1083_vm3, %v5586_v25, 0.0  ;;  %v6315_v11 = vld [vmem:[#allocation28_spill] sm:$0xff] }
 0x466   : > { %2151 = vadd.xlane.f32.xlu1 %v2150_v9  ;;  %v2551_v9 = vpop.xlane.xlu0 %2550  ;;  %4232 = vpow2.f32 %v2136_v15  ;;  %v2566_v45 = vpop.xlane.xlu1 %2565  ;;  %v2168_v15 = vsel %vm1083_vm3, %v5592_v39, 0.0 }
 0x467   : > { %v5598_v22 = vpop.eup %4224  ;;  %v2602_v47 = vmul.f32 1.442695, %v2584_v33 }
 0x468   : > { %2154 = vadd.xlane.f32.xlu0 %v2153_v29  ;;  %v2598_v29 = vmul.f32 1.442695, %v2582_v46  ;;  %6312 = vst [vmem:[#allocation8_spill] sm:$0xff] %v5598_v22  ;;  %v6313_v46 = vld [vmem:[#allocation27_spill] sm:$0xff] }
 0x46a   : > { %2157 = vadd.xlane.f32.xlu1 %v2156_v20  ;;  %v2585_v20 = vsub.f32 %v6311_v4, %v5526_v51  ;;  %4234 = vpow2.f32 %v2598_v29  ;;  %v2569_v21 = vpop.xlane.xlu0 %2568  ;;  %v2171_v4 = vsel %vm1083_vm3, %v5598_v22, 0.0 }
 0x46b   : > { %4236 = vpow2.f32 %v2600_v41 }
 0x46c   : > { %2160 = vadd.xlane.f32.xlu0 %v2159_v24  ;;  %v2586_v24 = vsub.f32 %v6313_v46, %v2548_v5  ;;  %v5603_v3 = vpop.eup %4226  ;;  %v2604_v51 = vmul.f32 1.442695, %v2585_v20  ;;  %4238 = vpow2.f32 %v2602_v47  ;;  %v6316_v5 = vld [vmem:[#allocation25_spill] sm:$0xff] }
 0x46d   : > { %6314 = vst [vmem:[#allocation10_spill] sm:$0xff] %v5603_v3  ;;  %v5608_v25 = vpop.eup %4228  ;;  %v2588_v33 = vsub.f32 %v6316_v5, %v5558_v10  ;;  %v2174_v46 = vsel %vm1083_vm3, %v5603_v3, 0.0 }
 0x46e   : > { %2163 = vadd.xlane.f32.xlu1 %v2162_v63  ;;  %v2587_v63 = vsub.f32 %v6315_v11, %v2551_v9  ;;  %v2606_v29 = vmul.f32 1.442695, %v2586_v24  ;;  %v5614_v20 = vpop.eup %4230  ;;  %4240 = vpow2.f32 %v2604_v51  ;;  %v6317_v9 = vld [vmem:[#allocation26_spill] sm:$0xff]  ;;  %v2563_v11 = vpop.xlane.xlu0 %2562  ;;  %v2177_v47 = vsel %vm1083_vm3, %v5608_v25, 0.0  ;;  %v6318_v24 = vld [vmem:[#allocation31_spill] sm:$0xff] }
 0x46f   : > { %v2589_v41 = vsub.f32 %v6317_v9, %v5566_v32  ;;  %v2610_v10 = vmul.f32 1.442695, %v2588_v33  ;;  %v2180_v5 = vsel %vm1083_vm3, %v5614_v20, 0.0  ;;  %v6319_v32 = vld [vmem:[#allocation32_spill] sm:$0xff]  ;;  %v6320_v33 = vld [vmem:[#allocation29_spill] sm:$0xff] }
 0x470   : > { %2166 = vadd.xlane.f32.xlu0 %v2165_v0  ;;  %v2560_v0 = vpop.xlane.xlu1 %2559  ;;  %v5620_v22 = vpop.eup %4232  ;;  %4242 = vpow2.f32 %v2606_v29  ;;  %v2592_v29 = vsub.f32 %v6320_v33, %v2566_v45 }
 0x471   : > { %v2612_v3 = vmul.f32 1.442695, %v2589_v41  ;;  %v6321_v41 = vld [vmem:[#allocation30_spill] sm:$0xff] }
 0x472   : > { %2169 = vadd.xlane.f32.xlu1 %v2168_v15  ;;  %v2608_v15 = vmul.f32 1.442695, %v2587_v63  ;;  %v2591_v63 = vsub.f32 %v6319_v32, %v2563_v11 }
 0x474   : > { %2172 = vadd.xlane.f32.xlu0 %v2171_v4  ;;  %v2590_v4 = vsub.f32 %v6318_v24, %v2560_v0  ;;  %v5625_v51 = vpop.eup %4234  ;;  %4244 = vpow2.f32 %v2608_v15  ;;  %v2593_v15 = vsub.f32 %v6321_v41, %v2569_v21  ;;  %v2616_v11 = vmul.f32 1.442695, %v2591_v63 }
 0x475   : > { %v5630_v9 = vpop.eup %4236  ;;  %4246 = vpow2.f32 %v2610_v10  ;;  %v2618_v10 = vmul.f32 1.442695, %v2592_v29 }
 0x476   : > { %2175 = vadd.xlane.f32.xlu1 %v2174_v46  ;;  %v2183_v46 = vsel %vm1083_vm3, %v5620_v22, 0.0  ;;  %v2614_v0 = vmul.f32 1.442695, %v2590_v4  ;;  %v5635_v24 = vpop.eup %4238  ;;  %4248 = vpow2.f32 %v2612_v3 }
 0x477   : > { %v2636_v45 = vsel %vm1083_vm3, %v5635_v24, 0.0 }
 0x478   : > { %2178 = vadd.xlane.f32.xlu0 %v2177_v47  ;;  %v2630_v47 = vsel %vm1083_vm3, %v5625_v51, 0.0  ;;  %v5640_v32 = vpop.eup %4240  ;;  %4250 = vpow2.f32 %v2614_v0 }
 0x479   : > { %4252 = vpow2.f32 %v2616_v11  ;;  %v2639_v3 = vsel %vm1083_vm3, %v5640_v32, 0.0 }
 0x47a   : > { %2181 = vadd.xlane.f32.xlu1 %v2180_v5  ;;  %v2633_v5 = vsel %vm1083_vm3, %v5630_v9, 0.0  ;;  %v5644_v4 = vpop.eup %4242  ;;  %4254 = vpow2.f32 %v2618_v10 }
 0x47b   : > { %v2642_v63 = vsel %vm1083_vm3, %v5644_v4, 0.0 }
 0x47c   : > { %2184 = vadd.xlane.f32.xlu0 %v2183_v46  ;;  %v2620_v46 = vmul.f32 1.442695, %v2593_v15 }
 0x47e   : > { %2631 = vadd.xlane.f32.xlu1 %v2630_v47  ;;  %v5648_v21 = vpop.eup %4244  ;;  %4256 = vpow2.f32 %v2620_v46 }
 0x47f   : > { %6322 = vst [vmem:[#allocation7_spill] sm:$0xff] %v5648_v21  ;;  %v5652_v33 = vpop.eup %4246  ;;  %v2645_v29 = vsel %vm1083_vm3, %v5648_v21, 0.0 }
 0x480   : > { %2634 = vadd.xlane.f32.xlu0 %v2633_v5  ;;  %6323 = vst [vmem:[#allocation9_spill] sm:$0xff] %v5652_v33  ;;  %v5656_v0 = vpop.eup %4248  ;;  %v2648_v47 = vsel %vm1083_vm3, %v5652_v33, 0.0 }
 0x481   : > { %6324 = vst [vmem:[#allocation15_spill] sm:$0xff] %v5656_v0  ;;  %v2651_v15 = vsel %vm1083_vm3, %v5656_v0, 0.0 }
 0x482   : > { %2637 = vadd.xlane.f32.xlu1 %v2636_v45  ;;  %v5660_v41 = vpop.eup %4250 }
 0x483   : > { %6325 = vst [vmem:[#allocation16_spill] sm:$0xff] %v5660_v41  ;;  %v5664_v11 = vpop.eup %4252  ;;  %v2654_v5 = vsel %vm1083_vm3, %v5660_v41, 0.0 }
 0x484   : > { %2640 = vadd.xlane.f32.xlu0 %v2639_v3  ;;  %6326 = vst [vmem:[#allocation13_spill] sm:$0xff] %v5664_v11  ;;  %v5668_v10 = vpop.eup %4254  ;;  %v2657_v45 = vsel %vm1083_vm3, %v5664_v11, 0.0 }
 0x485   : > { %6327 = vst [vmem:[#allocation14_spill] sm:$0xff] %v5668_v10  ;;  %v2660_v3 = vsel %vm1083_vm3, %v5668_v10, 0.0 }
 0x486   : > { %2643 = vadd.xlane.f32.xlu1 %v2642_v63 }
 0x488   : > { %2646 = vadd.xlane.f32.xlu0 %v2645_v29  ;;  %v5672_v46 = vpop.eup %4256 }
 0x489   : > { %6328 = vst [vmem:[#allocation19_spill] sm:$0xff] %v5672_v46  ;;  %v2663_v63 = vsel %vm1083_vm3, %v5672_v46, 0.0 }
 0x48a   : > { %2649 = vadd.xlane.f32.xlu1 %v2648_v47 }
 0x48c   : > { %2652 = vadd.xlane.f32.xlu0 %v2651_v15 }
 0x48e   : > { %2655 = vadd.xlane.f32.xlu1 %v2654_v5 }
 0x490   : > { %2658 = vadd.xlane.f32.xlu0 %v2657_v45 }
 0x492   : > { %2661 = vadd.xlane.f32.xlu1 %v2660_v3 }
 0x494   : > { %2664 = vadd.xlane.f32.xlu0 %v2663_v63 }
 0x4a4   : > { %v1547_v29 = vpop.xlane.xlu1 %1546 }
 0x4a8   : > { %v1541_v47 = vpop.xlane.xlu1 %1540  ;;  %v1550_v15 = vpop.xlane.xlu0 %1549 }
 0x4a9   : > { %4258 = vrcp.f32 %v1550_v15  ;;  %v1271_v15 = vld [vmem:[%s6196_s3 + $0x18] sm:$0xff] }
 0x4aa   : > { %4260 = vrcp.f32 %v1541_v47 }
 0x4ab   : > { %4262 = vrcp.f32 %v1547_v29 }
 0x4ac   : > { %v1544_v5 = vpop.xlane.xlu0 %1543 }
 0x4ad   : > { %4264 = vrcp.f32 %v1544_v5 }
 0x4af   : > { %v1559_v11 = vpop.xlane.xlu1 %1558 }
 0x4b1   : > { %v1562_v41 = vpop.xlane.xlu0 %1561 }
 0x4b2   : > { %4266 = vrcp.f32 %v1562_v41  ;;  %v1270_v41 = vld [vmem:[%s6196_s3 + $0x10] sm:$0xff] }
 0x4b3   : > { %v1553_v45 = vpop.xlane.xlu1 %1552  ;;  %v4259_v0 = vpop.eup %4258 }
 0x4b4   : > { %4268 = vrcp.f32 %v1553_v45  ;;  %v4261_v10 = vpop.eup %4260  ;;  %v1606_v46 = vmul.f32 %v4259_v0, %v5271_v58  ;;  %v1275_v0 = vpack.c.bf16 %v1271_v15, %v1270_v41 }
 0x4b5   : > { %4270 = vrcp.f32 %v1559_v11  ;;  %v1556_v3 = vpop.xlane.xlu0 %1555  ;;  %v4263_v33 = vpop.eup %4262  ;;  %v1603_v47 = vmul.f32 %v4261_v10, %v5265_v40  ;;  %v1272_v40 = vld [vmem:[%s6196_s3 + $0x20] sm:$0xff] }
 0x4b6   : > { %4272 = vrcp.f32 %v1556_v3  ;;  %v1605_v11 = vmul.f32 %v4263_v33, %v5263_v34 }
 0x4b7   : > { %v4265_v63 = vpop.eup %4264  ;;  %v1571_v21 = vpop.xlane.xlu1 %1570 }
 0x4b8   : > { %v1604_v29 = vmul.f32 %v4265_v63, %v5279_v49  ;;  %v1620_v58 = vpack.c.bf16 %v1606_v46, %v1605_v11  ;;  %v1273_v49 = vld [vmem:[%s6196_s3 + $0x28] sm:$0x3] }
 0x4b9   : > { %v1574_v5 = vpop.xlane.xlu0 %1573 }
 0x4ba   : > { %v1619_v45 = vpack.c.bf16 %v1604_v29, %v1603_v47  ;;  %4274 = vrcp.f32 %v1574_v5  ;;  %v1276_v47 = vpack.c.bf16 %v1273_v49, %v1272_v40  ;;  %v3646_v5 = vld [vmem:[%s6196_s3 + $0x60] sm:$0xff] }
 0x4bb   : > { %v1565_v3 = vpop.xlane.xlu1 %1564 }
 0x4bc   : > { %4276 = vrcp.f32 %v1565_v3  ;;  %3875 = vmatprep.mubr.msk.bf16.mxu0 %vm1083_vm3, %v1619_v45  ;;  %v4267_v10 = vpop.eup %4266 }
 0x4bd   : > { %4278 = vrcp.f32 %v1571_v21  ;;  %3876 = vmatmul.mubr.msk.bf16.vlgmr.msra.gmra.mrb[20].mxu0 %vm1083_vm3, %v1620_v58  ;;  %v1568_v34 = vpop.xlane.xlu0 %1567  ;;  %v1610_v41 = vmul.f32 %v4267_v10, %v5289_v18 }
 0x4be   : > { %v4269_v33 = vpop.eup %4268  ;;  %4280 = vrcp.f32 %v1568_v34  ;;  %3892 = vmatpush3.bf16.msra.mxu0 %v5497_v7  ;;  %v3647_v7 = vld [vmem:[%s6196_s3 + $0x68] sm:$0xff] }
 0x4bf   : > { %v4271_v46 = vpop.eup %4270  ;;  %v1583_v63 = vpop.xlane.xlu1 %1582  ;;  %3893 = vmatprep.subr.bf16.mxu0 %v1275_v0  ;;  %4282 = vrcp.f32 %v5393_v36  ;;  %v1607_v11 = vmul.f32 %v4269_v33, %v5294_v43  ;;  %v5711_v3 = vpack.c.bf16 %v3647_v7, %v3646_v5 }
 0x4c0   : > { %v4273_v29 = vpop.eup %4272  ;;  %4284 = vrcp.f32 %v5403_v19  ;;  %v1609_v45 = vmul.f32 %v4271_v46, %v5284_v35 }
 0x4c1   : > { %v1586_v15 = vpop.xlane.xlu0 %1585  ;;  %v1608_v21 = vmul.f32 %v4273_v29, %v5299_v8  ;;  %v1787_v8 = vsel %vm1661_vm4, %v1276_v47, 0 }
 0x4c2   : > { %3894 = vmatpush3.bf16.msra.mxu0 %v1275_v0  ;;  %4286 = vrcp.f32 %v1586_v15  ;;  %v1622_v43 = vpack.c.bf16 %v1610_v41, %v1609_v45 }
 0x4c3   : > { %v1577_v18 = vpop.xlane.xlu1 %1576  ;;  %v1621_v36 = vpack.c.bf16 %v1608_v21, %v1607_v11  ;;  %4087 = vmatprep.subr.msk.bf16.mxu0 %vm1661_vm4, %v1276_v47 }
 0x4c4   : > { %4288 = vrcp.f32 %v1577_v18  ;;  %v4275_v58 = vpop.eup %4274 }
 0x4c5   : > { %4290 = vrcp.f32 %v1583_v63  ;;  %3879 = vmatprep.mubr.msk.bf16.mxu0 %vm1083_vm3, %v1621_v36  ;;  %v1580_v40 = vpop.xlane.xlu0 %1579  ;;  %v1614_v34 = vmul.f32 %v4275_v58, %v5313_v42 }
 0x4c6   : > { %v4277_v19 = vpop.eup %4276  ;;  %4292 = vrcp.f32 %v1580_v40  ;;  %3880 = vmatmul.mubr.msk.bf16.gmra.mrb[24].mxu0 %vm1083_vm3, %v1622_v43  ;;  %v6329_v40 = vld [vmem:[#allocation12_spill] sm:$0xff] }
 0x4c7   : > { %v4279_v35 = vpop.eup %4278  ;;  %v2572_v0 = vpop.xlane.xlu1 %2571  ;;  %3896 = vmatpush3.bf16.msra.mxu0 %v1787_v8  ;;  %v1611_v46 = vmul.f32 %v4277_v19, %v5321_v53 }
 0x4c8   : > { %v4281_v49 = vpop.eup %4280  ;;  %v2594_v10 = vsub.f32 %v5367_v14, %v2572_v0  ;;  %3931 = vmatprep.subr.bf16.mxu0 %v5711_v3  ;;  %v1613_v41 = vmul.f32 %v4279_v35, %v5304_v38 }
 0x4c9   : > { %v2575_v33 = vpop.xlane.xlu0 %2574  ;;  %v1612_v63 = vmul.f32 %v4281_v49, %v5327_v54  ;;  %v4283_v15 = vpop.eup %4282 }
 0x4ca   : > { %v2622_v47 = vmul.f32 1.442695, %v2594_v10  ;;  %v2595_v29 = vsub.f32 %v5379_v23, %v2575_v33  ;;  %v4285_v5 = vpop.eup %4284  ;;  %v1624_v7 = vpack.c.bf16 %v1614_v34, %v1613_v41  ;;  %v6330_v33 = vld [vmem:[#allocation11_spill] sm:$0xff] }
 0x4cb   : > { %v1188_v11 = vpop.xlane.xlu1 %1187  ;;  %v1623_v21 = vpack.c.bf16 %v1612_v63, %v1611_v46  ;;  %v1245_v19 = vmul.f32 %v4285_v5, %v6329_v40  ;;  %v1244_v46 = vmul.f32 %v4283_v15, %v6330_v33  ;;  %v3649_v5 = vld [vmem:[%s6196_s3 + $0x78] sm:$0xff] }
 0x4cc   : > { %4294 = vpow2.f32 %v2622_v47  ;;  %v2624_v14 = vmul.f32 1.442695, %v2595_v29  ;;  %v4287_v42 = vpop.eup %4286 }
 0x4cd   : > { %4296 = vrcp.f32 %v1188_v11  ;;  %3883 = vmatprep.mubr.msk.bf16.mxu0 %vm1083_vm3, %v1623_v21  ;;  %v1191_v45 = vpop.xlane.xlu0 %1190  ;;  %v1618_v36 = vmul.f32 %v4287_v42, %v5347_v52  ;;  %v3648_v21 = vld [vmem:[%s6196_s3 + $0x70] sm:$0xff] }
 0x4ce   : > { %v4289_v53 = vpop.eup %4288  ;;  %4298 = vpow2.f32 %v2624_v14  ;;  %3884 = vmatmul.mubr.msk.bf16.gmra.mrb[28].mxu0 %vm1083_vm3, %v1624_v7 }
 0x4cf   : > { %v4291_v54 = vpop.eup %4290  ;;  %4300 = vrcp.f32 %v1191_v45  ;;  %v2578_v23 = vpop.xlane.xlu1 %2577  ;;  %v1615_v8 = vmul.f32 %v4289_v53, %v5361_v31  ;;  %v1260_v31 = vpack.c.bf16 %v1245_v19, %v1244_v46  ;;  %v2234_v53 = vpack.c.bf16 %v3649_v5, %v3648_v21 }
 0x4d0   : > { %v4293_v38 = vpop.eup %4292  ;;  %v2596_v18 = vsub.f32 %v5413_v61, %v2578_v23  ;;  %v1617_v49 = vmul.f32 %v4291_v54, %v5339_v17  ;;  %v3650_v23 = vld [vmem:[%s6196_s3 + $0x80] sm:$0xff] }
 0x4d1   : > { %v2581_v43 = vpop.xlane.xlu0 %2580  ;;  %v1616_v58 = vmul.f32 %v4293_v38, %v5373_v16  ;;  %v3651_v38 = vld [vmem:[%s6196_s3 + $0x88] sm:$0x3] }
 0x4d2   : > { %v2626_v35 = vmul.f32 1.442695, %v2596_v18  ;;  %v2597_v0 = vsub.f32 %v5421_v44, %v2581_v43  ;;  %v1626_v63 = vpack.c.bf16 %v1618_v36, %v1617_v49 }
 0x4d3   : > { %v1194_v10 = vpop.xlane.xlu1 %1193  ;;  %v1625_v34 = vpack.c.bf16 %v1616_v58, %v1615_v8  ;;  %v2235_v8 = vpack.c.bf16 %v3651_v38, %v3650_v23 }
 0x4d4   : > { %4302 = vpow2.f32 %v2626_v35  ;;  %v2628_v61 = vmul.f32 1.442695, %v2597_v0  ;;  %v3668_v35 = vld [vmem:[%s6196_s3 + $0x90] sm:$0xff]  ;;  %v3669_v0 = vld [vmem:[%s6196_s3 + $0x98] sm:$0xff] }
 0x4d5   : > { %4304 = vrcp.f32 %v1194_v10  ;;  %3887 = vmatprep.mubr.msk.bf16.mxu0 %vm1083_vm3, %v1625_v34  ;;  %v1197_v52 = vpop.xlane.xlu0 %1196 }
 0x4d6   : > { %v5733_v16 = vpop.eup %4294  ;;  %4306 = vpow2.f32 %v2628_v61  ;;  %3888 = vmatmul.mubr.msk.bf16.gmra.mrb[32].mxu0 %vm1083_vm3, %v1626_v63  ;;  %v2261_v61 = vsel %vm1661_vm4, %v2235_v8, 0  ;;  %v5777_v63 = vpack.c.bf16 %v3669_v0, %v3668_v35 }
 0x4d7   : > { %v4297_v44 = vpop.eup %4296  ;;  %4308 = vrcp.f32 %v1197_v52  ;;  %v1200_v17 = vpop.xlane.xlu1 %1199  ;;  %3897 = vmatprep.mubr.msk.bf16.mxu0 %vm1083_vm3, %v1260_v31  ;;  %v2666_v47 = vsel %vm1083_vm3, %v5733_v16, 0.0 }
 0x4d8   : > { %v5739_v29 = vpop.eup %4298  ;;  %4310 = vrcp.f32 %v1200_v17  ;;  %2667 = vadd.xlane.f32.xlu1 %v2666_v47  ;;  %v1246_v14 = vmul.f32 %v4297_v44, %v5397_v60 }
 0x4d9   : > { %v4301_v41 = vpop.eup %4300  ;;  %v1203_v15 = vpop.xlane.xlu0 %1202  ;;  %v2669_v11 = vsel %vm1083_vm3, %v5739_v29, 0.0 }
 0x4da   : > { %v1247_v7 = vmul.f32 %v4301_v41, %v5407_v27  ;;  %4312 = vrcp.f32 %v1203_v15  ;;  %2670 = vadd.xlane.f32.xlu0 %v2669_v11 }
 0x4db   : > { %v1206_v42 = vpop.xlane.xlu1 %1205 }
 0x4dc   : > { %v1261_v45 = vpack.c.bf16 %v1247_v7, %v1246_v14  ;;  %4314 = vrcp.f32 %v1206_v42 }
 0x4dd   : > { %v1209_v54 = vpop.xlane.xlu0 %1208 }
 0x4de   : > { %v5757_v18 = vpop.eup %4302  ;;  %4316 = vrcp.f32 %v1209_v54  ;;  %3898 = vmatmul.mubr.msk.bf16.vlgmr.msra.gmra.mrb[20].mxu0 %vm1083_vm3, %v1261_v45 }
 0x4df   : > { %v4305_v60 = vpop.eup %4304  ;;  %v1212_v27 = vpop.xlane.xlu1 %1211  ;;  %v2672_v36 = vsel %vm1083_vm3, %v5757_v18, 0.0  ;;  %3932 = vmatpush3.bf16.msra.mxu0 %v5711_v3 }
 0x4e0   : > { %v5763_v43 = vpop.eup %4306  ;;  %4318 = vrcp.f32 %v1212_v27  ;;  %2673 = vadd.xlane.f32.xlu1 %v2672_v36  ;;  %3933 = vmatprep.subr.bf16.mxu0 %v2234_v53  ;;  %v1248_v49 = vmul.f32 %v4305_v60, %v5433_v59 }
 0x4e1   : > { %v4309_v58 = vpop.eup %4308  ;;  %v1215_v40 = vpop.xlane.xlu0 %1214  ;;  %v2675_v19 = vsel %vm1083_vm3, %v5763_v43, 0.0 }
 0x4e2   : > { %v4311_v3 = vpop.eup %4310  ;;  %4320 = vrcp.f32 %v1215_v40  ;;  %2676 = vadd.xlane.f32.xlu0 %v2675_v19  ;;  %v1249_v10 = vmul.f32 %v4309_v58, %v5439_v2 }
 0x4e3   : > { %v1218_v34 = vpop.xlane.xlu1 %1217  ;;  %3934 = vmatpush3.bf16.msra.mxu0 %v2234_v53  ;;  %v1250_v31 = vmul.f32 %v4311_v3, %v5447_v28 }
 0x4e4   : > { %v4313_v33 = vpop.eup %4312  ;;  %4322 = vrcp.f32 %v1218_v34  ;;  %v1262_v46 = vpack.c.bf16 %v1249_v10, %v1248_v49  ;;  %4089 = vmatprep.subr.msk.bf16.mxu0 %vm1661_vm4, %v2235_v8 }
 0x4e5   : > { %v1221_v52 = vpop.xlane.xlu0 %1220  ;;  %v1251_v44 = vmul.f32 %v4313_v33, %v5455_v30  ;;  %v3671_v33 = vld [vmem:[%s6196_s3 + $0xa8] sm:$0xff] }
 0x4e6   : > { %v4315_v17 = vpop.eup %4314  ;;  %3901 = vmatprep.mubr.msk.bf16.mxu0 %vm1083_vm3, %v1262_v46  ;;  %4324 = vrcp.f32 %v1221_v52  ;;  %v6331_v46 = vld [vmem:[#allocation33_spill] sm:$0xff]  ;;  %v6332_v52 = vld [vmem:[#allocation2_spill] sm:$0xff] }
 0x4e7   : > { %v1224_v59 = vpop.xlane.xlu1 %1223  ;;  %v1263_v2 = vpack.c.bf16 %v1251_v44, %v1250_v31  ;;  %3936 = vmatpush3.bf16.msra.mxu0 %v2261_v61  ;;  %v1252_v15 = vmul.f32 %v4315_v17, %v5461_v48 }
 0x4e8   : > { %v4317_v47 = vpop.eup %4316  ;;  %4326 = vrcp.f32 %v1224_v59  ;;  %3971 = vmatprep.subr.bf16.mxu0 %v5777_v63 }
 0x4e9   : > { %3902 = vmatmul.mubr.msk.bf16.gmra.mrb[24].mxu0 %vm1083_vm3, %v1263_v2  ;;  %v1227_v41 = vpop.xlane.xlu0 %1226  ;;  %v1253_v28 = vmul.f32 %v4317_v47, %v5469_v62  ;;  %v3672_v47 = vld [vmem:[%s6196_s3 + $0xb0] sm:$0xff] }
 0x4ea   : > { %v4319_v11 = vpop.eup %4318  ;;  %4328 = vrcp.f32 %v1227_v41  ;;  %v3673_v41 = vld [vmem:[%s6196_s3 + $0xb8] sm:$0x3] }
 0x4eb   : > { %v2140_v30 = vpop.xlane.xlu1 %2139  ;;  %v1264_v21 = vpack.c.bf16 %v1253_v28, %v1252_v15  ;;  %v1254_v7 = vmul.f32 %v4319_v11, %v5477_v37  ;;  %v6333_v28 = vld [vmem:[#allocation4_spill] sm:$0xff] }
 0x4ec   : > { %v4321_v5 = vpop.eup %4320  ;;  %4330 = vrcp.f32 %v2140_v30 }
 0x4ed   : > { %3905 = vmatprep.mubr.msk.bf16.mxu0 %vm1083_vm3, %v1264_v21  ;;  %v2143_v14 = vpop.xlane.xlu0 %2142  ;;  %v1255_v42 = vmul.f32 %v4321_v5, %v5483_v26 }
 0x4ee   : > { %v4323_v45 = vpop.eup %4322  ;;  %4332 = vrcp.f32 %v2143_v14 }
 0x4ef   : > { %v2146_v53 = vpop.xlane.xlu1 %2145  ;;  %v1265_v54 = vpack.c.bf16 %v1255_v42, %v1254_v7  ;;  %v1256_v23 = vmul.f32 %v4323_v45, %v5499_v56  ;;  %v2727_v7 = vpack.c.bf16 %v3673_v41, %v3672_v47 }
 0x4f0   : > { %v4325_v48 = vpop.eup %4324  ;;  %4334 = vrcp.f32 %v2146_v53 }
 0x4f1   : > { %3906 = vmatmul.mubr.msk.bf16.gmra.mrb[28].mxu0 %vm1083_vm3, %v1265_v54  ;;  %v2149_v62 = vpop.xlane.xlu0 %2148  ;;  %v1257_v38 = vmul.f32 %v4325_v48, %v5508_v50  ;;  %v6334_v54 = vld [vmem:[#allocation6_spill] sm:$0xff] }
 0x4f2   : > { %v4327_v60 = vpop.eup %4326  ;;  %4336 = vrcp.f32 %v2149_v62 }
 0x4f3   : > { %v2152_v27 = vpop.xlane.xlu1 %2151  ;;  %v1266_v36 = vpack.c.bf16 %v1257_v38, %v1256_v23  ;;  %v1258_v8 = vmul.f32 %v4327_v60, %v5514_v55 }
 0x4f4   : > { %v4329_v37 = vpop.eup %4328  ;;  %4338 = vrcp.f32 %v2152_v27  ;;  %v6335_v27 = vld [vmem:[#allocation3_spill] sm:$0xff] }
 0x4f5   : > { %3909 = vmatprep.mubr.msk.bf16.mxu0 %vm1083_vm3, %v1266_v36  ;;  %v2155_v26 = vpop.xlane.xlu0 %2154  ;;  %v1259_v58 = vmul.f32 %v4329_v37, %v5522_v13  ;;  %v3670_v13 = vld [vmem:[%s6196_s3 + $0xa0] sm:$0xff]  ;;  %v6336_v37 = vld [vmem:[#allocation5_spill] sm:$0xff] }
 0x4f6   : > { %v4331_v40 = vpop.eup %4330  ;;  %4340 = vrcp.f32 %v2155_v26  ;;  %v2726_v59 = vpack.c.bf16 %v3671_v33, %v3670_v13 }
 0x4f7   : > { %v2158_v19 = vpop.xlane.xlu1 %2157  ;;  %v1267_v35 = vpack.c.bf16 %v1259_v58, %v1258_v8  ;;  %v2202_v0 = vmul.f32 %v4331_v40, %v5530_v1 }
 0x4f8   : > { %v4333_v56 = vpop.eup %4332  ;;  %4342 = vrcp.f32 %v2158_v19 }
 0x4f9   : > { %3910 = vmatmul.mubr.msk.bf16.gmra.mrb[32].mxu0 %vm1083_vm3, %v1267_v35  ;;  %v2161_v50 = vpop.xlane.xlu0 %2160  ;;  %v2203_v3 = vmul.f32 %v4333_v56, %v5536_v6  ;;  %v6337_v56 = vld [vmem:[#allocation8_spill] sm:$0xff] }
 0x4fa   : > { %v4335_v49 = vpop.eup %4334  ;;  %4344 = vrcp.f32 %v2161_v50 }
 0x4fb   : > { %v2164_v10 = vpop.xlane.xlu1 %2163  ;;  %v2218_v34 = vpack.c.bf16 %v2203_v3, %v2202_v0  ;;  %v2204_v61 = vmul.f32 %v4335_v49, %v6331_v46 }
 0x4fc   : > { %v4337_v55 = vpop.eup %4336  ;;  %4346 = vrcp.f32 %v2164_v10 }
 0x4fd   : > { %v2205_v1 = vmul.f32 %v4337_v55, %v6332_v52  ;;  %3937 = vmatprep.mubr.msk.bf16.mxu0 %vm1083_vm3, %v2218_v34  ;;  %v2167_v6 = vpop.xlane.xlu0 %2166  ;;  %v6338_v55 = vld [vmem:[#allocation10_spill] sm:$0xff] }
 0x4fe   : > { %v4339_v31 = vpop.eup %4338  ;;  %4348 = vrcp.f32 %v2167_v6 }
 0x4ff   : > { %v2219_v44 = vpack.c.bf16 %v2205_v1, %v2204_v61  ;;  %v2170_v17 = vpop.xlane.xlu1 %2169  ;;  %v2206_v11 = vmul.f32 %v4339_v31, %v6333_v28 }
 0x500   : > { %v4341_v2 = vpop.eup %4340  ;;  %4350 = vrcp.f32 %v2170_v17 }
 0x501   : > { %3938 = vmatmul.mubr.msk.bf16.vlgmr.msra.gmra.mrb[20].mxu0 %vm1083_vm3, %v2219_v44  ;;  %v2173_v15 = vpop.xlane.xlu0 %2172  ;;  %v2207_v30 = vmul.f32 %v4341_v2, %v5562_v57 }
 0x502   : > { %v4343_v21 = vpop.eup %4342  ;;  %4352 = vrcp.f32 %v2173_v15  ;;  %3972 = vmatpush3.bf16.msra.mxu0 %v5777_v63  ;;  %v2753_v63 = vsel %vm1661_vm4, %v2727_v7, 0 }
 0x503   : > { %v2176_v5 = vpop.xlane.xlu1 %2175  ;;  %v2220_v14 = vpack.c.bf16 %v2207_v30, %v2206_v11  ;;  %3973 = vmatprep.subr.bf16.mxu0 %v2726_v59  ;;  %v2208_v53 = vmul.f32 %v4343_v21, %v5570_v12 }
 0x504   : > { %v4345_v42 = vpop.eup %4344  ;;  %4354 = vrcp.f32 %v2176_v5 }
 0x505   : > { %3941 = vmatprep.mubr.msk.bf16.mxu0 %vm1083_vm3, %v2220_v14  ;;  %v2179_v45 = vpop.xlane.xlu0 %2178  ;;  %v2209_v48 = vmul.f32 %v4345_v42, %v6334_v54 }
 0x506   : > { %v4347_v62 = vpop.eup %4346  ;;  %4356 = vrcp.f32 %v2179_v45  ;;  %3974 = vmatpush3.bf16.msra.mxu0 %v2726_v59  ;;  %v6339_v45 = vld [vmem:[#allocation7_spill] sm:$0xff] }
 0x507   : > { %v2182_v57 = vpop.xlane.xlu1 %2181  ;;  %v2221_v23 = vpack.c.bf16 %v2209_v48, %v2208_v53  ;;  %4091 = vmatprep.subr.msk.bf16.mxu0 %vm1661_vm4, %v2727_v7  ;;  %v2210_v36 = vmul.f32 %v4347_v62, %v6335_v27  ;;  %v6340_v48 = vld [vmem:[#allocation9_spill] sm:$0xff]  ;;  %v6342_v27 = vld [vmem:[#allocation16_spill] sm:$0xff] }
 0x508   : > { %v4349_v38 = vpop.eup %4348  ;;  %4358 = vrcp.f32 %v2182_v57  ;;  %v6341_v57 = vld [vmem:[#allocation15_spill] sm:$0xff] }
 0x509   : > { %3942 = vmatmul.mubr.msk.bf16.gmra.mrb[24].mxu0 %vm1083_vm3, %v2221_v23  ;;  %v2185_v60 = vpop.xlane.xlu0 %2184  ;;  %v2211_v12 = vmul.f32 %v4349_v38, %v6336_v37 }
 0x50a   : > { %v4351_v26 = vpop.eup %4350  ;;  %4360 = vrcp.f32 %v2185_v60  ;;  %3976 = vmatpush3.bf16.msra.mxu0 %v2753_v63 }
 0x50b   : > { %v2632_v8 = vpop.xlane.xlu1 %2631  ;;  %v2222_v58 = vpack.c.bf16 %v2211_v12, %v2210_v36  ;;  %v2212_v35 = vmul.f32 %v4351_v26, %v5592_v39 }
 0x50c   : > { %v4353_v40 = vpop.eup %4352  ;;  %4362 = vrcp.f32 %v2632_v8 }
 0x50d   : > { %3945 = vmatprep.mubr.msk.bf16.mxu0 %vm1083_vm3, %v2222_v58  ;;  %v2635_v19 = vpop.xlane.xlu0 %2634  ;;  %v2213_v50 = vmul.f32 %v4353_v40, %v6337_v56  ;;  %v6344_v58 = vld [vmem:[#allocation14_spill] sm:$0xff] }
 0x50e   : > { %v4355_v0 = vpop.eup %4354  ;;  %4364 = vrcp.f32 %v2635_v19  ;;  %v6345_v19 = vld [vmem:[#allocation19_spill] sm:$0xff] }
 0x50f   : > { %v2638_v3 = vpop.xlane.xlu1 %2637  ;;  %v2223_v49 = vpack.c.bf16 %v2213_v50, %v2212_v35  ;;  %v2214_v13 = vmul.f32 %v4355_v0, %v6338_v55 }
 0x510   : > { %v4357_v10 = vpop.eup %4356  ;;  %4366 = vrcp.f32 %v2638_v3 }
 0x511   : > { %3946 = vmatmul.mubr.msk.bf16.gmra.mrb[28].mxu0 %vm1083_vm3, %v2223_v49  ;;  %v2641_v34 = vpop.xlane.xlu0 %2640  ;;  %v2215_v33 = vmul.f32 %v4357_v10, %v5608_v25 }
 0x512   : > { %v4359_v46 = vpop.eup %4358  ;;  %4368 = vrcp.f32 %v2641_v34 }
 0x513   : > { %v2644_v61 = vpop.xlane.xlu1 %2643  ;;  %v2224_v52 = vpack.c.bf16 %v2215_v33, %v2214_v13  ;;  %v2216_v6 = vmul.f32 %v4359_v46, %v5614_v20 }
 0x514   : > { %v4361_v39 = vpop.eup %4360  ;;  %4370 = vrcp.f32 %v2644_v61 }
 0x515   : > { %3949 = vmatprep.mubr.msk.bf16.mxu0 %vm1083_vm3, %v2224_v52  ;;  %v2647_v1 = vpop.xlane.xlu0 %2646  ;;  %v2217_v31 = vmul.f32 %v4361_v39, %v5620_v22 }
 0x516   : > { %v4363_v44 = vpop.eup %4362  ;;  %4372 = vrcp.f32 %v2647_v1 }
 0x517   : > { %v2650_v17 = vpop.xlane.xlu1 %2649  ;;  %v2225_v59 = vpack.c.bf16 %v2217_v31, %v2216_v6  ;;  %v2694_v47 = vmul.f32 %v4363_v44, %v5625_v51  ;;  %v4458_v31 = vld [vmem:[%s4565_s27 + $0x10] sm:$0xff] }
 0x518   : > { %v4365_v2 = vpop.eup %4364  ;;  %4374 = vrcp.f32 %v2650_v17  ;;  %v4459_v17 = vld [vmem:[%s4565_s27] sm:$0xff] }
 0x519   : > { %3950 = vmatmul.mubr.msk.bf16.gmra.mrb[32].mxu0 %vm1083_vm3, %v2225_v59  ;;  %v2653_v25 = vpop.xlane.xlu0 %2652  ;;  %v2695_v41 = vmul.f32 %v4365_v2, %v5630_v9 }
 0x51a   : > { %v4367_v15 = vpop.eup %4366  ;;  %4376 = vrcp.f32 %v2653_v25 }
 0x51b   : > { %v2656_v28 = vpop.xlane.xlu1 %2655  ;;  %v2710_v11 = vpack.c.bf16 %v2695_v41, %v2694_v47  ;;  %v2696_v22 = vmul.f32 %v4367_v15, %v5635_v24  ;;  %v4461_v41 = vld [vmem:[%s4565_s27 + $0x8] sm:$0xff] }
 0x51c   : > { %v4369_v20 = vpop.eup %4368  ;;  %4378 = vrcp.f32 %v2656_v28 }
 0x51d   : > { %v2697_v30 = vmul.f32 %v4369_v20, %v5640_v32  ;;  %3977 = vmatprep.mubr.msk.bf16.mxu0 %vm1083_vm3, %v2710_v11  ;;  %v2659_v21 = vpop.xlane.xlu0 %2658 }
 0x51e   : > { %v4371_v5 = vpop.eup %4370  ;;  %4380 = vrcp.f32 %v2659_v21 }
 0x51f   : > { %v2711_v14 = vpack.c.bf16 %v2697_v30, %v2696_v22  ;;  %v2662_v7 = vpop.xlane.xlu1 %2661  ;;  %v2698_v42 = vmul.f32 %v4371_v5, %v5644_v4  ;;  %v6343_v4 = vld [vmem:[#allocation13_spill] sm:$0xff] }
 0x520   : > { %v4373_v51 = vpop.eup %4372  ;;  %4382 = vrcp.f32 %v2662_v7 }
 0x521   : > { %3978 = vmatmul.mubr.msk.bf16.vlgmr.msra.gmra.mrb[20].mxu0 %vm1083_vm3, %v2711_v14  ;;  %v2665_v9 = vpop.xlane.xlu0 %2664  ;;  %v2699_v53 = vmul.f32 %v4373_v51, %v6339_v45  ;;  %v4462_v14 = vld [vmem:[%s4565_s27 + $0x30] sm:$0xff]  ;;  %v4463_v51 = vld [vmem:[%s4565_s27 + $0x20] sm:$0xff] }
 0x522   : > { %v4375_v54 = vpop.eup %4374  ;;  %4384 = vrcp.f32 %v2665_v9 }
 0x523   : > { %v2712_v24 = vpack.c.bf16 %v2699_v53, %v2698_v42  ;;  %v2700_v62 = vmul.f32 %v4375_v54, %v6340_v48  ;;  %v4465_v48 = vld [vmem:[%s4565_s27 + $0x28] sm:$0xff] }
 0x524   : > { %v4377_v32 = vpop.eup %4376 }
 0x525   : > { %3981 = vmatprep.mubr.msk.bf16.mxu0 %vm1083_vm3, %v2712_v24  ;;  %v2701_v23 = vmul.f32 %v4377_v32, %v6341_v57  ;;  %v4464_v24 = vld [vmem:[%s4565_s27 + $0x38] sm:$0xff] }
 0x526   : > { %v4379_v63 = vpop.eup %4378 }
 0x527   : > { %v2713_v38 = vpack.c.bf16 %v2701_v23, %v2700_v62  ;;  %v2702_v36 = vmul.f32 %v4379_v63, %v6342_v27 }
 0x528   : > { %v4381_v60 = vpop.eup %4380 }
 0x529   : > { %3982 = vmatmul.mubr.msk.bf16.gmra.mrb[24].mxu0 %vm1083_vm3, %v2713_v38  ;;  %v2703_v37 = vmul.f32 %v4381_v60, %v6343_v4 }
 0x52a   : > { %v4383_v12 = vpop.eup %4382 }
 0x52b   : > { %v2714_v26 = vpack.c.bf16 %v2703_v37, %v2702_v36  ;;  %v2704_v40 = vmul.f32 %v4383_v12, %v6344_v58  ;;  %v4466_v37 = vld [vmem:[%s4565_s27 + $0x50] sm:$0xff] }
 0x52c   : > { %v4385_v8 = vpop.eup %4384 }
 0x52d   : > { %3985 = vmatprep.mubr.msk.bf16.mxu0 %vm1083_vm3, %v2714_v26  ;;  %v2705_v35 = vmul.f32 %v4385_v8, %v6345_v19  ;;  %v4467_v26 = vld [vmem:[%s4565_s27 + $0x40] sm:$0xff] }
 0x52f   : > { %v2715_v56 = vpack.c.bf16 %v2705_v35, %v2704_v40 }
 0x531   : > { %3986 = vmatmul.mubr.msk.bf16.gmra.mrb[28].mxu0 %vm1083_vm3, %v2715_v56  ;;  %v4468_v56 = vld [vmem:[%s4565_s27 + $0x58] sm:$0xff] }
 0x565   : > { %v2668_v50 = vpop.xlane.xlu1 %2667 }
 0x566   : > { %4386 = vrcp.f32 %v2668_v50 }
 0x567   : > { %v2671_v0 = vpop.xlane.xlu0 %2670 }
 0x568   : > { %4388 = vrcp.f32 %v2671_v0  ;;  %v4469_v0 = vld [vmem:[%s4565_s27 + $0x48] sm:$0xff] }
 0x56d   : > { %v2674_v3 = vpop.xlane.xlu1 %2673 }
 0x56e   : > { %4390 = vrcp.f32 %v2674_v3 }
 0x56f   : > { %v2677_v49 = vpop.xlane.xlu0 %2676 }
 0x570   : > { %v4387_v10 = vpop.eup %4386  ;;  %4392 = vrcp.f32 %v2677_v49 }
 0x571   : > { %v2706_v55 = vmul.f32 %v4387_v10, %v5733_v16  ;;  %v5862_v16 = vld [vmem:[%s6200_s7] ss:$0 sm:$0xff] }
 0x572   : > { %v4389_v34 = vpop.eup %4388 }
 0x573   : > { %v2707_v13 = vmul.f32 %v4389_v34, %v5739_v29 }
 0x575   : > { %v2716_v33 = vpack.c.bf16 %v2707_v13, %v2706_v55 }
 0x577   : > { %3989 = vmatprep.mubr.msk.bf16.mxu0 %vm1083_vm3, %v2716_v33 }
 0x578   : > { %v4391_v46 = vpop.eup %4390 }
 0x579   : > { %v2708_v52 = vmul.f32 %v4391_v46, %v5757_v18 }
 0x57a   : > { %v4393_v61 = vpop.eup %4392 }
 0x57b   : > { %v2709_v39 = vmul.f32 %v4393_v61, %v5763_v43  ;;  %v4460_v43 = vld [vmem:[%s4565_s27 + $0x18] sm:$0xff] }
 0x57d   : > { %v2717_v1 = vpack.c.bf16 %v2709_v39, %v2708_v52 }
 0x57f   : > { %3990 = vmatmul.mubr.msk.bf16.gmra.mrb[32].mxu0 %vm1083_vm3, %v2717_v1  ;;  %v4470_v1 = vld [vmem:[%s4565_s27 + $0x70] sm:$0xff] }
 0x5f4   : > { %v3979_v6 = vpop.f32.mrb[20].mxu0 }
 0x5f5   : > { %v2789_v29 = vpop.f32.mrb[21].mxu0  ;;  %v2870_v44 = vadd.f32 %v4458_v31, %v3979_v6 }
 0x5f6   : > { %v2868_v59 = vadd.f32 %v4459_v17, %v2789_v29  ;;  %v3980_v2 = vpop.f32.mrb[22].mxu0  ;;  %v4471_v29 = vld [vmem:[%s4565_s27 + $0x60] sm:$0xff] }
 0x5f7   : > { %v2792_v18 = vpop.f32.mrb[23].mxu0  ;;  %v2871_v47 = vadd.f32 %v4460_v43, %v3980_v2  ;;  %v5872_v28 = vadd.f32 %v5862_v16, %v2870_v44  ;;  %v4472_v2 = vld [vmem:[%s4565_s27 + $0x78] sm:$0xff]  ;;  %v4473_v43 = vld [vmem:[%s4565_s27 + $0x68] sm:$0xff] }
 0x5f8   : > { %v5867_v25 = vadd.f32 %v5862_v16, %v2868_v59  ;;  %v2869_v15 = vadd.f32 %v4461_v41, %v2792_v18 }
 0x5f9   : > { %v5880_v22 = vadd.f32 %v5862_v16, %v2871_v47  ;;  %v2913_v45 = vsel %vm456_vm0, %v5872_v28, 0.0 }
 0x5fa   : > { %v5875_v11 = vadd.f32 %v5862_v16, %v2869_v15  ;;  %v2907_v20 = vsel %vm456_vm0, %v5867_v25, 0.0 }
 0x5fb   : > { %2908 = vadd.xlane.f32.xlu1 %v2907_v20  ;;  %v2916_v57 = vsel %vm456_vm0, %v5880_v22, 0.0 }
 0x5fc   : > { %v3983_v30 = vpop.f32.mrb[24].mxu0  ;;  %v2910_v21 = vsel %vm456_vm0, %v5875_v11, 0.0 }
 0x5fd   : > { %2911 = vadd.xlane.f32.xlu0 %v2910_v21  ;;  %v2805_v5 = vpop.f32.mrb[25].mxu0  ;;  %v2874_v7 = vadd.f32 %v4462_v14, %v3983_v30 }
 0x5fe   : > { %v2872_v9 = vadd.f32 %v4463_v51, %v2805_v5  ;;  %v3984_v42 = vpop.f32.mrb[26].mxu0 }
 0x5ff   : > { %2914 = vadd.xlane.f32.xlu1 %v2913_v45  ;;  %v2808_v53 = vpop.f32.mrb[27].mxu0  ;;  %v2875_v32 = vadd.f32 %v4464_v24, %v3984_v42  ;;  %v5896_v23 = vadd.f32 %v5862_v16, %v2874_v7 }
 0x600   : > { %v5889_v54 = vadd.f32 %v5862_v16, %v2872_v9  ;;  %v2873_v62 = vadd.f32 %v4465_v48, %v2808_v53 }
 0x601   : > { %2917 = vadd.xlane.f32.xlu0 %v2916_v57  ;;  %v5904_v60 = vadd.f32 %v5862_v16, %v2875_v32  ;;  %v2925_v40 = vsel %vm456_vm0, %v5896_v23, 0.0 }
 0x602   : > { %v5899_v63 = vadd.f32 %v5862_v16, %v2873_v62  ;;  %v2919_v38 = vsel %vm456_vm0, %v5889_v54, 0.0 }
 0x603   : > { %2920 = vadd.xlane.f32.xlu1 %v2919_v38  ;;  %v2928_v49 = vsel %vm456_vm0, %v5904_v60, 0.0 }
 0x604   : > { %v3987_v27 = vpop.f32.mrb[28].mxu0  ;;  %v2922_v36 = vsel %vm456_vm0, %v5899_v63, 0.0 }
 0x605   : > { %2923 = vadd.xlane.f32.xlu0 %v2922_v36  ;;  %v2821_v4 = vpop.f32.mrb[29].mxu0  ;;  %v2878_v12 = vadd.f32 %v4466_v37, %v3987_v27 }
 0x606   : > { %v2876_v8 = vadd.f32 %v4467_v26, %v2821_v4  ;;  %v3988_v58 = vpop.f32.mrb[30].mxu0 }
 0x607   : > { %2926 = vadd.xlane.f32.xlu1 %v2925_v40  ;;  %v2824_v19 = vpop.f32.mrb[31].mxu0  ;;  %v2879_v50 = vadd.f32 %v4468_v56, %v3988_v58  ;;  %v5920_v10 = vadd.f32 %v5862_v16, %v2878_v12 }
 0x608   : > { %v5913_v35 = vadd.f32 %v5862_v16, %v2876_v8  ;;  %v2877_v3 = vadd.f32 %v4469_v0, %v2824_v19 }
 0x609   : > { %2929 = vadd.xlane.f32.xlu0 %v2928_v49  ;;  %v5928_v13 = vadd.f32 %v5862_v16, %v2879_v50  ;;  %v2937_v46 = vsel %vm456_vm0, %v5920_v10, 0.0 }
 0x60a   : > { %v5923_v34 = vadd.f32 %v5862_v16, %v2877_v3  ;;  %v2931_v55 = vsel %vm456_vm0, %v5913_v35, 0.0 }
 0x60b   : > { %2932 = vadd.xlane.f32.xlu1 %v2931_v55  ;;  %v2940_v61 = vsel %vm456_vm0, %v5928_v13, 0.0 }
 0x60c   : > { %v2934_v33 = vsel %vm456_vm0, %v5923_v34, 0.0 }
 0x60d   : > { %2935 = vadd.xlane.f32.xlu0 %v2934_v33 }
 0x60f   : > { %2938 = vadd.xlane.f32.xlu1 %v2937_v46 }
 0x611   : > { %2941 = vadd.xlane.f32.xlu0 %v2940_v61 }
 0x652   : > { %v3991_v52 = vpop.f32.mrb[32].mxu0 }
 0x653   : > { %v2837_v39 = vpop.f32.mrb[33].mxu0  ;;  %v2882_v6 = vadd.f32 %v4470_v1, %v3991_v52 }
 0x654   : > { %v2880_v31 = vadd.f32 %v4471_v29, %v2837_v39  ;;  %v3992_v44 = vpop.f32.mrb[34].mxu0 }
 0x655   : > { %v2840_v17 = vpop.f32.mrb[35].mxu0  ;;  %v2883_v18 = vadd.f32 %v4472_v2, %v3992_v44  ;;  %v5944_v41 = vadd.f32 %v5862_v16, %v2882_v6 }
 0x656   : > { %v5939_v59 = vadd.f32 %v5862_v16, %v2880_v31  ;;  %v2881_v47 = vadd.f32 %v4473_v43, %v2840_v17 }
 0x657   : > { %v5952_v30 = vadd.f32 %v5862_v16, %v2883_v18  ;;  %v2949_v5 = vsel %vm456_vm0, %v5944_v41, 0.0 }
 0x658   : > { %v5947_v15 = vadd.f32 %v5862_v16, %v2881_v47  ;;  %v2943_v20 = vsel %vm456_vm0, %v5939_v59, 0.0 }
 0x659   : > { %2944 = vadd.xlane.f32.xlu1 %v2943_v20  ;;  %v2952_v14 = vsel %vm456_vm0, %v5952_v30, 0.0 }
 0x65a   : > { %v2946_v21 = vsel %vm456_vm0, %v5947_v15, 0.0 }
 0x65b   : > { %2947 = vadd.xlane.f32.xlu0 %v2946_v21 }
 0x65d   : > { %2950 = vadd.xlane.f32.xlu1 %v2949_v5 }
 0x65f   : > { %2953 = vadd.xlane.f32.xlu0 %v2952_v14 }
 0x688   : > { %v2909_v7 = vpop.xlane.xlu1 %2908 }
 0x689   : > { %v2955_v51 = vmul.f32 0.03125, %v2909_v7 }
 0x68a   : > { %v2912_v9 = vpop.xlane.xlu0 %2911 }
 0x68b   : > { %v5961_v42 = vsub.f32 %v5867_v25, %v2955_v51  ;;  %v2956_v16 = vmul.f32 0.03125, %v2912_v9 }
 0x68c   : > { %v2915_v45 = vpop.xlane.xlu1 %2914 }
 0x68d   : > { %v5964_v53 = vsub.f32 %v5875_v11, %v2956_v16  ;;  %v2957_v24 = vmul.f32 0.03125, %v2915_v45  ;;  %v2987_v32 = vmul.f32 %v5961_v42, %v5961_v42 }
 0x68e   : > { %v2918_v48 = vpop.xlane.xlu0 %2917 }
 0x68f   : > { %v5969_v62 = vsub.f32 %v5872_v28, %v2957_v24  ;;  %v2958_v57 = vmul.f32 0.03125, %v2918_v48  ;;  %v3003_v38 = vsel %vm456_vm0, %v2987_v32, 0.0  ;;  %v2988_v27 = vmul.f32 %v5964_v53, %v5964_v53 }
 0x690   : > { %v2921_v36 = vpop.xlane.xlu1 %2920  ;;  %3004 = vadd.xlane.f32.xlu1 %v3003_v38 }
 0x691   : > { %v5975_v4 = vsub.f32 %v5880_v22, %v2958_v57  ;;  %v2959_v37 = vmul.f32 0.03125, %v2921_v36  ;;  %v3006_v12 = vsel %vm456_vm0, %v2988_v27, 0.0  ;;  %v2989_v26 = vmul.f32 %v5969_v62, %v5969_v62 }
 0x692   : > { %3007 = vadd.xlane.f32.xlu0 %v3006_v12  ;;  %v2924_v8 = vpop.xlane.xlu0 %2923  ;;  %v3116_v12 = vld [vmem:[%s6201_s8 + $0x8] sm:$0xff] }
 0x693   : > { %v5981_v58 = vsub.f32 %v5889_v54, %v2959_v37  ;;  %v2960_v40 = vmul.f32 0.03125, %v2924_v8  ;;  %v3009_v19 = vsel %vm456_vm0, %v2989_v26, 0.0  ;;  %v2990_v56 = vmul.f32 %v5975_v4, %v5975_v4  ;;  %v3115_v37 = vld [vmem:[%s6201_s8] sm:$0xff]  ;;  %v3117_v8 = vld [vmem:[%s6201_s8 + $0x10] sm:$0xff] }
 0x694   : > { %v2927_v50 = vpop.xlane.xlu1 %2926  ;;  %3010 = vadd.xlane.f32.xlu1 %v3009_v19  ;;  %v3127_v26 = vpack.c.bf16 %v3116_v12, %v3115_v37 }
 0x695   : > { %v5987_v0 = vsub.f32 %v5899_v63, %v2960_v40  ;;  %v2961_v3 = vmul.f32 0.03125, %v2927_v50  ;;  %v3012_v49 = vsel %vm456_vm0, %v2990_v56, 0.0  ;;  %v2991_v55 = vmul.f32 %v5981_v58, %v5981_v58  ;;  %v3118_v40 = vld [vmem:[%s6201_s8 + $0x18] sm:$0xff] }
 0x696   : > { %3013 = vadd.xlane.f32.xlu0 %v3012_v49  ;;  %v2930_v33 = vpop.xlane.xlu0 %2929  ;;  %3993 = vmatprep.subr.bf16.mxu1 %v3127_v26  ;;  %v3128_v19 = vpack.c.bf16 %v3118_v40, %v3117_v8 }
 0x697   : > { %v5993_v46 = vsub.f32 %v5896_v23, %v2961_v3  ;;  %v2962_v61 = vmul.f32 0.03125, %v2930_v33  ;;  %v3015_v52 = vsel %vm456_vm0, %v2991_v55, 0.0  ;;  %v2992_v39 = vmul.f32 %v5987_v0, %v5987_v0  ;;  %3994 = vmatpush3.bf16.msra.mxu1 %v3127_v26 }
 0x698   : > { %v2933_v1 = vpop.xlane.xlu1 %2932  ;;  %3016 = vadd.xlane.f32.xlu1 %v3015_v52  ;;  %3995 = vmatprep.subr.bf16.mxu1 %v3128_v19 }
 0x699   : > { %v5999_v6 = vsub.f32 %v5904_v60, %v2962_v61  ;;  %v2963_v29 = vmul.f32 0.03125, %v2933_v1  ;;  %v3018_v31 = vsel %vm456_vm0, %v2992_v39, 0.0  ;;  %v2993_v44 = vmul.f32 %v5993_v46, %v5993_v46 }
 0x69a   : > { %3019 = vadd.xlane.f32.xlu0 %v3018_v31  ;;  %v2936_v17 = vpop.xlane.xlu0 %2935 }
 0x69b   : > { %v6005_v2 = vsub.f32 %v5913_v35, %v2963_v29  ;;  %v2964_v18 = vmul.f32 0.03125, %v2936_v17  ;;  %v3021_v43 = vsel %vm456_vm0, %v2993_v44, 0.0  ;;  %v2994_v47 = vmul.f32 %v5999_v6, %v5999_v6  ;;  %3996 = vmatpush3.bf16.msra.mxu1 %v3128_v19 }
 0x69c   : > { %v2939_v20 = vpop.xlane.xlu1 %2938  ;;  %3022 = vadd.xlane.f32.xlu1 %v3021_v43 }
 0x69d   : > { %v6011_v21 = vsub.f32 %v5923_v34, %v2964_v18  ;;  %v2965_v5 = vmul.f32 0.03125, %v2939_v20  ;;  %v3024_v14 = vsel %vm456_vm0, %v2994_v47, 0.0  ;;  %v2995_v7 = vmul.f32 %v6005_v2, %v6005_v2 }
 0x69e   : > { %3025 = vadd.xlane.f32.xlu0 %v3024_v14  ;;  %v2942_v51 = vpop.xlane.xlu0 %2941 }
 0x69f   : > { %v6017_v9 = vsub.f32 %v5920_v10, %v2965_v5  ;;  %v2966_v16 = vmul.f32 0.03125, %v2942_v51  ;;  %v3027_v45 = vsel %vm456_vm0, %v2995_v7, 0.0  ;;  %v2996_v24 = vmul.f32 %v6011_v21, %v6011_v21 }
 0x6a0   : > { %3028 = vadd.xlane.f32.xlu1 %v3027_v45 }
 0x6a1   : > { %v6023_v32 = vsub.f32 %v5928_v13, %v2966_v16  ;;  %v3030_v48 = vsel %vm456_vm0, %v2996_v24, 0.0  ;;  %v2997_v57 = vmul.f32 %v6017_v9, %v6017_v9 }
 0x6a2   : > { %3031 = vadd.xlane.f32.xlu0 %v3030_v48 }
 0x6a3   : > { %v3033_v38 = vsel %vm456_vm0, %v2997_v57, 0.0  ;;  %v2998_v27 = vmul.f32 %v6023_v32, %v6023_v32 }
 0x6a4   : > { %3034 = vadd.xlane.f32.xlu1 %v3033_v38 }
 0x6a5   : > { %v3036_v36 = vsel %vm456_vm0, %v2998_v27, 0.0 }
 0x6a6   : > { %3037 = vadd.xlane.f32.xlu0 %v3036_v36 }
 0x6e6   : > { %v2945_v56 = vpop.xlane.xlu1 %2944 }
 0x6e7   : > { %v2967_v50 = vmul.f32 0.03125, %v2945_v56 }
 0x6e8   : > { %v2948_v3 = vpop.xlane.xlu0 %2947 }
 0x6e9   : > { %v6045_v49 = vsub.f32 %v5939_v59, %v2967_v50  ;;  %v2968_v55 = vmul.f32 0.03125, %v2948_v3 }
 0x6ea   : > { %v2951_v33 = vpop.xlane.xlu1 %2950 }
 0x6eb   : > { %v6048_v61 = vsub.f32 %v5947_v15, %v2968_v55  ;;  %v2969_v52 = vmul.f32 0.03125, %v2951_v33  ;;  %v2999_v39 = vmul.f32 %v6045_v49, %v6045_v49 }
 0x6ec   : > { %v2954_v1 = vpop.xlane.xlu0 %2953 }
 0x6ed   : > { %v6053_v29 = vsub.f32 %v5944_v41, %v2969_v52  ;;  %v2970_v31 = vmul.f32 0.03125, %v2954_v1  ;;  %v3039_v44 = vsel %vm456_vm0, %v2999_v39, 0.0  ;;  %v3000_v17 = vmul.f32 %v6048_v61, %v6048_v61 }
 0x6ee   : > { %3040 = vadd.xlane.f32.xlu1 %v3039_v44 }
 0x6ef   : > { %v6059_v18 = vsub.f32 %v5952_v30, %v2970_v31  ;;  %v3042_v43 = vsel %vm456_vm0, %v3000_v17, 0.0  ;;  %v3001_v47 = vmul.f32 %v6053_v29, %v6053_v29 }
 0x6f0   : > { %3043 = vadd.xlane.f32.xlu0 %v3042_v43 }
 0x6f1   : > { %v3045_v20 = vsel %vm456_vm0, %v3001_v47, 0.0  ;;  %v3002_v5 = vmul.f32 %v6059_v18, %v6059_v18 }
 0x6f2   : > { %3046 = vadd.xlane.f32.xlu1 %v3045_v20 }
 0x6f3   : > { %v3048_v14 = vsel %vm456_vm0, %v3002_v5, 0.0 }
 0x6f4   : > { %3049 = vadd.xlane.f32.xlu0 %v3048_v14 }
 0x71d   : > { %v3005_v7 = vpop.xlane.xlu1 %3004 }
 0x71e   : > { %v3051_v51 = vmul.f32 0.03125, %v3005_v7 }
 0x71f   : > { %v3008_v16 = vpop.xlane.xlu0 %3007 }
 0x720   : > { %v3067_v45 = vadd.f32 1e-05, %v3051_v51  ;;  %v3052_v24 = vmul.f32 0.03125, %v3008_v16 }
 0x721   : > { %v3011_v48 = vpop.xlane.xlu1 %3010 }
 0x722   : > { %4394 = vrsqrt.f32 %v3067_v45  ;;  %v3068_v57 = vadd.f32 1e-05, %v3052_v24  ;;  %v3053_v38 = vmul.f32 0.03125, %v3011_v48 }
 0x723   : > { %v3014_v27 = vpop.xlane.xlu0 %3013 }
 0x724   : > { %4396 = vrsqrt.f32 %v3068_v57  ;;  %v3069_v36 = vadd.f32 1e-05, %v3053_v38  ;;  %v3054_v37 = vmul.f32 0.03125, %v3014_v27 }
 0x725   : > { %v3017_v12 = vpop.xlane.xlu1 %3016 }
 0x726   : > { %4398 = vrsqrt.f32 %v3069_v36  ;;  %v3070_v26 = vadd.f32 1e-05, %v3054_v37  ;;  %v3055_v8 = vmul.f32 0.03125, %v3017_v12 }
 0x727   : > { %v3020_v40 = vpop.xlane.xlu0 %3019 }
 0x728   : > { %4400 = vrsqrt.f32 %v3070_v26  ;;  %v3071_v19 = vadd.f32 1e-05, %v3055_v8  ;;  %v3056_v56 = vmul.f32 0.03125, %v3020_v40 }
 0x729   : > { %v3023_v50 = vpop.xlane.xlu1 %3022 }
 0x72a   : > { %4402 = vrsqrt.f32 %v3071_v19  ;;  %v3072_v3 = vadd.f32 1e-05, %v3056_v56  ;;  %v3057_v55 = vmul.f32 0.03125, %v3023_v50 }
 0x72b   : > { %v3026_v33 = vpop.xlane.xlu0 %3025 }
 0x72c   : > { %v4395_v52 = vpop.eup %4394  ;;  %4404 = vrsqrt.f32 %v3072_v3  ;;  %v3073_v39 = vadd.f32 1e-05, %v3057_v55  ;;  %v3058_v1 = vmul.f32 0.03125, %v3026_v33 }
 0x72d   : > { %v3029_v31 = vpop.xlane.xlu1 %3028  ;;  %v3099_v20 = vmul.f32 %v4395_v52, %v5961_v42 }
 0x72e   : > { %v4397_v44 = vpop.eup %4396  ;;  %4406 = vrsqrt.f32 %v3073_v39  ;;  %v3074_v17 = vadd.f32 1e-05, %v3058_v1  ;;  %v3059_v43 = vmul.f32 0.03125, %v3029_v31 }
 0x72f   : > { %v3032_v47 = vpop.xlane.xlu0 %3031  ;;  %v3100_v5 = vmul.f32 %v4397_v44, %v5964_v53 }
 0x730   : > { %v4399_v14 = vpop.eup %4398  ;;  %4408 = vrsqrt.f32 %v3074_v17  ;;  %v3075_v7 = vadd.f32 1e-05, %v3059_v43  ;;  %v3060_v51 = vmul.f32 0.03125, %v3032_v47 }
 0x731   : > { %v3035_v16 = vpop.xlane.xlu1 %3034  ;;  %v3119_v45 = vpack.c.bf16 %v3100_v5, %v3099_v20  ;;  %v3101_v38 = vmul.f32 %v4399_v14, %v5969_v62 }
 0x732   : > { %v4401_v24 = vpop.eup %4400  ;;  %4410 = vrsqrt.f32 %v3075_v7  ;;  %v3076_v48 = vadd.f32 1e-05, %v3060_v51  ;;  %v3061_v57 = vmul.f32 0.03125, %v3035_v16 }
 0x733   : > { %v3102_v27 = vmul.f32 %v4401_v24, %v5975_v4  ;;  %3997 = vmatprep.mubr.msk.bf16.mxu1 %vm456_vm0, %v3119_v45  ;;  %v3038_v36 = vpop.xlane.xlu0 %3037 }
 0x734   : > { %v4403_v42 = vpop.eup %4402  ;;  %4412 = vrsqrt.f32 %v3076_v48  ;;  %v3077_v53 = vadd.f32 1e-05, %v3061_v57  ;;  %v3062_v37 = vmul.f32 0.03125, %v3038_v36 }
 0x735   : > { %v3120_v12 = vpack.c.bf16 %v3102_v27, %v3101_v38  ;;  %v3103_v40 = vmul.f32 %v4403_v42, %v5981_v58 }
 0x736   : > { %v4405_v26 = vpop.eup %4404  ;;  %4414 = vrsqrt.f32 %v3077_v53  ;;  %v3078_v8 = vadd.f32 1e-05, %v3062_v37  ;;  %v3337_v37 = vld [vmem:[%s6203_s10] sm:$0xff] }
 0x737   : > { %3998 = vmatmul.mubr.msk.bf16.vlgmr.msra.gmra.mrb[60].mxu1 %vm456_vm0, %v3120_v12  ;;  %v3104_v19 = vmul.f32 %v4405_v26, %v5987_v0  ;;  %v6107_v26 = vld [vmem:[%s6202_s9] ss:$0 sm:$0xff] }
 0x738   : > { %v4407_v62 = vpop.eup %4406  ;;  %4416 = vrsqrt.f32 %v3078_v8 }
 0x739   : > { %v3121_v4 = vpack.c.bf16 %v3104_v19, %v3103_v40  ;;  %v3105_v50 = vmul.f32 %v4407_v62, %v5993_v46 }
 0x73a   : > { %v4409_v56 = vpop.eup %4408 }
 0x73b   : > { %4001 = vmatprep.mubr.msk.bf16.mxu1 %vm456_vm0, %v3121_v4  ;;  %v3106_v3 = vmul.f32 %v4409_v56, %v5999_v6 }
 0x73c   : > { %v4411_v55 = vpop.eup %4410 }
 0x73d   : > { %v3122_v33 = vpack.c.bf16 %v3106_v3, %v3105_v50  ;;  %v3107_v39 = vmul.f32 %v4411_v55, %v6005_v2 }
 0x73e   : > { %v4413_v52 = vpop.eup %4412 }
 0x73f   : > { %4002 = vmatmul.mubr.msk.bf16.gmra.mrb[64].mxu1 %vm456_vm0, %v3122_v33  ;;  %v3108_v58 = vmul.f32 %v4413_v52, %v6011_v21 }
 0x740   : > { %v4415_v0 = vpop.eup %4414 }
 0x741   : > { %v3123_v1 = vpack.c.bf16 %v3108_v58, %v3107_v39  ;;  %v3109_v44 = vmul.f32 %v4415_v0, %v6017_v9 }
 0x742   : > { %v4417_v31 = vpop.eup %4416 }
 0x743   : > { %4005 = vmatprep.mubr.msk.bf16.mxu1 %vm456_vm0, %v3123_v1  ;;  %v3110_v46 = vmul.f32 %v4417_v31, %v6023_v32 }
 0x745   : > { %v3124_v17 = vpack.c.bf16 %v3110_v46, %v3109_v44 }
 0x747   : > { %4006 = vmatmul.mubr.msk.bf16.gmra.mrb[68].mxu1 %vm456_vm0, %v3124_v17 }
 0x77b   : > { %v3041_v6 = vpop.xlane.xlu1 %3040 }
 0x77c   : > { %v3063_v43 = vmul.f32 0.03125, %v3041_v6 }
 0x77d   : > { %v3044_v47 = vpop.xlane.xlu0 %3043 }
 0x77e   : > { %v3079_v20 = vadd.f32 1e-05, %v3063_v43  ;;  %v3064_v5 = vmul.f32 0.03125, %v3044_v47 }
 0x77f   : > { %v3047_v2 = vpop.xlane.xlu1 %3046 }
 0x780   : > { %4418 = vrsqrt.f32 %v3079_v20  ;;  %v3080_v21 = vadd.f32 1e-05, %v3064_v5  ;;  %v3065_v14 = vmul.f32 0.03125, %v3047_v2 }
 0x781   : > { %v3050_v7 = vpop.xlane.xlu0 %3049 }
 0x782   : > { %4420 = vrsqrt.f32 %v3080_v21  ;;  %v3081_v51 = vadd.f32 1e-05, %v3065_v14  ;;  %v3066_v16 = vmul.f32 0.03125, %v3050_v7 }
 0x784   : > { %4422 = vrsqrt.f32 %v3081_v51  ;;  %v3082_v9 = vadd.f32 1e-05, %v3066_v16 }
 0x786   : > { %4424 = vrsqrt.f32 %v3082_v9 }
 0x78a   : > { %v4419_v32 = vpop.eup %4418 }
 0x78b   : > { %v3111_v24 = vmul.f32 %v4419_v32, %v6045_v49  ;;  %v3338_v49 = vld [vmem:[%s6203_s10 + $0x8] sm:$0xff] }
 0x78c   : > { %v4421_v45 = vpop.eup %4420 }
 0x78d   : > { %v3112_v48 = vmul.f32 %v4421_v45, %v6048_v61  ;;  %v3349_v61 = vpack.c.bf16 %v3338_v49, %v3337_v37 }
 0x78e   : > { %v4423_v57 = vpop.eup %4422 }
 0x78f   : > { %v3125_v38 = vpack.c.bf16 %v3112_v48, %v3111_v24  ;;  %v3113_v36 = vmul.f32 %v4423_v57, %v6053_v29  ;;  %4013 = vmatprep.subr.bf16.mxu1 %v3349_v61  ;;  %v3339_v29 = vld [vmem:[%s6203_s10 + $0x10] sm:$0xff] }
 0x790   : > { %v4425_v27 = vpop.eup %4424  ;;  %4014 = vmatpush3.bf16.msra.mxu1 %v3349_v61 }
 0x791   : > { %4009 = vmatprep.mubr.msk.bf16.mxu1 %vm456_vm0, %v3125_v38  ;;  %v3114_v42 = vmul.f32 %v4425_v27, %v6059_v18  ;;  %v3340_v18 = vld [vmem:[%s6203_s10 + $0x18] sm:$0xff] }
 0x792   : > { %v3350_v12 = vpack.c.bf16 %v3340_v18, %v3339_v29 }
 0x793   : > { %v3126_v53 = vpack.c.bf16 %v3114_v42, %v3113_v36 }
 0x794   : > { %4015 = vmatprep.subr.bf16.mxu1 %v3350_v12 }
 0x795   : > { %4010 = vmatmul.mubr.msk.bf16.gmra.mrb[72].mxu1 %vm456_vm0, %v3126_v53 }
 0x796   : > { %4016 = vmatpush3.bf16.msra.mxu1 %v3350_v12 }
 0x80a   : > { %v3999_v8 = vpop.f32.mrb[60].mxu1 }
 0x80b   : > { %v3203_v40 = vadd.f32 %v3999_v8, %v6107_v26  ;;  %v3194_v19 = vpop.f32.mrb[61].mxu1 }
 0x80c   : > { %v3195_v62 = vadd.f32 %v6107_v26, %v3194_v19  ;;  %v4000_v4 = vpop.f32.mrb[62].mxu1 }
 0x80d   : > { %v3275_v56 = vmul.f32 0.70710677, %v3203_v40  ;;  %v3206_v50 = vadd.f32 %v4000_v4, %v6107_v26  ;;  %v3197_v3 = vpop.f32.mrb[63].mxu1  ;;  %v3259_v24 = vmul.f32 0.5, %v3203_v40 }
 0x80e   : > { %v3273_v55 = vmul.f32 0.70710677, %v3195_v62  ;;  %v3198_v33 = vadd.f32 %v6107_v26, %v3197_v3  ;;  %v3257_v36 = vmul.f32 0.5, %v3195_v62 }
 0x80f   : > { %4426 = verf.f32 %v3275_v56  ;;  %v3276_v52 = vmul.f32 0.70710677, %v3206_v50  ;;  %v3260_v48 = vmul.f32 0.5, %v3206_v50 }
 0x810   : > { %4428 = verf.f32 %v3273_v55  ;;  %v3274_v39 = vmul.f32 0.70710677, %v3198_v33  ;;  %v3258_v42 = vmul.f32 0.5, %v3198_v33 }
 0x811   : > { %4430 = verf.f32 %v3276_v52 }
 0x812   : > { %4432 = verf.f32 %v3274_v39  ;;  %v4003_v58 = vpop.f32.mrb[64].mxu1 }
 0x813   : > { %v3219_v0 = vadd.f32 %v4003_v58, %v6107_v26  ;;  %v3210_v1 = vpop.f32.mrb[65].mxu1 }
 0x814   : > { %v3211_v31 = vadd.f32 %v6107_v26, %v3210_v1  ;;  %v4004_v44 = vpop.f32.mrb[66].mxu1 }
 0x815   : > { %v3279_v46 = vmul.f32 0.70710677, %v3219_v0  ;;  %v3222_v17 = vadd.f32 %v4004_v44, %v6107_v26  ;;  %v3213_v6 = vpop.f32.mrb[67].mxu1  ;;  %v3263_v1 = vmul.f32 0.5, %v3219_v0 }
 0x816   : > { %v3277_v43 = vmul.f32 0.70710677, %v3211_v31  ;;  %v3214_v47 = vadd.f32 %v6107_v26, %v3213_v6  ;;  %v3261_v6 = vmul.f32 0.5, %v3211_v31 }
 0x817   : > { %4434 = verf.f32 %v3279_v46  ;;  %v3280_v20 = vmul.f32 0.70710677, %v3222_v17  ;;  %v3264_v44 = vmul.f32 0.5, %v3222_v17 }
 0x818   : > { %4436 = verf.f32 %v3277_v43  ;;  %v3278_v5 = vmul.f32 0.70710677, %v3214_v47  ;;  %v3262_v43 = vmul.f32 0.5, %v3214_v47 }
 0x819   : > { %v4427_v2 = vpop.eup %4426  ;;  %4438 = verf.f32 %v3280_v20 }
 0x81a   : > { %v4429_v21 = vpop.eup %4428  ;;  %v3307_v14 = vadd.f32 1.0, %v4427_v2  ;;  %4440 = verf.f32 %v3278_v5  ;;  %v4007_v7 = vpop.f32.mrb[68].mxu1 }
 0x81b   : > { %v4431_v51 = vpop.eup %4430  ;;  %v3305_v16 = vadd.f32 1.0, %v4429_v21  ;;  %v3235_v9 = vadd.f32 %v4007_v7, %v6107_v26  ;;  %v3226_v32 = vpop.f32.mrb[69].mxu1 }
 0x81c   : > { %v4433_v45 = vpop.eup %4432  ;;  %v3308_v57 = vadd.f32 1.0, %v4431_v51  ;;  %v3227_v38 = vadd.f32 %v6107_v26, %v3226_v32  ;;  %v4008_v27 = vpop.f32.mrb[70].mxu1  ;;  %v3323_v61 = vmul.f32 %v3307_v14, %v3259_v24 }
 0x81d   : > { %v3306_v53 = vadd.f32 1.0, %v4433_v45  ;;  %v3283_v37 = vmul.f32 0.70710677, %v3235_v9  ;;  %v3229_v49 = vpop.f32.mrb[71].mxu1  ;;  %v3238_v12 = vadd.f32 %v4008_v27, %v6107_v26  ;;  %v3321_v8 = vmul.f32 %v3305_v16, %v3257_v36 }
 0x81e   : > { %v3324_v29 = vmul.f32 %v3308_v57, %v3260_v48  ;;  %v3281_v18 = vmul.f32 0.70710677, %v3227_v38  ;;  %v3230_v40 = vadd.f32 %v6107_v26, %v3229_v49  ;;  %v3267_v48 = vmul.f32 0.5, %v3235_v9 }
 0x81f   : > { %v3322_v19 = vmul.f32 %v3306_v53, %v3258_v42  ;;  %4442 = verf.f32 %v3283_v37  ;;  %v3284_v56 = vmul.f32 0.70710677, %v3238_v12  ;;  %v3268_v31 = vmul.f32 0.5, %v3238_v12 }
 0x820   : > { %v3342_v4 = vpack.c.bf16 %v3324_v29, %v3323_v61  ;;  %4444 = verf.f32 %v3281_v18  ;;  %v3282_v62 = vmul.f32 0.70710677, %v3230_v40  ;;  %v3265_v57 = vmul.f32 0.5, %v3227_v38 }
 0x821   : > { %v4435_v50 = vpop.eup %4434  ;;  %v3341_v3 = vpack.c.bf16 %v3322_v19, %v3321_v8  ;;  %4446 = verf.f32 %v3284_v56  ;;  %v3266_v27 = vmul.f32 0.5, %v3230_v40 }
 0x822   : > { %v4437_v55 = vpop.eup %4436  ;;  %v3311_v33 = vadd.f32 1.0, %v4435_v50  ;;  %4448 = verf.f32 %v3282_v62 }
 0x823   : > { %v4439_v52 = vpop.eup %4438  ;;  %v3309_v39 = vadd.f32 1.0, %v4437_v55  ;;  %4017 = vmatprep.mubr.msk.bf16.mxu1 %vm456_vm0, %v3341_v3 }
 0x824   : > { %v4441_v58 = vpop.eup %4440  ;;  %v3312_v46 = vadd.f32 1.0, %v4439_v52  ;;  %4018 = vmatmul.mubr.msk.bf16.vlgmr.msra.gmra.mrb[76].mxu1 %vm456_vm0, %v3342_v4  ;;  %v3327_v5 = vmul.f32 %v3311_v33, %v3263_v1 }
 0x825   : > { %v3310_v20 = vadd.f32 1.0, %v4441_v58  ;;  %v3325_v21 = vmul.f32 %v3309_v39, %v3261_v6 }
 0x826   : > { %v3328_v2 = vmul.f32 %v3312_v46, %v3264_v44 }
 0x827   : > { %v3326_v14 = vmul.f32 %v3310_v20, %v3262_v43 }
 0x828   : > { %v3344_v7 = vpack.c.bf16 %v3328_v2, %v3327_v5 }
 0x829   : > { %v4443_v51 = vpop.eup %4442  ;;  %v3343_v16 = vpack.c.bf16 %v3326_v14, %v3325_v21 }
 0x82a   : > { %v4445_v32 = vpop.eup %4444  ;;  %v3315_v45 = vadd.f32 1.0, %v4443_v51 }
 0x82b   : > { %4021 = vmatprep.mubr.msk.bf16.mxu1 %vm456_vm0, %v3343_v16  ;;  %v4447_v24 = vpop.eup %4446  ;;  %v3313_v0 = vadd.f32 1.0, %v4445_v32  ;;  %v3692_v16 = vld [vmem:[%s6204_s11] ss:$0 sm:$0xff] }
 0x82c   : > { %4022 = vmatmul.mubr.msk.bf16.gmra.mrb[80].mxu1 %vm456_vm0, %v3344_v7  ;;  %v4449_v17 = vpop.eup %4448  ;;  %v3316_v47 = vadd.f32 1.0, %v4447_v24  ;;  %v3331_v42 = vmul.f32 %v3315_v45, %v3267_v48 }
 0x82d   : > { %v3314_v36 = vadd.f32 1.0, %v4449_v17  ;;  %v3329_v37 = vmul.f32 %v3313_v0, %v3265_v57 }
 0x82e   : > { %v3332_v53 = vmul.f32 %v3316_v47, %v3268_v31 }
 0x82f   : > { %v3330_v49 = vmul.f32 %v3314_v36, %v3266_v27 }
 0x830   : > { %v3346_v61 = vpack.c.bf16 %v3332_v53, %v3331_v42 }
 0x831   : > { %v3345_v29 = vpack.c.bf16 %v3330_v49, %v3329_v37 }
 0x833   : > { %4025 = vmatprep.mubr.msk.bf16.mxu1 %vm456_vm0, %v3345_v29 }
 0x834   : > { %4026 = vmatmul.mubr.msk.bf16.gmra.mrb[84].mxu1 %vm456_vm0, %v3346_v61 }
 0x868   : > { %v4011_v18 = vpop.f32.mrb[72].mxu1 }
 0x869   : > { %v3251_v8 = vadd.f32 %v4011_v18, %v6107_v26  ;;  %v3242_v19 = vpop.f32.mrb[73].mxu1 }
 0x86a   : > { %v3243_v9 = vadd.f32 %v6107_v26, %v3242_v19  ;;  %v4012_v12 = vpop.f32.mrb[74].mxu1 }
 0x86b   : > { %v3287_v38 = vmul.f32 0.70710677, %v3251_v8  ;;  %v3254_v40 = vadd.f32 %v4012_v12, %v6107_v26  ;;  %v3245_v4 = vpop.f32.mrb[75].mxu1  ;;  %v3271_v44 = vmul.f32 0.5, %v3251_v8 }
 0x86c   : > { %v3285_v56 = vmul.f32 0.70710677, %v3243_v9  ;;  %v3246_v50 = vadd.f32 %v6107_v26, %v3245_v4  ;;  %v3269_v43 = vmul.f32 0.5, %v3243_v9 }
 0x86d   : > { %4450 = verf.f32 %v3287_v38  ;;  %v3288_v3 = vmul.f32 0.70710677, %v3254_v40  ;;  %v3272_v46 = vmul.f32 0.5, %v3254_v40 }
 0x86e   : > { %4452 = verf.f32 %v3285_v56  ;;  %v3286_v62 = vmul.f32 0.70710677, %v3246_v50  ;;  %v3270_v20 = vmul.f32 0.5, %v3246_v50 }
 0x86f   : > { %4454 = verf.f32 %v3288_v3 }
 0x870   : > { %4456 = verf.f32 %v3286_v62 }
 0x877   : > { %v4451_v55 = vpop.eup %4450 }
 0x878   : > { %v4453_v33 = vpop.eup %4452  ;;  %v3319_v52 = vadd.f32 1.0, %v4451_v55 }
 0x879   : > { %v4455_v39 = vpop.eup %4454  ;;  %v3317_v58 = vadd.f32 1.0, %v4453_v33 }
 0x87a   : > { %v4457_v1 = vpop.eup %4456  ;;  %v3320_v6 = vadd.f32 1.0, %v4455_v39  ;;  %v3335_v26 = vmul.f32 %v3319_v52, %v3271_v44 }
 0x87b   : > { %v3318_v5 = vadd.f32 1.0, %v4457_v1  ;;  %v3333_v21 = vmul.f32 %v3317_v58, %v3269_v43 }
 0x87c   : > { %v3336_v2 = vmul.f32 %v3320_v6, %v3272_v46 }
 0x87d   : > { %v3334_v14 = vmul.f32 %v3318_v5, %v3270_v20 }
 0x87e   : > { %v3348_v7 = vpack.c.bf16 %v3336_v2, %v3335_v26 }
 0x87f   : > { %v3347_v51 = vpack.c.bf16 %v3334_v14, %v3333_v21 }
 0x881   : > { %4029 = vmatprep.mubr.msk.bf16.mxu1 %vm456_vm0, %v3347_v51 }
 0x882   : > { %4030 = vmatmul.mubr.msk.bf16.gmra.mrb[88].mxu1 %vm456_vm0, %v3348_v7 }
 0x8f7   : > { %v4019_v32 = vpop.f32.mrb[76].mxu1 }
 0x8f8   : > { %v3425_v45 = vadd.f32 %v4019_v32, %v3692_v16  ;;  %v3416_v24 = vpop.f32.mrb[77].mxu1 }
 0x8f9   : > { %v3417_v0 = vadd.f32 %v3692_v16, %v3416_v24  ;;  %v4020_v17 = vpop.f32.mrb[78].mxu1 }
 0x8fa   : > { %v3481_v48 = vadd.f32 %v3425_v45, %v5872_v28  ;;  %v3428_v31 = vadd.f32 %v4020_v17, %v3692_v16  ;;  %v3419_v47 = vpop.f32.mrb[79].mxu1 }
 0x8fb   : > { %v3479_v57 = vadd.f32 %v3417_v0, %v5867_v25  ;;  %v3420_v27 = vadd.f32 %v3692_v16, %v3419_v47 }
 0x8fc   : > { %3497 = vst.msk [vmem:[%s6140_s16 + $0x10] sm:$0xff] %vm456_vm0, %v3481_v48  ;;  %v3482_v36 = vadd.f32 %v3428_v31, %v5880_v22 }
 0x8fd   : > { %3495 = vst.msk [vmem:[%s6140_s16] sm:$0xff] %vm456_vm0, %v3479_v57  ;;  %v3480_v42 = vadd.f32 %v3420_v27, %v5875_v11 }
 0x8fe   : > { %3498 = vst.msk [vmem:[%s6140_s16 + $0x18] sm:$0xff] %vm456_vm0, %v3482_v36 }
 0x8ff   : > { %3496 = vst.msk [vmem:[%s6140_s16 + $0x8] sm:$0xff] %vm456_vm0, %v3480_v42  ;;  %v4023_v28 = vpop.f32.mrb[80].mxu1 }
 0x900   : > { %v3441_v53 = vadd.f32 %v4023_v28, %v3692_v16  ;;  %v3432_v25 = vpop.f32.mrb[81].mxu1 }
 0x901   : > { %v3433_v37 = vadd.f32 %v3692_v16, %v3432_v25  ;;  %v4024_v49 = vpop.f32.mrb[82].mxu1 }
 0x902   : > { %v3485_v61 = vadd.f32 %v3441_v53, %v5896_v23  ;;  %v3444_v29 = vadd.f32 %v4024_v49, %v3692_v16  ;;  %v3435_v22 = vpop.f32.mrb[83].mxu1 }
 0x903   : > { %v3483_v18 = vadd.f32 %v3433_v37, %v5889_v54  ;;  %v3436_v8 = vadd.f32 %v3692_v16, %v3435_v22 }
 0x904   : > { %3501 = vst.msk [vmem:[%s6140_s16 + $0x30] sm:$0xff] %vm456_vm0, %v3485_v61  ;;  %v3486_v11 = vadd.f32 %v3444_v29, %v5904_v60 }
 0x905   : > { %3499 = vst.msk [vmem:[%s6140_s16 + $0x20] sm:$0xff] %vm456_vm0, %v3483_v18  ;;  %v3484_v19 = vadd.f32 %v3436_v8, %v5899_v63 }
 0x906   : > { %3502 = vst.msk [vmem:[%s6140_s16 + $0x38] sm:$0xff] %vm456_vm0, %v3486_v11 }
 0x907   : > { %3500 = vst.msk [vmem:[%s6140_s16 + $0x28] sm:$0xff] %vm456_vm0, %v3484_v19  ;;  %v4027_v23 = vpop.f32.mrb[84].mxu1 }
 0x908   : > { %v3457_v9 = vadd.f32 %v4027_v23, %v3692_v16  ;;  %v3448_v54 = vpop.f32.mrb[85].mxu1 }
 0x909   : > { %v3449_v12 = vadd.f32 %v3692_v16, %v3448_v54  ;;  %v4028_v38 = vpop.f32.mrb[86].mxu1 }
 0x90a   : > { %v3489_v40 = vadd.f32 %v3457_v9, %v5920_v10  ;;  %v3460_v4 = vadd.f32 %v4028_v38, %v3692_v16  ;;  %v3451_v60 = vpop.f32.mrb[87].mxu1 }
 0x90b   : > { %v3487_v56 = vadd.f32 %v3449_v12, %v5913_v35  ;;  %v3452_v50 = vadd.f32 %v3692_v16, %v3451_v60 }
 0x90c   : > { %3505 = vst.msk [vmem:[%s6140_s16 + $0x50] sm:$0xff] %vm456_vm0, %v3489_v40  ;;  %v3490_v63 = vadd.f32 %v3460_v4, %v5928_v13 }
 0x90d   : > { %3503 = vst.msk [vmem:[%s6140_s16 + $0x40] sm:$0xff] %vm456_vm0, %v3487_v56  ;;  %v3488_v3 = vadd.f32 %v3452_v50, %v5923_v34 }
 0x90e   : > { %3506 = vst.msk [vmem:[%s6140_s16 + $0x58] sm:$0xff] %vm456_vm0, %v3490_v63 }
 0x90f   : > { %3504 = vst.msk [vmem:[%s6140_s16 + $0x48] sm:$0xff] %vm456_vm0, %v3488_v3 }
 0x955   : > { %v4031_v10 = vpop.f32.mrb[88].mxu1 }
 0x956   : > { %v3473_v62 = vadd.f32 %v4031_v10, %v3692_v16  ;;  %v3464_v35 = vpop.f32.mrb[89].mxu1 }
 0x957   : > { %v3465_v55 = vadd.f32 %v3692_v16, %v3464_v35  ;;  %v4032_v33 = vpop.f32.mrb[90].mxu1 }
 0x958   : > { %v3493_v52 = vadd.f32 %v3473_v62, %v5944_v41  ;;  %v3476_v39 = vadd.f32 %v4032_v33, %v3692_v16  ;;  %v3467_v13 = vpop.f32.mrb[91].mxu1 }
 0x959   : > { %v3491_v58 = vadd.f32 %v3465_v55, %v5939_v59  ;;  %v3468_v1 = vadd.f32 %v3692_v16, %v3467_v13 }
 0x95a   : > { %3509 = vst.msk [vmem:[%s6140_s16 + $0x70] sm:$0xff] %vm456_vm0, %v3493_v52  ;;  %v3494_v34 = vadd.f32 %v3476_v39, %v5952_v30 }
 0x95b   : > { %3507 = vst.msk [vmem:[%s6140_s16 + $0x60] sm:$0xff] %vm456_vm0, %v3491_v58  ;;  %v3492_v44 = vadd.f32 %v3468_v1, %v5947_v15 }
 0x95c   : > { %3510 = vst.msk [vmem:[%s6140_s16 + $0x78] sm:$0xff] %vm456_vm0, %v3494_v34 }
 0x95d   : > { %3508 = vst.msk [vmem:[%s6140_s16 + $0x68] sm:$0xff] %vm456_vm0, %v3492_v44 }
 0x95e PF: > { %s22_s21 = sadd.s32 1, %s4480_s21  }
 0x95f   : > { %p19_p4 = scmp.ge.s32.totalorder %s22_s21, 6  }
 0x961   :  { %21 = sbr.rel (!%p19_p4) target bundleno = 1 (0x1), region = 104 }

</bundles_post_ra>
